<compile_context>
chip_gen: v5e
topology: v5e:2x2
jax: 0.10.0
libtpu: 0.0.40
codegen_flags: <defaults>
</compile_context>

<pallas_src>
import functools
import math

import jax
import jax.numpy as jnp
from jax import lax
from jax.experimental import pallas as pl
from jax.experimental.pallas import tpu as pltpu

# ----------------------------- configuration ---------------------------------
N_CLS = 4          # number of class names
N_NEGA_CTX = 2     # cfg['NEGA_CTX']
N_CTX = 4          # cfg['N_CTX'] (generic context, CSC = 0, ctx_init = None)
CTX_DIM = 128      # text transformer width (== ln_final.weight.shape[0])
SEQ_LEN = 16       # tokenized prompt length (real CLIP: 77)
EMBED_DIM = 128    # joint embedding dim
TEXT_HEADS = 4
VIS_HEADS = 4
MLP_HIDDEN = 256
VOCAB = 64

IMG_SIZE = 32      # scaled-down (real CLIP: 224)
PATCH = 16
VIS_DIM = 128
N_PATCHES = (IMG_SIZE // PATCH) ** 2          # 4
VIS_TOKENS = N_PATCHES + 1                    # +1 class token (= 5 real tokens)
VIS_TOKENS_PAD = 8                            # padded to an 8-sublane multiple
CPP = 3 * PATCH * PATCH                       # im2col row width = 768

BATCH = 2
N_PROMPTS = N_CLS * (1 + N_NEGA_CTX)          # 12


# ----------------------------- in-kernel helpers -----------------------------
def _layernorm(x, g, b, eps=1e-5):
    """f32 layernorm over the last dim; g/b are (1, D)."""
    mean = jnp.mean(x, axis=-1, keepdims=True)
    var = jnp.mean(jnp.square(x - mean), axis=-1, keepdims=True)
    return (x - mean) * lax.rsqrt(var + eps) * g + b


def _mxu_dot(a, b):
    """a @ b with bf16 MXU operands, f32 accumulation."""
    return jnp.dot(a.astype(jnp.bfloat16), b.astype(jnp.bfloat16),
                   preferred_element_type=jnp.float32)


_TRANS_B = (((1,), (1,)), ((), ()))           # contract both last dims == a @ b.T


def _mxu_dot_tb(a, b):
    """a @ b.T without an in-kernel transpose (bf16 operands, f32 accumulation)."""
    return lax.dot_general(a.astype(jnp.bfloat16), b.astype(jnp.bfloat16),
                           _TRANS_B, preferred_element_type=jnp.float32)


_BLOCK_KEYS = ("ln1_g", "ln1_b", "qkv_w", "qkv_b", "proj_w", "proj_b",
               "ln2_g", "ln2_b", "fc1_w", "fc1_b", "fc2_w", "fc2_b")
_BLOCK_MATMUL_KEYS = ("qkv_w", "proj_w", "fc1_w", "fc2_w")


def _load_block(refs):
    return {k: r[...] for k, r in zip(_BLOCK_KEYS, refs)}


def _residual_block(x, attn_bias, n_heads, w):
    """CLIP ResidualAttentionBlock: x += MHA(LN1(x)); x += MLP(LN2(x)).  x: (L, D) f32."""
    L, D = x.shape
    dh = D // n_heads
    scale = 1.0 / math.sqrt(dh)

    h = _layernorm(x, w["ln1_g"], w["ln1_b"])
    qkv = _mxu_dot(h, w["qkv_w"]) + w["qkv_b"]                 # (L, 3D) f32

    attn = jnp.zeros((L, D), jnp.float32)
    for hd in range(n_heads):                                  # static unroll
        lo = hd * dh
        q = qkv[:, lo:lo + dh]
        k = qkv[:, D + lo:D + lo + dh]
        v = qkv[:, 2 * D + lo:2 * D + lo + dh]
        s = _mxu_dot_tb(q, k) * scale + attn_bias              # (L, L) f32 scores
        s = s - jnp.max(s, axis=-1, keepdims=True)
        p = jnp.exp(s)
        p = p * pl.reciprocal(jnp.sum(p, axis=-1, keepdims=True), approx=True)
        o = _mxu_dot(p, v)                                     # (L, dh)
        # fold the head-concat into the out-projection: concat(o_h) @ W = sum_h o_h @ W[h]
        attn = attn + _mxu_dot(o, w["proj_w"][lo:lo + dh, :])  # lane-dense (L, D)
    x = x + attn + w["proj_b"]

    h = _layernorm(x, w["ln2_g"], w["ln2_b"])
    h = _mxu_dot(h, w["fc1_w"]) + w["fc1_b"]
    h = h * jax.nn.sigmoid(1.702 * h)                          # QuickGELU (f32 VPU/EUP)
    h = _mxu_dot(h, w["fc2_w"]) + w["fc2_b"]
    return x + h


# ----------------------------- fused tower kernels ----------------------------
def _text_tower_kernel(eot_ref, prompts_ref, pos_ref, *rest):
    """One prompt per grid step: embeddings -> transformer -> ln_final -> EOT @ proj."""
    block_refs = rest[:12]
    lnf_g_ref, lnf_b_ref, tproj_ref, out_ref = rest[12:]
    i = pl.program_id(0)
    L, D = SEQ_LEN, CTX_DIM

    x = prompts_ref[0] + pos_ref[...]                          # (L, D) f32

    row = lax.broadcasted_iota(jnp.int32, (L, L), 0)           # causal mask built in-kernel
    col = lax.broadcasted_iota(jnp.int32, (L, L), 1)
    causal = jnp.where(col <= row, 0.0, -1e9).astype(jnp.float32)

    x = _residual_block(x, causal, TEXT_HEADS, _load_block(block_refs))
    x = _layernorm(x, lnf_g_ref[...], lnf_b_ref[...])

    # EOT-token gather as a one-hot matmul; index comes from SMEM scalar prefetch.
    eot = eot_ref[i]
    sel = (lax.broadcasted_iota(jnp.int32, (1, L), 1) == eot).astype(jnp.float32)
    x_eot = jnp.dot(sel, x, preferred_element_type=jnp.float32)      # (1, D)
    out_ref[0] = _mxu_dot(x_eot, tproj_ref[...]).astype(out_ref.dtype)


def _vision_tower_kernel(patch_ref, delta_ref, base_ref, conv_w_ref,
                         ln_pre_g_ref, ln_pre_b_ref, *rest):
    """One image per grid step: (+perturbation) -> patch embed -> ViT block -> cls @ proj."""
    block_refs = rest[:12]
    ln_post_g_ref, ln_post_b_ref, proj_ref, out_ref = rest[12:]
    T = VIS_TOKENS_PAD

    # perturbation add fused with the conv1 (im2col matmul); pad rows are zero.
    patches = patch_ref[0] + delta_ref[...]                    # (T, C*P*P) f32
    x = base_ref[...] + _mxu_dot(patches, conv_w_ref[...])     # (T, D) cls/pos base + patches
    x = _layernorm(x, ln_pre_g_ref[...], ln_pre_b_ref[...])

    # additive key mask: only the VIS_TOKENS real tokens are attendable (pads masked).
    col = lax.broadcasted_iota(jnp.int32, (T, T), 1)
    key_bias = jnp.where(col < VIS_TOKENS, 0.0, -1e9).astype(jnp.float32)

    x = _residual_block(x, key_bias, VIS_HEADS, _load_block(block_refs))

    cls_tok = _layernorm(x[0:1, :], ln_post_g_ref[...], ln_post_b_ref[...])
    out_ref[0] = _mxu_dot(cls_tok, proj_ref[...]).astype(out_ref.dtype)


def _clip_logits_kernel(img_ref, txt_ref, scale_ref, logits_ref, txt_out_ref):
    imf = img_ref[...]
    txf = txt_ref[...]
    imf = imf * lax.rsqrt(jnp.sum(imf * imf, axis=-1, keepdims=True) + 1e-12)
    txf = txf * lax.rsqrt(jnp.sum(txf * txf, axis=-1, keepdims=True) + 1e-12)
    scale = jnp.exp(scale_ref[0, 0])
    # image @ text.T without an in-kernel transpose (contract both last dims), f32 MXU.
    logits = lax.dot_general(imf, txf, _TRANS_B, preferred_element_type=jnp.float32)
    logits_ref[...] = (scale * logits).astype(logits_ref.dtype)
    txt_out_ref[...] = txf.astype(txt_out_ref.dtype)


# ----------------------------- host-side wrappers -----------------------------
def _block_operands(bp):
    """Flatten block params; matmul weights -> bf16, everything else -> (1, n) f32."""
    out = []
    for k in _BLOCK_KEYS:
        v = bp[k]
        if k in _BLOCK_MATMUL_KEYS:
            out.append(v.astype(jnp.bfloat16))
        else:
            out.append(v.reshape(1, -1).astype(jnp.float32))
    return tuple(out)


def encode_text(prompts, tokenized_prompts, p):
    """NegaTextEncoder.forward — one fused pallas_call over all prompts."""
    if prompts.ndim == 4:                          # (n_cls, 1+nega, L, D) -> flatten
        prompts = prompts.reshape(-1, prompts.shape[2], prompts.shape[3])
    n, L, D = prompts.shape
    eot_idx = jnp.argmax(tokenized_prompts, axis=-1).astype(jnp.int32)   # EOT = max id

    operands = (
        prompts.astype(jnp.float32),
        p["pos_emb"].astype(jnp.float32),
        *_block_operands(p["block"]),
        p["lnf_g"].reshape(1, D).astype(jnp.float32),
        p["lnf_b"].reshape(1, D).astype(jnp.float32),
        p["text_projection"].astype(jnp.bfloat16),
    )

    def _full(a):
        return pl.BlockSpec(a.shape, lambda i, eot: (0,) * a.ndim)

    in_specs = [pl.BlockSpec((1, L, D), lambda i, eot: (i, 0, 0))]
    in_specs += [_full(a) for a in operands[1:]]

    out = pl.pallas_call(
        _text_tower_kernel,
        grid_spec=pltpu.PrefetchScalarGridSpec(
            num_scalar_prefetch=1,
            grid=(n,),
            in_specs=in_specs,
            out_specs=pl.BlockSpec((1, 1, EMBED_DIM), lambda i, eot: (i, 0, 0)),
        ),
        out_shape=jax.ShapeDtypeStruct((n, 1, EMBED_DIM), jnp.float32),
        compiler_params=pltpu.CompilerParams(dimension_semantics=("parallel",)),
    )(eot_idx, *operands)
    return out.reshape(n, EMBED_DIM)


def _im2col(img_nchw):
    """(B, 3, H, W) -> (B, n_patches, C*P*P) — pure layout plumbing done by XLA."""
    b, c, h, w = img_nchw.shape
    gp = h // PATCH
    x = img_nchw.reshape(b, c, gp, PATCH, gp, PATCH)
    return jnp.transpose(x, (0, 2, 4, 1, 3, 5)).reshape(b, gp * gp, c * PATCH * PATCH)


def encode_image(image_nchw, perturbation, p):
    """Perturbation add + CLIP ViT visual encoder — one fused pallas_call over batch."""
    b = image_nchw.shape[0]

    patches = _im2col(image_nchw.astype(jnp.float32))                      # (B, NP, CPP)
    patches_pad = jnp.zeros((b, VIS_TOKENS_PAD, CPP), jnp.float32)
    patches_pad = patches_pad.at[:, 1:1 + N_PATCHES].set(patches)          # row0=cls slot

    delta = _im2col(perturbation.astype(jnp.float32)[None])[0]             # (NP, CPP)
    delta_pad = jnp.zeros((VIS_TOKENS_PAD, CPP), jnp.float32)
    delta_pad = delta_pad.at[1:1 + N_PATCHES].set(delta)

    # cls-token + positional-embedding base (pad rows stay zero).
    base = jnp.zeros((VIS_TOKENS_PAD, VIS_DIM), jnp.float32)
    base = base.at[0].set(p["class_emb"])
    base = base.at[:VIS_TOKENS].add(p["pos_emb"])

    operands = (
        patches_pad, delta_pad, base,
        p["conv_w"].astype(jnp.bfloat16),
        p["ln_pre_g"].reshape(1, -1).astype(jnp.float32),
        p["ln_pre_b"].reshape(1, -1).astype(jnp.float32),
        *_block_operands(p["block"]),
        p["ln_post_g"].reshape(1, -1).astype(jnp.float32),
        p["ln_post_b"].reshape(1, -1).astype(jnp.float32),
        p["proj"].astype(jnp.bfloat16),
    )

    def _full(a):
        return pl.BlockSpec(a.shape, lambda i: (0,) * a.ndim)

    in_specs = [pl.BlockSpec((1, VIS_TOKENS_PAD, CPP), lambda i: (i, 0, 0))]
    in_specs += [_full(a) for a in operands[1:]]

    out = pl.pallas_call(
        _vision_tower_kernel,
        grid=(b,),
        in_specs=in_specs,
        out_specs=pl.BlockSpec((1, 1, EMBED_DIM), lambda i: (i, 0, 0)),
        out_shape=jax.ShapeDtypeStruct((b, 1, EMBED_DIM), jnp.float32),
        compiler_params=pltpu.CompilerParams(dimension_semantics=("parallel",)),
    )(*operands)
    return out.reshape(b, EMBED_DIM)


def clip_logits(image_features, text_features, logit_scale):
    b, d = image_features.shape
    t = text_features.shape[0]
    return pl.pallas_call(
        _clip_logits_kernel,
        in_specs=[
            pl.BlockSpec(memory_space=pltpu.MemorySpace.VMEM),
            pl.BlockSpec(memory_space=pltpu.MemorySpace.VMEM),
            pl.BlockSpec(memory_space=pltpu.MemorySpace.SMEM),
        ],
        out_shape=(
            jax.ShapeDtypeStruct((b, t), jnp.float32),
            jax.ShapeDtypeStruct((t, d), jnp.float32),
        ),
    )(image_features.astype(jnp.float32), text_features.astype(jnp.float32),
      jnp.reshape(logit_scale.astype(jnp.float32), (1, 1)))


def prompt_learner_forward(p):
    """NegaPromptLearner.forward (CSC=0, ctx_init=None, modify_to_ori=None)."""
    ctx_pos = p["ctx_positive"]                     # (1, n_ctx, ctx_dim)
    ctx_neg = p["ctx_negative"]                     # (n_nega, n_ctx, ctx_dim)
    # diff = 0 here, so the zero-padding concat in torch is a no-op.
    ctx = jnp.concatenate([ctx_pos, ctx_neg], axis=0)           # (1+nega, n_ctx, D)
    ctx = jnp.broadcast_to(ctx[None], (N_CLS,) + ctx.shape)     # (n_cls, 1+nega, n_ctx, D)
    prefix = p["token_prefix"]                       # (n_cls, 1+nega, 1, D)
    suffix = p["token_suffix"]                       # (n_cls, 1+nega, L-1-n_ctx, D)
    return jnp.concatenate([prefix, ctx, suffix], axis=2)        # (n_cls, 1+nega, L, D)


@jax.jit
def nega_prompt_clip_forward(image, params):
    """NegaPromptCLIP.forward (stage != 3, modify_to_ori=None)."""
    prompts = prompt_learner_forward(params)
    text_features = encode_text(prompts, params["tokenized_prompts"], params["text"])
    # perturbation add is fused into the vision-tower patch-embedding kernel.
    image_features = encode_image(image, params["perturbation"], params["visual"])
    logits, text_features_n = clip_logits(image_features, text_features,
                                          params["logit_scale"])
    return logits, text_features_n


# ----------------------------- deterministic init ----------------------------
def _init_block(keys, d, hidden):
    return dict(
        ln1_g=jnp.ones((d,), jnp.float32), ln1_b=jnp.zeros((d,), jnp.float32),
        qkv_w=0.02 * jax.random.normal(next(keys), (d, 3 * d), jnp.float32),
        qkv_b=jnp.zeros((3 * d,), jnp.float32),
        proj_w=0.02 * jax.random.normal(next(keys), (d, d), jnp.float32),
        proj_b=jnp.zeros((d,), jnp.float32),
        ln2_g=jnp.ones((d,), jnp.float32), ln2_b=jnp.zeros((d,), jnp.float32),
        fc1_w=0.02 * jax.random.normal(next(keys), (d, hidden), jnp.float32),
        fc1_b=jnp.zeros((hidden,), jnp.float32),
        fc2_w=0.02 * jax.random.normal(next(keys), (hidden, d), jnp.float32),
        fc2_b=jnp.zeros((d,), jnp.float32),
    )


def init_params(key):
    keys = iter(jax.random.split(key, 64))
    nrm = lambda shape, std=0.02: std * jax.random.normal(next(keys), shape, jnp.float32)

    # --- toy tokenizer / token embedding (replaces clip.tokenize + token_embedding)
    sot_id, eot_id = VOCAB - 2, VOCAB - 1
    tokens = jnp.zeros((N_CLS, SEQ_LEN), jnp.int32)
    tokens = tokens.at[:, 0].set(sot_id)
    tokens = tokens.at[:, 1:1 + N_CTX].set(1)                      # "X" placeholders
    tokens = tokens.at[:, 1 + N_CTX].set(jnp.arange(N_CLS, dtype=jnp.int32) + 2)
    tokens = tokens.at[:, 2 + N_CTX].set(eot_id)                   # EOT = largest id
    embed_table = nrm((VOCAB, CTX_DIM))
    embedding = jnp.take(embed_table, tokens, axis=0)              # (n_cls, L, D)
    embedding = jnp.broadcast_to(embedding[:, None],
                                 (N_CLS, 1 + N_NEGA_CTX, SEQ_LEN, CTX_DIM))
    tokenized = jnp.broadcast_to(tokens[:, None, :],
                                 (N_CLS, 1 + N_NEGA_CTX, SEQ_LEN)
                                 ).reshape(N_PROMPTS, SEQ_LEN)

    params = dict(
        perturbation=jnp.zeros((3, IMG_SIZE, IMG_SIZE), jnp.float32),
        logit_scale=jnp.asarray(math.log(1.0 / 0.07), jnp.float32),
        ctx_positive=nrm((1, N_CTX, CTX_DIM)),
        ctx_negative=nrm((N_NEGA_CTX, N_CTX, CTX_DIM)),
        token_prefix=embedding[:, :, :1, :],
        token_suffix=embedding[:, :, 1 + N_CTX:, :],
        tokenized_prompts=tokenized,
        text=dict(
            pos_emb=nrm((SEQ_LEN, CTX_DIM)),
            block=_init_block(keys, CTX_DIM, MLP_HIDDEN),
            lnf_g=jnp.ones((CTX_DIM,), jnp.float32),
            lnf_b=jnp.zeros((CTX_DIM,), jnp.float32),
            text_projection=nrm((CTX_DIM, EMBED_DIM)),
        ),
        visual=dict(
            conv_w=nrm((CPP, VIS_DIM)),
            class_emb=nrm((VIS_DIM,)),
            pos_emb=nrm((VIS_TOKENS, VIS_DIM)),
            ln_pre_g=jnp.ones((VIS_DIM,), jnp.float32),
            ln_pre_b=jnp.zeros((VIS_DIM,), jnp.float32),
            block=_init_block(keys, VIS_DIM, MLP_HIDDEN),
            ln_post_g=jnp.ones((VIS_DIM,), jnp.float32),
            ln_post_b=jnp.zeros((VIS_DIM,), jnp.float32),
            proj=nrm((VIS_DIM, EMBED_DIM)),
        ),
    )
    return params


# ----------------------------------- main -------------------------------------
if __name__ == "__main__":
    root = jax.random.PRNGKey(0)
    k_params, k_img = jax.random.split(root)
    params = init_params(k_params)
    image = jax.random.normal(k_img, (BATCH, 3, IMG_SIZE, IMG_SIZE), jnp.float32)

    logits, text_features = nega_prompt_clip_forward(image, params)
    jax.block_until_ready((logits, text_features))

    assert logits.shape == (BATCH, N_PROMPTS)
    assert text_features.shape == (N_PROMPTS, EMBED_DIM)
    assert bool(jnp.all(jnp.isfinite(logits)))
    print("KERNEL_OK")
</pallas_src>

<mosaic_0001>
module attributes {stable_mosaic.version = 11 : i64} {
  func.func @_vision_tower_kernel(%arg0: i32, %arg1: memref<1x8x768xf32, #tpu.memory_space<vmem>>, %arg2: memref<8x768xf32, #tpu.memory_space<vmem>>, %arg3: memref<8x128xf32, #tpu.memory_space<vmem>>, %arg4: memref<768x128xbf16, #tpu.memory_space<vmem>>, %arg5: memref<1x128xf32, #tpu.memory_space<vmem>>, %arg6: memref<1x128xf32, #tpu.memory_space<vmem>>, %arg7: memref<1x128xf32, #tpu.memory_space<vmem>>, %arg8: memref<1x128xf32, #tpu.memory_space<vmem>>, %arg9: memref<128x384xbf16, #tpu.memory_space<vmem>>, %arg10: memref<1x384xf32, #tpu.memory_space<vmem>>, %arg11: memref<128x128xbf16, #tpu.memory_space<vmem>>, %arg12: memref<1x128xf32, #tpu.memory_space<vmem>>, %arg13: memref<1x128xf32, #tpu.memory_space<vmem>>, %arg14: memref<1x128xf32, #tpu.memory_space<vmem>>, %arg15: memref<128x256xbf16, #tpu.memory_space<vmem>>, %arg16: memref<1x256xf32, #tpu.memory_space<vmem>>, %arg17: memref<256x128xbf16, #tpu.memory_space<vmem>>, %arg18: memref<1x128xf32, #tpu.memory_space<vmem>>, %arg19: memref<1x128xf32, #tpu.memory_space<vmem>>, %arg20: memref<1x128xf32, #tpu.memory_space<vmem>>, %arg21: memref<128x128xbf16, #tpu.memory_space<vmem>>, %arg22: memref<1x1x128xf32, #tpu.memory_space<vmem>>) attributes {dimension_semantics = [#tpu.dimension_semantics<parallel>], iteration_bounds = array<i64: 2>, scalar_prefetch = 0 : i64, scratch_operands = 0 : i64, tpu.core_type = #tpu.core_type<tc>, window_params = [{transform_indices = @transform_0, window_bounds = array<i64: 1, 8, 768>}, {pipeline_mode = #tpu.pipeline_mode<synchronous>, transform_indices = @transform_1, window_bounds = array<i64: 8, 768>}, {pipeline_mode = #tpu.pipeline_mode<synchronous>, transform_indices = @transform_2, window_bounds = array<i64: 8, 128>}, {pipeline_mode = #tpu.pipeline_mode<synchronous>, transform_indices = @transform_3, window_bounds = array<i64: 768, 128>}, {pipeline_mode = #tpu.pipeline_mode<synchronous>, transform_indices = @transform_4, window_bounds = array<i64: 1, 128>}, {pipeline_mode = #tpu.pipeline_mode<synchronous>, transform_indices = @transform_5, window_bounds = array<i64: 1, 128>}, {pipeline_mode = #tpu.pipeline_mode<synchronous>, transform_indices = @transform_6, window_bounds = array<i64: 1, 128>}, {pipeline_mode = #tpu.pipeline_mode<synchronous>, transform_indices = @transform_7, window_bounds = array<i64: 1, 128>}, {pipeline_mode = #tpu.pipeline_mode<synchronous>, transform_indices = @transform_8, window_bounds = array<i64: 128, 384>}, {pipeline_mode = #tpu.pipeline_mode<synchronous>, transform_indices = @transform_9, window_bounds = array<i64: 1, 384>}, {pipeline_mode = #tpu.pipeline_mode<synchronous>, transform_indices = @transform_10, window_bounds = array<i64: 128, 128>}, {pipeline_mode = #tpu.pipeline_mode<synchronous>, transform_indices = @transform_11, window_bounds = array<i64: 1, 128>}, {pipeline_mode = #tpu.pipeline_mode<synchronous>, transform_indices = @transform_12, window_bounds = array<i64: 1, 128>}, {pipeline_mode = #tpu.pipeline_mode<synchronous>, transform_indices = @transform_13, window_bounds = array<i64: 1, 128>}, {pipeline_mode = #tpu.pipeline_mode<synchronous>, transform_indices = @transform_14, window_bounds = array<i64: 128, 256>}, {pipeline_mode = #tpu.pipeline_mode<synchronous>, transform_indices = @transform_15, window_bounds = array<i64: 1, 256>}, {pipeline_mode = #tpu.pipeline_mode<synchronous>, transform_indices = @transform_16, window_bounds = array<i64: 256, 128>}, {pipeline_mode = #tpu.pipeline_mode<synchronous>, transform_indices = @transform_17, window_bounds = array<i64: 1, 128>}, {pipeline_mode = #tpu.pipeline_mode<synchronous>, transform_indices = @transform_18, window_bounds = array<i64: 1, 128>}, {pipeline_mode = #tpu.pipeline_mode<synchronous>, transform_indices = @transform_19, window_bounds = array<i64: 1, 128>}, {pipeline_mode = #tpu.pipeline_mode<synchronous>, transform_indices = @transform_20, window_bounds = array<i64: 128, 128>}, {transform_indices = @transform_21, window_bounds = array<i64: 1, 1, 128>}]} {
    %c0 = arith.constant 0 : index
    %c0_0 = arith.constant 0 : index
    %c0_1 = arith.constant 0 : index
    %0 = vector.load %arg1[%c0, %c0_0, %c0_1] : memref<1x8x768xf32, #tpu.memory_space<vmem>>, vector<1x8x768xf32>
    %1 = vector.shape_cast %0 : vector<1x8x768xf32> to vector<8x768xf32>
    %c0_2 = arith.constant 0 : index
    %c0_3 = arith.constant 0 : index
    %2 = vector.load %arg2[%c0_2, %c0_3] : memref<8x768xf32, #tpu.memory_space<vmem>>, vector<8x768xf32>
    %3 = arith.addf %1, %2 : vector<8x768xf32>
    %c0_4 = arith.constant 0 : index
    %c0_5 = arith.constant 0 : index
    %4 = vector.load %arg3[%c0_4, %c0_5] : memref<8x128xf32, #tpu.memory_space<vmem>>, vector<8x128xf32>
    %c0_6 = arith.constant 0 : index
    %c0_7 = arith.constant 0 : index
    %5 = vector.load %arg4[%c0_6, %c0_7] : memref<768x128xbf16, #tpu.memory_space<vmem>>, vector<768x128xbf16>
    %6 = arith.truncf %3 : vector<8x768xf32> to vector<8x768xbf16>
    %cst = arith.constant dense<0.000000e+00> : vector<8x128xf32>
    %7 = tpu.matmul %6, %5, %cst {dimension_numbers = #tpu.dot_dimension_numbers<[1], [0], [0], [1], [0, 0, 1, 1], [], []>} : vector<8x768xbf16>, vector<768x128xbf16>, vector<8x128xf32> -> vector<8x128xf32>
    %8 = arith.addf %4, %7 : vector<8x128xf32>
    %c0_8 = arith.constant 0 : index
    %c0_9 = arith.constant 0 : index
    %9 = vector.load %arg5[%c0_8, %c0_9] : memref<1x128xf32, #tpu.memory_space<vmem>>, vector<1x128xf32>
    %c0_10 = arith.constant 0 : index
    %c0_11 = arith.constant 0 : index
    %10 = vector.load %arg6[%c0_10, %c0_11] : memref<1x128xf32, #tpu.memory_space<vmem>>, vector<1x128xf32>
    %cst_12 = arith.constant dense<0.000000e+00> : vector<8xf32>
    %11 = vector.multi_reduction <add>, %8, %cst_12 [1] : vector<8x128xf32> to vector<8xf32>
    %12 = vector.shape_cast %11 : vector<8xf32> to vector<8x1xf32>
    %cst_13 = arith.constant 1.280000e+02 : f32
    %13 = vector.broadcast %cst_13 : f32 to vector<8x1xf32>
    %14 = arith.divf %12, %13 : vector<8x1xf32>
    %15 = vector.broadcast %14 : vector<8x1xf32> to vector<8x128xf32>
    %16 = arith.subf %8, %15 : vector<8x128xf32>
    %17 = arith.mulf %16, %16 : vector<8x128xf32>
    %cst_14 = arith.constant dense<0.000000e+00> : vector<8xf32>
    %18 = vector.multi_reduction <add>, %17, %cst_14 [1] : vector<8x128xf32> to vector<8xf32>
    %19 = vector.shape_cast %18 : vector<8xf32> to vector<8x1xf32>
    %cst_15 = arith.constant 1.280000e+02 : f32
    %20 = vector.broadcast %cst_15 : f32 to vector<8x1xf32>
    %21 = arith.divf %19, %20 : vector<8x1xf32>
    %22 = vector.broadcast %14 : vector<8x1xf32> to vector<8x128xf32>
    %23 = arith.subf %8, %22 : vector<8x128xf32>
    %cst_16 = arith.constant 9.99999974E-6 : f32
    %24 = vector.broadcast %cst_16 : f32 to vector<8x1xf32>
    %25 = arith.addf %21, %24 : vector<8x1xf32>
    %26 = math.rsqrt %25 : vector<8x1xf32>
    %27 = vector.broadcast %26 : vector<8x1xf32> to vector<8x128xf32>
    %28 = arith.mulf %23, %27 : vector<8x128xf32>
    %29 = vector.broadcast %9 : vector<1x128xf32> to vector<8x128xf32>
    %30 = arith.mulf %28, %29 : vector<8x128xf32>
    %31 = vector.broadcast %10 : vector<1x128xf32> to vector<8x128xf32>
    %32 = arith.addf %30, %31 : vector<8x128xf32>
    %33 = tpu.iota {dimensions = array<i32: 1>} : vector<8x8xi32>
    %c5_i32 = arith.constant 5 : i32
    %34 = vector.broadcast %c5_i32 : i32 to vector<8x8xi32>
    %35 = arith.cmpi slt, %33, %34 : vector<8x8xi32>
    %cst_17 = arith.constant 0.000000e+00 : f32
    %cst_18 = arith.constant -1.000000e+09 : f32
    %36 = vector.broadcast %cst_17 : f32 to vector<8x8xf32>
    %37 = vector.broadcast %cst_18 : f32 to vector<8x8xf32>
    %38 = arith.select %35, %36, %37 : vector<8x8xi1>, vector<8x8xf32>
    %c0_19 = arith.constant 0 : index
    %c0_20 = arith.constant 0 : index
    %39 = vector.load %arg7[%c0_19, %c0_20] : memref<1x128xf32, #tpu.memory_space<vmem>>, vector<1x128xf32>
    %c0_21 = arith.constant 0 : index
    %c0_22 = arith.constant 0 : index
    %40 = vector.load %arg8[%c0_21, %c0_22] : memref<1x128xf32, #tpu.memory_space<vmem>>, vector<1x128xf32>
    %c0_23 = arith.constant 0 : index
    %c0_24 = arith.constant 0 : index
    %41 = vector.load %arg9[%c0_23, %c0_24] : memref<128x384xbf16, #tpu.memory_space<vmem>>, vector<128x384xbf16>
    %c0_25 = arith.constant 0 : index
    %c0_26 = arith.constant 0 : index
    %42 = vector.load %arg10[%c0_25, %c0_26] : memref<1x384xf32, #tpu.memory_space<vmem>>, vector<1x384xf32>
    %c0_27 = arith.constant 0 : index
    %c0_28 = arith.constant 0 : index
    %43 = vector.load %arg11[%c0_27, %c0_28] : memref<128x128xbf16, #tpu.memory_space<vmem>>, vector<128x128xbf16>
    %c0_29 = arith.constant 0 : index
    %c0_30 = arith.constant 0 : index
    %44 = vector.load %arg12[%c0_29, %c0_30] : memref<1x128xf32, #tpu.memory_space<vmem>>, vector<1x128xf32>
    %c0_31 = arith.constant 0 : index
    %c0_32 = arith.constant 0 : index
    %45 = vector.load %arg13[%c0_31, %c0_32] : memref<1x128xf32, #tpu.memory_space<vmem>>, vector<1x128xf32>
    %c0_33 = arith.constant 0 : index
    %c0_34 = arith.constant 0 : index
    %46 = vector.load %arg14[%c0_33, %c0_34] : memref<1x128xf32, #tpu.memory_space<vmem>>, vector<1x128xf32>
    %c0_35 = arith.constant 0 : index
    %c0_36 = arith.constant 0 : index
    %47 = vector.load %arg15[%c0_35, %c0_36] : memref<128x256xbf16, #tpu.memory_space<vmem>>, vector<128x256xbf16>
    %c0_37 = arith.constant 0 : index
    %c0_38 = arith.constant 0 : index
    %48 = vector.load %arg16[%c0_37, %c0_38] : memref<1x256xf32, #tpu.memory_space<vmem>>, vector<1x256xf32>
    %c0_39 = arith.constant 0 : index
    %c0_40 = arith.constant 0 : index
    %49 = vector.load %arg17[%c0_39, %c0_40] : memref<256x128xbf16, #tpu.memory_space<vmem>>, vector<256x128xbf16>
    %c0_41 = arith.constant 0 : index
    %c0_42 = arith.constant 0 : index
    %50 = vector.load %arg18[%c0_41, %c0_42] : memref<1x128xf32, #tpu.memory_space<vmem>>, vector<1x128xf32>
    %cst_43 = arith.constant dense<0.000000e+00> : vector<8xf32>
    %51 = vector.multi_reduction <add>, %32, %cst_43 [1] : vector<8x128xf32> to vector<8xf32>
    %52 = vector.shape_cast %51 : vector<8xf32> to vector<8x1xf32>
    %cst_44 = arith.constant 1.280000e+02 : f32
    %53 = vector.broadcast %cst_44 : f32 to vector<8x1xf32>
    %54 = arith.divf %52, %53 : vector<8x1xf32>
    %55 = vector.broadcast %54 : vector<8x1xf32> to vector<8x128xf32>
    %56 = arith.subf %32, %55 : vector<8x128xf32>
    %57 = arith.mulf %56, %56 : vector<8x128xf32>
    %cst_45 = arith.constant dense<0.000000e+00> : vector<8xf32>
    %58 = vector.multi_reduction <add>, %57, %cst_45 [1] : vector<8x128xf32> to vector<8xf32>
    %59 = vector.shape_cast %58 : vector<8xf32> to vector<8x1xf32>
    %cst_46 = arith.constant 1.280000e+02 : f32
    %60 = vector.broadcast %cst_46 : f32 to vector<8x1xf32>
    %61 = arith.divf %59, %60 : vector<8x1xf32>
    %62 = vector.broadcast %54 : vector<8x1xf32> to vector<8x128xf32>
    %63 = arith.subf %32, %62 : vector<8x128xf32>
    %cst_47 = arith.constant 9.99999974E-6 : f32
    %64 = vector.broadcast %cst_47 : f32 to vector<8x1xf32>
    %65 = arith.addf %61, %64 : vector<8x1xf32>
    %66 = math.rsqrt %65 : vector<8x1xf32>
    %67 = vector.broadcast %66 : vector<8x1xf32> to vector<8x128xf32>
    %68 = arith.mulf %63, %67 : vector<8x128xf32>
    %69 = vector.broadcast %39 : vector<1x128xf32> to vector<8x128xf32>
    %70 = arith.mulf %68, %69 : vector<8x128xf32>
    %71 = vector.broadcast %40 : vector<1x128xf32> to vector<8x128xf32>
    %72 = arith.addf %70, %71 : vector<8x128xf32>
    %73 = arith.truncf %72 : vector<8x128xf32> to vector<8x128xbf16>
    %cst_48 = arith.constant dense<0.000000e+00> : vector<8x384xf32>
    %74 = tpu.matmul %73, %41, %cst_48 {dimension_numbers = #tpu.dot_dimension_numbers<[1], [0], [0], [1], [0, 0, 1, 1], [], []>} : vector<8x128xbf16>, vector<128x384xbf16>, vector<8x384xf32> -> vector<8x384xf32>
    %75 = vector.broadcast %42 : vector<1x384xf32> to vector<8x384xf32>
    %76 = arith.addf %74, %75 : vector<8x384xf32>
    %cst_49 = arith.constant 0.000000e+00 : f32
    %77 = vector.broadcast %cst_49 : f32 to vector<8x128xf32>
    %78 = vector.extract_strided_slice %76 {offsets = [0, 0], sizes = [8, 32], strides = [1, 1]} : vector<8x384xf32> to vector<8x32xf32>
    %79 = vector.extract_strided_slice %76 {offsets = [0, 128], sizes = [8, 32], strides = [1, 1]} : vector<8x384xf32> to vector<8x32xf32>
    %80 = vector.extract_strided_slice %76 {offsets = [0, 256], sizes = [8, 32], strides = [1, 1]} : vector<8x384xf32> to vector<8x32xf32>
    %81 = arith.truncf %78 : vector<8x32xf32> to vector<8x32xbf16>
    %82 = arith.truncf %79 : vector<8x32xf32> to vector<8x32xbf16>
    %cst_50 = arith.constant dense<0.000000e+00> : vector<8x8xf32>
    %83 = tpu.matmul %81, %82, %cst_50 {dimension_numbers = #tpu.dot_dimension_numbers<[1], [1], [0], [0], [0, 0, 1, 0], [], []>} : vector<8x32xbf16>, vector<8x32xbf16>, vector<8x8xf32> -> vector<8x8xf32>
    %cst_51 = arith.constant 0.176776692 : f32
    %84 = vector.broadcast %cst_51 : f32 to vector<8x8xf32>
    %85 = arith.mulf %83, %84 : vector<8x8xf32>
    %86 = arith.addf %85, %38 : vector<8x8xf32>
    %cst_52 = arith.constant dense<0xFF800000> : vector<8xf32>
    %87 = vector.multi_reduction <maximumf>, %86, %cst_52 [1] : vector<8x8xf32> to vector<8xf32>
    %88 = vector.shape_cast %87 : vector<8xf32> to vector<8x1xf32>
    %89 = vector.broadcast %88 : vector<8x1xf32> to vector<8x8xf32>
    %90 = arith.subf %86, %89 : vector<8x8xf32>
    %91 = math.exp %90 : vector<8x8xf32>
    %cst_53 = arith.constant dense<0.000000e+00> : vector<8xf32>
    %92 = vector.multi_reduction <add>, %91, %cst_53 [1] : vector<8x8xf32> to vector<8xf32>
    %93 = vector.shape_cast %92 : vector<8xf32> to vector<8x1xf32>
    %94 = tpu.reciprocal %93 {approx = true} : vector<8x1xf32> -> vector<8x1xf32>
    %95 = vector.broadcast %94 : vector<8x1xf32> to vector<8x8xf32>
    %96 = arith.mulf %91, %95 : vector<8x8xf32>
    %97 = arith.truncf %96 : vector<8x8xf32> to vector<8x8xbf16>
    %98 = arith.truncf %80 : vector<8x32xf32> to vector<8x32xbf16>
    %cst_54 = arith.constant dense<0.000000e+00> : vector<8x32xf32>
    %99 = tpu.matmul %97, %98, %cst_54 {dimension_numbers = #tpu.dot_dimension_numbers<[1], [0], [0], [1], [0, 0, 1, 1], [], []>} : vector<8x8xbf16>, vector<8x32xbf16>, vector<8x32xf32> -> vector<8x32xf32>
    %100 = vector.extract_strided_slice %43 {offsets = [0, 0], sizes = [32, 128], strides = [1, 1]} : vector<128x128xbf16> to vector<32x128xbf16>
    %101 = arith.truncf %99 : vector<8x32xf32> to vector<8x32xbf16>
    %cst_55 = arith.constant dense<0.000000e+00> : vector<8x128xf32>
    %102 = tpu.matmul %101, %100, %cst_55 {dimension_numbers = #tpu.dot_dimension_numbers<[1], [0], [0], [1], [0, 0, 1, 1], [], []>} : vector<8x32xbf16>, vector<32x128xbf16>, vector<8x128xf32> -> vector<8x128xf32>
    %103 = arith.addf %77, %102 : vector<8x128xf32>
    %104 = vector.extract_strided_slice %76 {offsets = [0, 32], sizes = [8, 32], strides = [1, 1]} : vector<8x384xf32> to vector<8x32xf32>
    %105 = vector.extract_strided_slice %76 {offsets = [0, 160], sizes = [8, 32], strides = [1, 1]} : vector<8x384xf32> to vector<8x32xf32>
    %106 = vector.extract_strided_slice %76 {offsets = [0, 288], sizes = [8, 32], strides = [1, 1]} : vector<8x384xf32> to vector<8x32xf32>
    %107 = arith.truncf %104 : vector<8x32xf32> to vector<8x32xbf16>
    %108 = arith.truncf %105 : vector<8x32xf32> to vector<8x32xbf16>
    %cst_56 = arith.constant dense<0.000000e+00> : vector<8x8xf32>
    %109 = tpu.matmul %107, %108, %cst_56 {dimension_numbers = #tpu.dot_dimension_numbers<[1], [1], [0], [0], [0, 0, 1, 0], [], []>} : vector<8x32xbf16>, vector<8x32xbf16>, vector<8x8xf32> -> vector<8x8xf32>
    %cst_57 = arith.constant 0.176776692 : f32
    %110 = vector.broadcast %cst_57 : f32 to vector<8x8xf32>
    %111 = arith.mulf %109, %110 : vector<8x8xf32>
    %112 = arith.addf %111, %38 : vector<8x8xf32>
    %cst_58 = arith.constant dense<0xFF800000> : vector<8xf32>
    %113 = vector.multi_reduction <maximumf>, %112, %cst_58 [1] : vector<8x8xf32> to vector<8xf32>
    %114 = vector.shape_cast %113 : vector<8xf32> to vector<8x1xf32>
    %115 = vector.broadcast %114 : vector<8x1xf32> to vector<8x8xf32>
    %116 = arith.subf %112, %115 : vector<8x8xf32>
    %117 = math.exp %116 : vector<8x8xf32>
    %cst_59 = arith.constant dense<0.000000e+00> : vector<8xf32>
    %118 = vector.multi_reduction <add>, %117, %cst_59 [1] : vector<8x8xf32> to vector<8xf32>
    %119 = vector.shape_cast %118 : vector<8xf32> to vector<8x1xf32>
    %120 = tpu.reciprocal %119 {approx = true} : vector<8x1xf32> -> vector<8x1xf32>
    %121 = vector.broadcast %120 : vector<8x1xf32> to vector<8x8xf32>
    %122 = arith.mulf %117, %121 : vector<8x8xf32>
    %123 = arith.truncf %122 : vector<8x8xf32> to vector<8x8xbf16>
    %124 = arith.truncf %106 : vector<8x32xf32> to vector<8x32xbf16>
    %cst_60 = arith.constant dense<0.000000e+00> : vector<8x32xf32>
    %125 = tpu.matmul %123, %124, %cst_60 {dimension_numbers = #tpu.dot_dimension_numbers<[1], [0], [0], [1], [0, 0, 1, 1], [], []>} : vector<8x8xbf16>, vector<8x32xbf16>, vector<8x32xf32> -> vector<8x32xf32>
    %126 = vector.extract_strided_slice %43 {offsets = [32, 0], sizes = [32, 128], strides = [1, 1]} : vector<128x128xbf16> to vector<32x128xbf16>
    %127 = arith.truncf %125 : vector<8x32xf32> to vector<8x32xbf16>
    %cst_61 = arith.constant dense<0.000000e+00> : vector<8x128xf32>
    %128 = tpu.matmul %127, %126, %cst_61 {dimension_numbers = #tpu.dot_dimension_numbers<[1], [0], [0], [1], [0, 0, 1, 1], [], []>} : vector<8x32xbf16>, vector<32x128xbf16>, vector<8x128xf32> -> vector<8x128xf32>
    %129 = arith.addf %103, %128 : vector<8x128xf32>
    %130 = vector.extract_strided_slice %76 {offsets = [0, 64], sizes = [8, 32], strides = [1, 1]} : vector<8x384xf32> to vector<8x32xf32>
    %131 = vector.extract_strided_slice %76 {offsets = [0, 192], sizes = [8, 32], strides = [1, 1]} : vector<8x384xf32> to vector<8x32xf32>
    %132 = vector.extract_strided_slice %76 {offsets = [0, 320], sizes = [8, 32], strides = [1, 1]} : vector<8x384xf32> to vector<8x32xf32>
    %133 = arith.truncf %130 : vector<8x32xf32> to vector<8x32xbf16>
    %134 = arith.truncf %131 : vector<8x32xf32> to vector<8x32xbf16>
    %cst_62 = arith.constant dense<0.000000e+00> : vector<8x8xf32>
    %135 = tpu.matmul %133, %134, %cst_62 {dimension_numbers = #tpu.dot_dimension_numbers<[1], [1], [0], [0], [0, 0, 1, 0], [], []>} : vector<8x32xbf16>, vector<8x32xbf16>, vector<8x8xf32> -> vector<8x8xf32>
    %cst_63 = arith.constant 0.176776692 : f32
    %136 = vector.broadcast %cst_63 : f32 to vector<8x8xf32>
    %137 = arith.mulf %135, %136 : vector<8x8xf32>
    %138 = arith.addf %137, %38 : vector<8x8xf32>
    %cst_64 = arith.constant dense<0xFF800000> : vector<8xf32>
    %139 = vector.multi_reduction <maximumf>, %138, %cst_64 [1] : vector<8x8xf32> to vector<8xf32>
    %140 = vector.shape_cast %139 : vector<8xf32> to vector<8x1xf32>
    %141 = vector.broadcast %140 : vector<8x1xf32> to vector<8x8xf32>
    %142 = arith.subf %138, %141 : vector<8x8xf32>
    %143 = math.exp %142 : vector<8x8xf32>
    %cst_65 = arith.constant dense<0.000000e+00> : vector<8xf32>
    %144 = vector.multi_reduction <add>, %143, %cst_65 [1] : vector<8x8xf32> to vector<8xf32>
    %145 = vector.shape_cast %144 : vector<8xf32> to vector<8x1xf32>
    %146 = tpu.reciprocal %145 {approx = true} : vector<8x1xf32> -> vector<8x1xf32>
    %147 = vector.broadcast %146 : vector<8x1xf32> to vector<8x8xf32>
    %148 = arith.mulf %143, %147 : vector<8x8xf32>
    %149 = arith.truncf %148 : vector<8x8xf32> to vector<8x8xbf16>
    %150 = arith.truncf %132 : vector<8x32xf32> to vector<8x32xbf16>
    %cst_66 = arith.constant dense<0.000000e+00> : vector<8x32xf32>
    %151 = tpu.matmul %149, %150, %cst_66 {dimension_numbers = #tpu.dot_dimension_numbers<[1], [0], [0], [1], [0, 0, 1, 1], [], []>} : vector<8x8xbf16>, vector<8x32xbf16>, vector<8x32xf32> -> vector<8x32xf32>
    %152 = vector.extract_strided_slice %43 {offsets = [64, 0], sizes = [32, 128], strides = [1, 1]} : vector<128x128xbf16> to vector<32x128xbf16>
    %153 = arith.truncf %151 : vector<8x32xf32> to vector<8x32xbf16>
    %cst_67 = arith.constant dense<0.000000e+00> : vector<8x128xf32>
    %154 = tpu.matmul %153, %152, %cst_67 {dimension_numbers = #tpu.dot_dimension_numbers<[1], [0], [0], [1], [0, 0, 1, 1], [], []>} : vector<8x32xbf16>, vector<32x128xbf16>, vector<8x128xf32> -> vector<8x128xf32>
    %155 = arith.addf %129, %154 : vector<8x128xf32>
    %156 = vector.extract_strided_slice %76 {offsets = [0, 96], sizes = [8, 32], strides = [1, 1]} : vector<8x384xf32> to vector<8x32xf32>
    %157 = vector.extract_strided_slice %76 {offsets = [0, 224], sizes = [8, 32], strides = [1, 1]} : vector<8x384xf32> to vector<8x32xf32>
    %158 = vector.extract_strided_slice %76 {offsets = [0, 352], sizes = [8, 32], strides = [1, 1]} : vector<8x384xf32> to vector<8x32xf32>
    %159 = arith.truncf %156 : vector<8x32xf32> to vector<8x32xbf16>
    %160 = arith.truncf %157 : vector<8x32xf32> to vector<8x32xbf16>
    %cst_68 = arith.constant dense<0.000000e+00> : vector<8x8xf32>
    %161 = tpu.matmul %159, %160, %cst_68 {dimension_numbers = #tpu.dot_dimension_numbers<[1], [1], [0], [0], [0, 0, 1, 0], [], []>} : vector<8x32xbf16>, vector<8x32xbf16>, vector<8x8xf32> -> vector<8x8xf32>
    %cst_69 = arith.constant 0.176776692 : f32
    %162 = vector.broadcast %cst_69 : f32 to vector<8x8xf32>
    %163 = arith.mulf %161, %162 : vector<8x8xf32>
    %164 = arith.addf %163, %38 : vector<8x8xf32>
    %cst_70 = arith.constant dense<0xFF800000> : vector<8xf32>
    %165 = vector.multi_reduction <maximumf>, %164, %cst_70 [1] : vector<8x8xf32> to vector<8xf32>
    %166 = vector.shape_cast %165 : vector<8xf32> to vector<8x1xf32>
    %167 = vector.broadcast %166 : vector<8x1xf32> to vector<8x8xf32>
    %168 = arith.subf %164, %167 : vector<8x8xf32>
    %169 = math.exp %168 : vector<8x8xf32>
    %cst_71 = arith.constant dense<0.000000e+00> : vector<8xf32>
    %170 = vector.multi_reduction <add>, %169, %cst_71 [1] : vector<8x8xf32> to vector<8xf32>
    %171 = vector.shape_cast %170 : vector<8xf32> to vector<8x1xf32>
    %172 = tpu.reciprocal %171 {approx = true} : vector<8x1xf32> -> vector<8x1xf32>
    %173 = vector.broadcast %172 : vector<8x1xf32> to vector<8x8xf32>
    %174 = arith.mulf %169, %173 : vector<8x8xf32>
    %175 = arith.truncf %174 : vector<8x8xf32> to vector<8x8xbf16>
    %176 = arith.truncf %158 : vector<8x32xf32> to vector<8x32xbf16>
    %cst_72 = arith.constant dense<0.000000e+00> : vector<8x32xf32>
    %177 = tpu.matmul %175, %176, %cst_72 {dimension_numbers = #tpu.dot_dimension_numbers<[1], [0], [0], [1], [0, 0, 1, 1], [], []>} : vector<8x8xbf16>, vector<8x32xbf16>, vector<8x32xf32> -> vector<8x32xf32>
    %178 = vector.extract_strided_slice %43 {offsets = [96, 0], sizes = [32, 128], strides = [1, 1]} : vector<128x128xbf16> to vector<32x128xbf16>
    %179 = arith.truncf %177 : vector<8x32xf32> to vector<8x32xbf16>
    %cst_73 = arith.constant dense<0.000000e+00> : vector<8x128xf32>
    %180 = tpu.matmul %179, %178, %cst_73 {dimension_numbers = #tpu.dot_dimension_numbers<[1], [0], [0], [1], [0, 0, 1, 1], [], []>} : vector<8x32xbf16>, vector<32x128xbf16>, vector<8x128xf32> -> vector<8x128xf32>
    %181 = arith.addf %155, %180 : vector<8x128xf32>
    %182 = arith.addf %32, %181 : vector<8x128xf32>
    %183 = vector.broadcast %44 : vector<1x128xf32> to vector<8x128xf32>
    %184 = arith.addf %182, %183 : vector<8x128xf32>
    %cst_74 = arith.constant dense<0.000000e+00> : vector<8xf32>
    %185 = vector.multi_reduction <add>, %184, %cst_74 [1] : vector<8x128xf32> to vector<8xf32>
    %186 = vector.shape_cast %185 : vector<8xf32> to vector<8x1xf32>
    %cst_75 = arith.constant 1.280000e+02 : f32
    %187 = vector.broadcast %cst_75 : f32 to vector<8x1xf32>
    %188 = arith.divf %186, %187 : vector<8x1xf32>
    %189 = vector.broadcast %188 : vector<8x1xf32> to vector<8x128xf32>
    %190 = arith.subf %184, %189 : vector<8x128xf32>
    %191 = arith.mulf %190, %190 : vector<8x128xf32>
    %cst_76 = arith.constant dense<0.000000e+00> : vector<8xf32>
    %192 = vector.multi_reduction <add>, %191, %cst_76 [1] : vector<8x128xf32> to vector<8xf32>
    %193 = vector.shape_cast %192 : vector<8xf32> to vector<8x1xf32>
    %cst_77 = arith.constant 1.280000e+02 : f32
    %194 = vector.broadcast %cst_77 : f32 to vector<8x1xf32>
    %195 = arith.divf %193, %194 : vector<8x1xf32>
    %196 = vector.broadcast %188 : vector<8x1xf32> to vector<8x128xf32>
    %197 = arith.subf %184, %196 : vector<8x128xf32>
    %cst_78 = arith.constant 9.99999974E-6 : f32
    %198 = vector.broadcast %cst_78 : f32 to vector<8x1xf32>
    %199 = arith.addf %195, %198 : vector<8x1xf32>
    %200 = math.rsqrt %199 : vector<8x1xf32>
    %201 = vector.broadcast %200 : vector<8x1xf32> to vector<8x128xf32>
    %202 = arith.mulf %197, %201 : vector<8x128xf32>
    %203 = vector.broadcast %45 : vector<1x128xf32> to vector<8x128xf32>
    %204 = arith.mulf %202, %203 : vector<8x128xf32>
    %205 = vector.broadcast %46 : vector<1x128xf32> to vector<8x128xf32>
    %206 = arith.addf %204, %205 : vector<8x128xf32>
    %207 = arith.truncf %206 : vector<8x128xf32> to vector<8x128xbf16>
    %cst_79 = arith.constant dense<0.000000e+00> : vector<8x256xf32>
    %208 = tpu.matmul %207, %47, %cst_79 {dimension_numbers = #tpu.dot_dimension_numbers<[1], [0], [0], [1], [0, 0, 1, 1], [], []>} : vector<8x128xbf16>, vector<128x256xbf16>, vector<8x256xf32> -> vector<8x256xf32>
    %209 = vector.broadcast %48 : vector<1x256xf32> to vector<8x256xf32>
    %210 = arith.addf %208, %209 : vector<8x256xf32>
    %cst_80 = arith.constant 1.702000e+00 : f32
    %211 = vector.broadcast %cst_80 : f32 to vector<8x256xf32>
    %212 = arith.mulf %211, %210 : vector<8x256xf32>
    %213 = arith.negf %212 : vector<8x256xf32>
    %214 = math.exp %213 : vector<8x256xf32>
    %cst_81 = arith.constant 1.000000e+00 : f32
    %215 = vector.broadcast %cst_81 : f32 to vector<8x256xf32>
    %216 = arith.addf %215, %214 : vector<8x256xf32>
    %217 = arith.divf %215, %216 : vector<8x256xf32>
    %218 = arith.mulf %210, %217 : vector<8x256xf32>
    %219 = arith.truncf %218 : vector<8x256xf32> to vector<8x256xbf16>
    %cst_82 = arith.constant dense<0.000000e+00> : vector<8x128xf32>
    %220 = tpu.matmul %219, %49, %cst_82 {dimension_numbers = #tpu.dot_dimension_numbers<[1], [0], [0], [1], [0, 0, 1, 1], [], []>} : vector<8x256xbf16>, vector<256x128xbf16>, vector<8x128xf32> -> vector<8x128xf32>
    %221 = vector.broadcast %50 : vector<1x128xf32> to vector<8x128xf32>
    %222 = arith.addf %220, %221 : vector<8x128xf32>
    %223 = arith.addf %184, %222 : vector<8x128xf32>
    %224 = vector.extract_strided_slice %223 {offsets = [0, 0], sizes = [1, 128], strides = [1, 1]} : vector<8x128xf32> to vector<1x128xf32>
    %c0_83 = arith.constant 0 : index
    %c0_84 = arith.constant 0 : index
    %225 = vector.load %arg19[%c0_83, %c0_84] : memref<1x128xf32, #tpu.memory_space<vmem>>, vector<1x128xf32>
    %c0_85 = arith.constant 0 : index
    %c0_86 = arith.constant 0 : index
    %226 = vector.load %arg20[%c0_85, %c0_86] : memref<1x128xf32, #tpu.memory_space<vmem>>, vector<1x128xf32>
    %cst_87 = arith.constant dense<0.000000e+00> : vector<1xf32>
    %227 = vector.multi_reduction <add>, %224, %cst_87 [1] : vector<1x128xf32> to vector<1xf32>
    %228 = vector.shape_cast %227 : vector<1xf32> to vector<1x1xf32>
    %cst_88 = arith.constant 1.280000e+02 : f32
    %229 = vector.broadcast %cst_88 : f32 to vector<1x1xf32>
    %230 = arith.divf %228, %229 : vector<1x1xf32>
    %231 = vector.broadcast %230 : vector<1x1xf32> to vector<1x128xf32>
    %232 = arith.subf %224, %231 : vector<1x128xf32>
    %233 = arith.mulf %232, %232 : vector<1x128xf32>
    %cst_89 = arith.constant dense<0.000000e+00> : vector<1xf32>
    %234 = vector.multi_reduction <add>, %233, %cst_89 [1] : vector<1x128xf32> to vector<1xf32>
    %235 = vector.shape_cast %234 : vector<1xf32> to vector<1x1xf32>
    %cst_90 = arith.constant 1.280000e+02 : f32
    %236 = vector.broadcast %cst_90 : f32 to vector<1x1xf32>
    %237 = arith.divf %235, %236 : vector<1x1xf32>
    %238 = vector.broadcast %230 : vector<1x1xf32> to vector<1x128xf32>
    %239 = arith.subf %224, %238 : vector<1x128xf32>
    %cst_91 = arith.constant 9.99999974E-6 : f32
    %240 = vector.broadcast %cst_91 : f32 to vector<1x1xf32>
    %241 = arith.addf %237, %240 : vector<1x1xf32>
    %242 = math.rsqrt %241 : vector<1x1xf32>
    %243 = vector.broadcast %242 : vector<1x1xf32> to vector<1x128xf32>
    %244 = arith.mulf %239, %243 : vector<1x128xf32>
    %245 = arith.mulf %244, %225 : vector<1x128xf32>
    %246 = arith.addf %245, %226 : vector<1x128xf32>
    %c0_92 = arith.constant 0 : index
    %c0_93 = arith.constant 0 : index
    %247 = vector.load %arg21[%c0_92, %c0_93] : memref<128x128xbf16, #tpu.memory_space<vmem>>, vector<128x128xbf16>
    %248 = arith.truncf %246 : vector<1x128xf32> to vector<1x128xbf16>
    %cst_94 = arith.constant dense<0.000000e+00> : vector<1x128xf32>
    %249 = tpu.matmul %248, %247, %cst_94 {dimension_numbers = #tpu.dot_dimension_numbers<[1], [0], [0], [1], [0, 0, 1, 1], [], []>} : vector<1x128xbf16>, vector<128x128xbf16>, vector<1x128xf32> -> vector<1x128xf32>
    %c0_95 = arith.constant 0 : index
    %c0_96 = arith.constant 0 : index
    %c0_97 = arith.constant 0 : index
    %250 = vector.load %arg22[%c0_95, %c0_96, %c0_97] : memref<1x1x128xf32, #tpu.memory_space<vmem>>, vector<1x1x128xf32>
    %251 = vector.shape_cast %250 : vector<1x1x128xf32> to vector<1x128xf32>
    %252 = vector.shape_cast %249 : vector<1x128xf32> to vector<1x1x128xf32>
    tpu.vector_store %arg22[%c0_95, %c0_96, %c0_97], %252 {strides = array<i32>} : memref<1x1x128xf32, #tpu.memory_space<vmem>>, vector<1x1x128xf32>,
    return
  }
  func.func @transform_0(%arg0: i32) -> (i32, i32, i32) {
    %c0_i32 = arith.constant 0 : i32
    %c0_i32_0 = arith.constant 0 : i32
    %c0_i32_1 = arith.constant 0 : i32
    return %arg0, %c0_i32, %c0_i32_0 : i32, i32, i32
  }
  func.func @transform_1(%arg0: i32) -> (i32, i32) {
    %c0_i32 = arith.constant 0 : i32
    %c0_i32_0 = arith.constant 0 : i32
    %c0_i32_1 = arith.constant 0 : i32
    return %c0_i32, %c0_i32_0 : i32, i32
  }
  func.func @transform_2(%arg0: i32) -> (i32, i32) {
    %c0_i32 = arith.constant 0 : i32
    %c0_i32_0 = arith.constant 0 : i32
    %c0_i32_1 = arith.constant 0 : i32
    return %c0_i32, %c0_i32_0 : i32, i32
  }
  func.func @transform_3(%arg0: i32) -> (i32, i32) {
    %c0_i32 = arith.constant 0 : i32
    %c0_i32_0 = arith.constant 0 : i32
    %c0_i32_1 = arith.constant 0 : i32
    return %c0_i32, %c0_i32_0 : i32, i32
  }
  func.func @transform_4(%arg0: i32) -> (i32, i32) {
    %c0_i32 = arith.constant 0 : i32
    %c0_i32_0 = arith.constant 0 : i32
    %c0_i32_1 = arith.constant 0 : i32
    return %c0_i32, %c0_i32_0 : i32, i32
  }
  func.func @transform_5(%arg0: i32) -> (i32, i32) {
    %c0_i32 = arith.constant 0 : i32
    %c0_i32_0 = arith.constant 0 : i32
    %c0_i32_1 = arith.constant 0 : i32
    return %c0_i32, %c0_i32_0 : i32, i32
  }
  func.func @transform_6(%arg0: i32) -> (i32, i32) {
    %c0_i32 = arith.constant 0 : i32
    %c0_i32_0 = arith.constant 0 : i32
    %c0_i32_1 = arith.constant 0 : i32
    return %c0_i32, %c0_i32_0 : i32, i32
  }
  func.func @transform_7(%arg0: i32) -> (i32, i32) {
    %c0_i32 = arith.constant 0 : i32
    %c0_i32_0 = arith.constant 0 : i32
    %c0_i32_1 = arith.constant 0 : i32
    return %c0_i32, %c0_i32_0 : i32, i32
  }
  func.func @transform_8(%arg0: i32) -> (i32, i32) {
    %c0_i32 = arith.constant 0 : i32
    %c0_i32_0 = arith.constant 0 : i32
    %c0_i32_1 = arith.constant 0 : i32
    return %c0_i32, %c0_i32_0 : i32, i32
  }
  func.func @transform_9(%arg0: i32) -> (i32, i32) {
    %c0_i32 = arith.constant 0 : i32
    %c0_i32_0 = arith.constant 0 : i32
    %c0_i32_1 = arith.constant 0 : i32
    return %c0_i32, %c0_i32_0 : i32, i32
  }
  func.func @transform_10(%arg0: i32) -> (i32, i32) {
    %c0_i32 = arith.constant 0 : i32
    %c0_i32_0 = arith.constant 0 : i32
    %c0_i32_1 = arith.constant 0 : i32
    return %c0_i32, %c0_i32_0 : i32, i32
  }
  func.func @transform_11(%arg0: i32) -> (i32, i32) {
    %c0_i32 = arith.constant 0 : i32
    %c0_i32_0 = arith.constant 0 : i32
    %c0_i32_1 = arith.constant 0 : i32
    return %c0_i32, %c0_i32_0 : i32, i32
  }
  func.func @transform_12(%arg0: i32) -> (i32, i32) {
    %c0_i32 = arith.constant 0 : i32
    %c0_i32_0 = arith.constant 0 : i32
    %c0_i32_1 = arith.constant 0 : i32
    return %c0_i32, %c0_i32_0 : i32, i32
  }
  func.func @transform_13(%arg0: i32) -> (i32, i32) {
    %c0_i32 = arith.constant 0 : i32
    %c0_i32_0 = arith.constant 0 : i32
    %c0_i32_1 = arith.constant 0 : i32
    return %c0_i32, %c0_i32_0 : i32, i32
  }
  func.func @transform_14(%arg0: i32) -> (i32, i32) {
    %c0_i32 = arith.constant 0 : i32
    %c0_i32_0 = arith.constant 0 : i32
    %c0_i32_1 = arith.constant 0 : i32
    return %c0_i32, %c0_i32_0 : i32, i32
  }
  func.func @transform_15(%arg0: i32) -> (i32, i32) {
    %c0_i32 = arith.constant 0 : i32
    %c0_i32_0 = arith.constant 0 : i32
    %c0_i32_1 = arith.constant 0 : i32
    return %c0_i32, %c0_i32_0 : i32, i32
  }
  func.func @transform_16(%arg0: i32) -> (i32, i32) {
    %c0_i32 = arith.constant 0 : i32
    %c0_i32_0 = arith.constant 0 : i32
    %c0_i32_1 = arith.constant 0 : i32
    return %c0_i32, %c0_i32_0 : i32, i32
  }
  func.func @transform_17(%arg0: i32) -> (i32, i32) {
    %c0_i32 = arith.constant 0 : i32
    %c0_i32_0 = arith.constant 0 : i32
    %c0_i32_1 = arith.constant 0 : i32
    return %c0_i32, %c0_i32_0 : i32, i32
  }
  func.func @transform_18(%arg0: i32) -> (i32, i32) {
    %c0_i32 = arith.constant 0 : i32
    %c0_i32_0 = arith.constant 0 : i32
    %c0_i32_1 = arith.constant 0 : i32
    return %c0_i32, %c0_i32_0 : i32, i32
  }
  func.func @transform_19(%arg0: i32) -> (i32, i32) {
    %c0_i32 = arith.constant 0 : i32
    %c0_i32_0 = arith.constant 0 : i32
    %c0_i32_1 = arith.constant 0 : i32
    return %c0_i32, %c0_i32_0 : i32, i32
  }
  func.func @transform_20(%arg0: i32) -> (i32, i32) {
    %c0_i32 = arith.constant 0 : i32
    %c0_i32_0 = arith.constant 0 : i32
    %c0_i32_1 = arith.constant 0 : i32
    return %c0_i32, %c0_i32_0 : i32, i32
  }
  func.func @transform_21(%arg0: i32) -> (i32, i32, i32) {
    %c0_i32 = arith.constant 0 : i32
    %c0_i32_0 = arith.constant 0 : i32
    %c0_i32_1 = arith.constant 0 : i32
    return %arg0, %c0_i32, %c0_i32_0 : i32, i32, i32
  }
}

module attributes {stable_mosaic.version = 11 : i64} {
  func.func @_text_tower_kernel(%arg0: i32, %arg1: memref<12xi32, #tpu.memory_space<smem>>, %arg2: memref<1x16x128xf32, #tpu.memory_space<vmem>>, %arg3: memref<16x128xf32, #tpu.memory_space<vmem>>, %arg4: memref<1x128xf32, #tpu.memory_space<vmem>>, %arg5: memref<1x128xf32, #tpu.memory_space<vmem>>, %arg6: memref<128x384xbf16, #tpu.memory_space<vmem>>, %arg7: memref<1x384xf32, #tpu.memory_space<vmem>>, %arg8: memref<128x128xbf16, #tpu.memory_space<vmem>>, %arg9: memref<1x128xf32, #tpu.memory_space<vmem>>, %arg10: memref<1x128xf32, #tpu.memory_space<vmem>>, %arg11: memref<1x128xf32, #tpu.memory_space<vmem>>, %arg12: memref<128x256xbf16, #tpu.memory_space<vmem>>, %arg13: memref<1x256xf32, #tpu.memory_space<vmem>>, %arg14: memref<256x128xbf16, #tpu.memory_space<vmem>>, %arg15: memref<1x128xf32, #tpu.memory_space<vmem>>, %arg16: memref<1x128xf32, #tpu.memory_space<vmem>>, %arg17: memref<1x128xf32, #tpu.memory_space<vmem>>, %arg18: memref<128x128xbf16, #tpu.memory_space<vmem>>, %arg19: memref<1x1x128xf32, #tpu.memory_space<vmem>>) attributes {dimension_semantics = [#tpu.dimension_semantics<parallel>], iteration_bounds = array<i64: 12>, scalar_prefetch = 1 : i64, scratch_operands = 0 : i64, tpu.core_type = #tpu.core_type<tc>, window_params = [{transform_indices = @transform_0, window_bounds = array<i64: 1, 16, 128>}, {pipeline_mode = #tpu.pipeline_mode<synchronous>, transform_indices = @transform_1, window_bounds = array<i64: 16, 128>}, {pipeline_mode = #tpu.pipeline_mode<synchronous>, transform_indices = @transform_2, window_bounds = array<i64: 1, 128>}, {pipeline_mode = #tpu.pipeline_mode<synchronous>, transform_indices = @transform_3, window_bounds = array<i64: 1, 128>}, {pipeline_mode = #tpu.pipeline_mode<synchronous>, transform_indices = @transform_4, window_bounds = array<i64: 128, 384>}, {pipeline_mode = #tpu.pipeline_mode<synchronous>, transform_indices = @transform_5, window_bounds = array<i64: 1, 384>}, {pipeline_mode = #tpu.pipeline_mode<synchronous>, transform_indices = @transform_6, window_bounds = array<i64: 128, 128>}, {pipeline_mode = #tpu.pipeline_mode<synchronous>, transform_indices = @transform_7, window_bounds = array<i64: 1, 128>}, {pipeline_mode = #tpu.pipeline_mode<synchronous>, transform_indices = @transform_8, window_bounds = array<i64: 1, 128>}, {pipeline_mode = #tpu.pipeline_mode<synchronous>, transform_indices = @transform_9, window_bounds = array<i64: 1, 128>}, {pipeline_mode = #tpu.pipeline_mode<synchronous>, transform_indices = @transform_10, window_bounds = array<i64: 128, 256>}, {pipeline_mode = #tpu.pipeline_mode<synchronous>, transform_indices = @transform_11, window_bounds = array<i64: 1, 256>}, {pipeline_mode = #tpu.pipeline_mode<synchronous>, transform_indices = @transform_12, window_bounds = array<i64: 256, 128>}, {pipeline_mode = #tpu.pipeline_mode<synchronous>, transform_indices = @transform_13, window_bounds = array<i64: 1, 128>}, {pipeline_mode = #tpu.pipeline_mode<synchronous>, transform_indices = @transform_14, window_bounds = array<i64: 1, 128>}, {pipeline_mode = #tpu.pipeline_mode<synchronous>, transform_indices = @transform_15, window_bounds = array<i64: 1, 128>}, {pipeline_mode = #tpu.pipeline_mode<synchronous>, transform_indices = @transform_16, window_bounds = array<i64: 128, 128>}, {transform_indices = @transform_17, window_bounds = array<i64: 1, 1, 128>}]} {
    %c0 = arith.constant 0 : index
    %c0_0 = arith.constant 0 : index
    %c0_1 = arith.constant 0 : index
    %0 = vector.load %arg2[%c0, %c0_0, %c0_1] : memref<1x16x128xf32, #tpu.memory_space<vmem>>, vector<1x16x128xf32>
    %1 = vector.shape_cast %0 : vector<1x16x128xf32> to vector<16x128xf32>
    %c0_2 = arith.constant 0 : index
    %c0_3 = arith.constant 0 : index
    %2 = vector.load %arg3[%c0_2, %c0_3] : memref<16x128xf32, #tpu.memory_space<vmem>>, vector<16x128xf32>
    %3 = arith.addf %1, %2 : vector<16x128xf32>
    %4 = tpu.iota {dimensions = array<i32: 0>} : vector<16x16xi32>
    %5 = tpu.iota {dimensions = array<i32: 1>} : vector<16x16xi32>
    %6 = arith.cmpi sle, %5, %4 : vector<16x16xi32>
    %cst = arith.constant 0.000000e+00 : f32
    %cst_4 = arith.constant -1.000000e+09 : f32
    %7 = vector.broadcast %cst : f32 to vector<16x16xf32>
    %8 = vector.broadcast %cst_4 : f32 to vector<16x16xf32>
    %9 = arith.select %6, %7, %8 : vector<16x16xi1>, vector<16x16xf32>
    %c0_5 = arith.constant 0 : index
    %c0_6 = arith.constant 0 : index
    %10 = vector.load %arg4[%c0_5, %c0_6] : memref<1x128xf32, #tpu.memory_space<vmem>>, vector<1x128xf32>
    %c0_7 = arith.constant 0 : index
    %c0_8 = arith.constant 0 : index
    %11 = vector.load %arg5[%c0_7, %c0_8] : memref<1x128xf32, #tpu.memory_space<vmem>>, vector<1x128xf32>
    %c0_9 = arith.constant 0 : index
    %c0_10 = arith.constant 0 : index
    %12 = vector.load %arg6[%c0_9, %c0_10] : memref<128x384xbf16, #tpu.memory_space<vmem>>, vector<128x384xbf16>
    %c0_11 = arith.constant 0 : index
    %c0_12 = arith.constant 0 : index
    %13 = vector.load %arg7[%c0_11, %c0_12] : memref<1x384xf32, #tpu.memory_space<vmem>>, vector<1x384xf32>
    %c0_13 = arith.constant 0 : index
    %c0_14 = arith.constant 0 : index
    %14 = vector.load %arg8[%c0_13, %c0_14] : memref<128x128xbf16, #tpu.memory_space<vmem>>, vector<128x128xbf16>
    %c0_15 = arith.constant 0 : index
    %c0_16 = arith.constant 0 : index
    %15 = vector.load %arg9[%c0_15, %c0_16] : memref<1x128xf32, #tpu.memory_space<vmem>>, vector<1x128xf32>
    %c0_17 = arith.constant 0 : index
    %c0_18 = arith.constant 0 : index
    %16 = vector.load %arg10[%c0_17, %c0_18] : memref<1x128xf32, #tpu.memory_space<vmem>>, vector<1x128xf32>
    %c0_19 = arith.constant 0 : index
    %c0_20 = arith.constant 0 : index
    %17 = vector.load %arg11[%c0_19, %c0_20] : memref<1x128xf32, #tpu.memory_space<vmem>>, vector<1x128xf32>
    %c0_21 = arith.constant 0 : index
    %c0_22 = arith.constant 0 : index
    %18 = vector.load %arg12[%c0_21, %c0_22] : memref<128x256xbf16, #tpu.memory_space<vmem>>, vector<128x256xbf16>
    %c0_23 = arith.constant 0 : index
    %c0_24 = arith.constant 0 : index
    %19 = vector.load %arg13[%c0_23, %c0_24] : memref<1x256xf32, #tpu.memory_space<vmem>>, vector<1x256xf32>
    %c0_25 = arith.constant 0 : index
    %c0_26 = arith.constant 0 : index
    %20 = vector.load %arg14[%c0_25, %c0_26] : memref<256x128xbf16, #tpu.memory_space<vmem>>, vector<256x128xbf16>
    %c0_27 = arith.constant 0 : index
    %c0_28 = arith.constant 0 : index
    %21 = vector.load %arg15[%c0_27, %c0_28] : memref<1x128xf32, #tpu.memory_space<vmem>>, vector<1x128xf32>
    %cst_29 = arith.constant dense<0.000000e+00> : vector<16xf32>
    %22 = vector.multi_reduction <add>, %3, %cst_29 [1] : vector<16x128xf32> to vector<16xf32>
    %23 = vector.shape_cast %22 : vector<16xf32> to vector<16x1xf32>
    %cst_30 = arith.constant 1.280000e+02 : f32
    %24 = vector.broadcast %cst_30 : f32 to vector<16x1xf32>
    %25 = arith.divf %23, %24 : vector<16x1xf32>
    %26 = vector.broadcast %25 : vector<16x1xf32> to vector<16x128xf32>
    %27 = arith.subf %3, %26 : vector<16x128xf32>
    %28 = arith.mulf %27, %27 : vector<16x128xf32>
    %cst_31 = arith.constant dense<0.000000e+00> : vector<16xf32>
    %29 = vector.multi_reduction <add>, %28, %cst_31 [1] : vector<16x128xf32> to vector<16xf32>
    %30 = vector.shape_cast %29 : vector<16xf32> to vector<16x1xf32>
    %cst_32 = arith.constant 1.280000e+02 : f32
    %31 = vector.broadcast %cst_32 : f32 to vector<16x1xf32>
    %32 = arith.divf %30, %31 : vector<16x1xf32>
    %33 = vector.broadcast %25 : vector<16x1xf32> to vector<16x128xf32>
    %34 = arith.subf %3, %33 : vector<16x128xf32>
    %cst_33 = arith.constant 9.99999974E-6 : f32
    %35 = vector.broadcast %cst_33 : f32 to vector<16x1xf32>
    %36 = arith.addf %32, %35 : vector<16x1xf32>
    %37 = math.rsqrt %36 : vector<16x1xf32>
    %38 = vector.broadcast %37 : vector<16x1xf32> to vector<16x128xf32>
    %39 = arith.mulf %34, %38 : vector<16x128xf32>
    %40 = vector.broadcast %10 : vector<1x128xf32> to vector<16x128xf32>
    %41 = arith.mulf %39, %40 : vector<16x128xf32>
    %42 = vector.broadcast %11 : vector<1x128xf32> to vector<16x128xf32>
    %43 = arith.addf %41, %42 : vector<16x128xf32>
    %44 = arith.truncf %43 : vector<16x128xf32> to vector<16x128xbf16>
    %cst_34 = arith.constant dense<0.000000e+00> : vector<16x384xf32>
    %45 = tpu.matmul %44, %12, %cst_34 {dimension_numbers = #tpu.dot_dimension_numbers<[1], [0], [0], [1], [0, 0, 1, 1], [], []>} : vector<16x128xbf16>, vector<128x384xbf16>, vector<16x384xf32> -> vector<16x384xf32>
    %46 = vector.broadcast %13 : vector<1x384xf32> to vector<16x384xf32>
    %47 = arith.addf %45, %46 : vector<16x384xf32>
    %cst_35 = arith.constant 0.000000e+00 : f32
    %48 = vector.broadcast %cst_35 : f32 to vector<16x128xf32>
    %49 = vector.extract_strided_slice %47 {offsets = [0, 0], sizes = [16, 32], strides = [1, 1]} : vector<16x384xf32> to vector<16x32xf32>
    %50 = vector.extract_strided_slice %47 {offsets = [0, 128], sizes = [16, 32], strides = [1, 1]} : vector<16x384xf32> to vector<16x32xf32>
    %51 = vector.extract_strided_slice %47 {offsets = [0, 256], sizes = [16, 32], strides = [1, 1]} : vector<16x384xf32> to vector<16x32xf32>
    %52 = arith.truncf %49 : vector<16x32xf32> to vector<16x32xbf16>
    %53 = arith.truncf %50 : vector<16x32xf32> to vector<16x32xbf16>
    %cst_36 = arith.constant dense<0.000000e+00> : vector<16x16xf32>
    %54 = tpu.matmul %52, %53, %cst_36 {dimension_numbers = #tpu.dot_dimension_numbers<[1], [1], [0], [0], [0, 0, 1, 0], [], []>} : vector<16x32xbf16>, vector<16x32xbf16>, vector<16x16xf32> -> vector<16x16xf32>
    %cst_37 = arith.constant 0.176776692 : f32
    %55 = vector.broadcast %cst_37 : f32 to vector<16x16xf32>
    %56 = arith.mulf %54, %55 : vector<16x16xf32>
    %57 = arith.addf %56, %9 : vector<16x16xf32>
    %cst_38 = arith.constant dense<0xFF800000> : vector<16xf32>
    %58 = vector.multi_reduction <maximumf>, %57, %cst_38 [1] : vector<16x16xf32> to vector<16xf32>
    %59 = vector.shape_cast %58 : vector<16xf32> to vector<16x1xf32>
    %60 = vector.broadcast %59 : vector<16x1xf32> to vector<16x16xf32>
    %61 = arith.subf %57, %60 : vector<16x16xf32>
    %62 = math.exp %61 : vector<16x16xf32>
    %cst_39 = arith.constant dense<0.000000e+00> : vector<16xf32>
    %63 = vector.multi_reduction <add>, %62, %cst_39 [1] : vector<16x16xf32> to vector<16xf32>
    %64 = vector.shape_cast %63 : vector<16xf32> to vector<16x1xf32>
    %65 = tpu.reciprocal %64 {approx = true} : vector<16x1xf32> -> vector<16x1xf32>
    %66 = vector.broadcast %65 : vector<16x1xf32> to vector<16x16xf32>
    %67 = arith.mulf %62, %66 : vector<16x16xf32>
    %68 = arith.truncf %67 : vector<16x16xf32> to vector<16x16xbf16>
    %69 = arith.truncf %51 : vector<16x32xf32> to vector<16x32xbf16>
    %cst_40 = arith.constant dense<0.000000e+00> : vector<16x32xf32>
    %70 = tpu.matmul %68, %69, %cst_40 {dimension_numbers = #tpu.dot_dimension_numbers<[1], [0], [0], [1], [0, 0, 1, 1], [], []>} : vector<16x16xbf16>, vector<16x32xbf16>, vector<16x32xf32> -> vector<16x32xf32>
    %71 = vector.extract_strided_slice %14 {offsets = [0, 0], sizes = [32, 128], strides = [1, 1]} : vector<128x128xbf16> to vector<32x128xbf16>
    %72 = arith.truncf %70 : vector<16x32xf32> to vector<16x32xbf16>
    %cst_41 = arith.constant dense<0.000000e+00> : vector<16x128xf32>
    %73 = tpu.matmul %72, %71, %cst_41 {dimension_numbers = #tpu.dot_dimension_numbers<[1], [0], [0], [1], [0, 0, 1, 1], [], []>} : vector<16x32xbf16>, vector<32x128xbf16>, vector<16x128xf32> -> vector<16x128xf32>
    %74 = arith.addf %48, %73 : vector<16x128xf32>
    %75 = vector.extract_strided_slice %47 {offsets = [0, 32], sizes = [16, 32], strides = [1, 1]} : vector<16x384xf32> to vector<16x32xf32>
    %76 = vector.extract_strided_slice %47 {offsets = [0, 160], sizes = [16, 32], strides = [1, 1]} : vector<16x384xf32> to vector<16x32xf32>
    %77 = vector.extract_strided_slice %47 {offsets = [0, 288], sizes = [16, 32], strides = [1, 1]} : vector<16x384xf32> to vector<16x32xf32>
    %78 = arith.truncf %75 : vector<16x32xf32> to vector<16x32xbf16>
    %79 = arith.truncf %76 : vector<16x32xf32> to vector<16x32xbf16>
    %cst_42 = arith.constant dense<0.000000e+00> : vector<16x16xf32>
    %80 = tpu.matmul %78, %79, %cst_42 {dimension_numbers = #tpu.dot_dimension_numbers<[1], [1], [0], [0], [0, 0, 1, 0], [], []>} : vector<16x32xbf16>, vector<16x32xbf16>, vector<16x16xf32> -> vector<16x16xf32>
    %cst_43 = arith.constant 0.176776692 : f32
    %81 = vector.broadcast %cst_43 : f32 to vector<16x16xf32>
    %82 = arith.mulf %80, %81 : vector<16x16xf32>
    %83 = arith.addf %82, %9 : vector<16x16xf32>
    %cst_44 = arith.constant dense<0xFF800000> : vector<16xf32>
    %84 = vector.multi_reduction <maximumf>, %83, %cst_44 [1] : vector<16x16xf32> to vector<16xf32>
    %85 = vector.shape_cast %84 : vector<16xf32> to vector<16x1xf32>
    %86 = vector.broadcast %85 : vector<16x1xf32> to vector<16x16xf32>
    %87 = arith.subf %83, %86 : vector<16x16xf32>
    %88 = math.exp %87 : vector<16x16xf32>
    %cst_45 = arith.constant dense<0.000000e+00> : vector<16xf32>
    %89 = vector.multi_reduction <add>, %88, %cst_45 [1] : vector<16x16xf32> to vector<16xf32>
    %90 = vector.shape_cast %89 : vector<16xf32> to vector<16x1xf32>
    %91 = tpu.reciprocal %90 {approx = true} : vector<16x1xf32> -> vector<16x1xf32>
    %92 = vector.broadcast %91 : vector<16x1xf32> to vector<16x16xf32>
    %93 = arith.mulf %88, %92 : vector<16x16xf32>
    %94 = arith.truncf %93 : vector<16x16xf32> to vector<16x16xbf16>
    %95 = arith.truncf %77 : vector<16x32xf32> to vector<16x32xbf16>
    %cst_46 = arith.constant dense<0.000000e+00> : vector<16x32xf32>
    %96 = tpu.matmul %94, %95, %cst_46 {dimension_numbers = #tpu.dot_dimension_numbers<[1], [0], [0], [1], [0, 0, 1, 1], [], []>} : vector<16x16xbf16>, vector<16x32xbf16>, vector<16x32xf32> -> vector<16x32xf32>
    %97 = vector.extract_strided_slice %14 {offsets = [32, 0], sizes = [32, 128], strides = [1, 1]} : vector<128x128xbf16> to vector<32x128xbf16>
    %98 = arith.truncf %96 : vector<16x32xf32> to vector<16x32xbf16>
    %cst_47 = arith.constant dense<0.000000e+00> : vector<16x128xf32>
    %99 = tpu.matmul %98, %97, %cst_47 {dimension_numbers = #tpu.dot_dimension_numbers<[1], [0], [0], [1], [0, 0, 1, 1], [], []>} : vector<16x32xbf16>, vector<32x128xbf16>, vector<16x128xf32> -> vector<16x128xf32>
    %100 = arith.addf %74, %99 : vector<16x128xf32>
    %101 = vector.extract_strided_slice %47 {offsets = [0, 64], sizes = [16, 32], strides = [1, 1]} : vector<16x384xf32> to vector<16x32xf32>
    %102 = vector.extract_strided_slice %47 {offsets = [0, 192], sizes = [16, 32], strides = [1, 1]} : vector<16x384xf32> to vector<16x32xf32>
    %103 = vector.extract_strided_slice %47 {offsets = [0, 320], sizes = [16, 32], strides = [1, 1]} : vector<16x384xf32> to vector<16x32xf32>
    %104 = arith.truncf %101 : vector<16x32xf32> to vector<16x32xbf16>
    %105 = arith.truncf %102 : vector<16x32xf32> to vector<16x32xbf16>
    %cst_48 = arith.constant dense<0.000000e+00> : vector<16x16xf32>
    %106 = tpu.matmul %104, %105, %cst_48 {dimension_numbers = #tpu.dot_dimension_numbers<[1], [1], [0], [0], [0, 0, 1, 0], [], []>} : vector<16x32xbf16>, vector<16x32xbf16>, vector<16x16xf32> -> vector<16x16xf32>
    %cst_49 = arith.constant 0.176776692 : f32
    %107 = vector.broadcast %cst_49 : f32 to vector<16x16xf32>
    %108 = arith.mulf %106, %107 : vector<16x16xf32>
    %109 = arith.addf %108, %9 : vector<16x16xf32>
    %cst_50 = arith.constant dense<0xFF800000> : vector<16xf32>
    %110 = vector.multi_reduction <maximumf>, %109, %cst_50 [1] : vector<16x16xf32> to vector<16xf32>
    %111 = vector.shape_cast %110 : vector<16xf32> to vector<16x1xf32>
    %112 = vector.broadcast %111 : vector<16x1xf32> to vector<16x16xf32>
    %113 = arith.subf %109, %112 : vector<16x16xf32>
    %114 = math.exp %113 : vector<16x16xf32>
    %cst_51 = arith.constant dense<0.000000e+00> : vector<16xf32>
    %115 = vector.multi_reduction <add>, %114, %cst_51 [1] : vector<16x16xf32> to vector<16xf32>
    %116 = vector.shape_cast %115 : vector<16xf32> to vector<16x1xf32>
    %117 = tpu.reciprocal %116 {approx = true} : vector<16x1xf32> -> vector<16x1xf32>
    %118 = vector.broadcast %117 : vector<16x1xf32> to vector<16x16xf32>
    %119 = arith.mulf %114, %118 : vector<16x16xf32>
    %120 = arith.truncf %119 : vector<16x16xf32> to vector<16x16xbf16>
    %121 = arith.truncf %103 : vector<16x32xf32> to vector<16x32xbf16>
    %cst_52 = arith.constant dense<0.000000e+00> : vector<16x32xf32>
    %122 = tpu.matmul %120, %121, %cst_52 {dimension_numbers = #tpu.dot_dimension_numbers<[1], [0], [0], [1], [0, 0, 1, 1], [], []>} : vector<16x16xbf16>, vector<16x32xbf16>, vector<16x32xf32> -> vector<16x32xf32>
    %123 = vector.extract_strided_slice %14 {offsets = [64, 0], sizes = [32, 128], strides = [1, 1]} : vector<128x128xbf16> to vector<32x128xbf16>
    %124 = arith.truncf %122 : vector<16x32xf32> to vector<16x32xbf16>
    %cst_53 = arith.constant dense<0.000000e+00> : vector<16x128xf32>
    %125 = tpu.matmul %124, %123, %cst_53 {dimension_numbers = #tpu.dot_dimension_numbers<[1], [0], [0], [1], [0, 0, 1, 1], [], []>} : vector<16x32xbf16>, vector<32x128xbf16>, vector<16x128xf32> -> vector<16x128xf32>
    %126 = arith.addf %100, %125 : vector<16x128xf32>
    %127 = vector.extract_strided_slice %47 {offsets = [0, 96], sizes = [16, 32], strides = [1, 1]} : vector<16x384xf32> to vector<16x32xf32>
    %128 = vector.extract_strided_slice %47 {offsets = [0, 224], sizes = [16, 32], strides = [1, 1]} : vector<16x384xf32> to vector<16x32xf32>
    %129 = vector.extract_strided_slice %47 {offsets = [0, 352], sizes = [16, 32], strides = [1, 1]} : vector<16x384xf32> to vector<16x32xf32>
    %130 = arith.truncf %127 : vector<16x32xf32> to vector<16x32xbf16>
    %131 = arith.truncf %128 : vector<16x32xf32> to vector<16x32xbf16>
    %cst_54 = arith.constant dense<0.000000e+00> : vector<16x16xf32>
    %132 = tpu.matmul %130, %131, %cst_54 {dimension_numbers = #tpu.dot_dimension_numbers<[1], [1], [0], [0], [0, 0, 1, 0], [], []>} : vector<16x32xbf16>, vector<16x32xbf16>, vector<16x16xf32> -> vector<16x16xf32>
    %cst_55 = arith.constant 0.176776692 : f32
    %133 = vector.broadcast %cst_55 : f32 to vector<16x16xf32>
    %134 = arith.mulf %132, %133 : vector<16x16xf32>
    %135 = arith.addf %134, %9 : vector<16x16xf32>
    %cst_56 = arith.constant dense<0xFF800000> : vector<16xf32>
    %136 = vector.multi_reduction <maximumf>, %135, %cst_56 [1] : vector<16x16xf32> to vector<16xf32>
    %137 = vector.shape_cast %136 : vector<16xf32> to vector<16x1xf32>
    %138 = vector.broadcast %137 : vector<16x1xf32> to vector<16x16xf32>
    %139 = arith.subf %135, %138 : vector<16x16xf32>
    %140 = math.exp %139 : vector<16x16xf32>
    %cst_57 = arith.constant dense<0.000000e+00> : vector<16xf32>
    %141 = vector.multi_reduction <add>, %140, %cst_57 [1] : vector<16x16xf32> to vector<16xf32>
    %142 = vector.shape_cast %141 : vector<16xf32> to vector<16x1xf32>
    %143 = tpu.reciprocal %142 {approx = true} : vector<16x1xf32> -> vector<16x1xf32>
    %144 = vector.broadcast %143 : vector<16x1xf32> to vector<16x16xf32>
    %145 = arith.mulf %140, %144 : vector<16x16xf32>
    %146 = arith.truncf %145 : vector<16x16xf32> to vector<16x16xbf16>
    %147 = arith.truncf %129 : vector<16x32xf32> to vector<16x32xbf16>
    %cst_58 = arith.constant dense<0.000000e+00> : vector<16x32xf32>
    %148 = tpu.matmul %146, %147, %cst_58 {dimension_numbers = #tpu.dot_dimension_numbers<[1], [0], [0], [1], [0, 0, 1, 1], [], []>} : vector<16x16xbf16>, vector<16x32xbf16>, vector<16x32xf32> -> vector<16x32xf32>
    %149 = vector.extract_strided_slice %14 {offsets = [96, 0], sizes = [32, 128], strides = [1, 1]} : vector<128x128xbf16> to vector<32x128xbf16>
    %150 = arith.truncf %148 : vector<16x32xf32> to vector<16x32xbf16>
    %cst_59 = arith.constant dense<0.000000e+00> : vector<16x128xf32>
    %151 = tpu.matmul %150, %149, %cst_59 {dimension_numbers = #tpu.dot_dimension_numbers<[1], [0], [0], [1], [0, 0, 1, 1], [], []>} : vector<16x32xbf16>, vector<32x128xbf16>, vector<16x128xf32> -> vector<16x128xf32>
    %152 = arith.addf %126, %151 : vector<16x128xf32>
    %153 = arith.addf %3, %152 : vector<16x128xf32>
    %154 = vector.broadcast %15 : vector<1x128xf32> to vector<16x128xf32>
    %155 = arith.addf %153, %154 : vector<16x128xf32>
    %cst_60 = arith.constant dense<0.000000e+00> : vector<16xf32>
    %156 = vector.multi_reduction <add>, %155, %cst_60 [1] : vector<16x128xf32> to vector<16xf32>
    %157 = vector.shape_cast %156 : vector<16xf32> to vector<16x1xf32>
    %cst_61 = arith.constant 1.280000e+02 : f32
    %158 = vector.broadcast %cst_61 : f32 to vector<16x1xf32>
    %159 = arith.divf %157, %158 : vector<16x1xf32>
    %160 = vector.broadcast %159 : vector<16x1xf32> to vector<16x128xf32>
    %161 = arith.subf %155, %160 : vector<16x128xf32>
    %162 = arith.mulf %161, %161 : vector<16x128xf32>
    %cst_62 = arith.constant dense<0.000000e+00> : vector<16xf32>
    %163 = vector.multi_reduction <add>, %162, %cst_62 [1] : vector<16x128xf32> to vector<16xf32>
    %164 = vector.shape_cast %163 : vector<16xf32> to vector<16x1xf32>
    %cst_63 = arith.constant 1.280000e+02 : f32
    %165 = vector.broadcast %cst_63 : f32 to vector<16x1xf32>
    %166 = arith.divf %164, %165 : vector<16x1xf32>
    %167 = vector.broadcast %159 : vector<16x1xf32> to vector<16x128xf32>
    %168 = arith.subf %155, %167 : vector<16x128xf32>
    %cst_64 = arith.constant 9.99999974E-6 : f32
    %169 = vector.broadcast %cst_64 : f32 to vector<16x1xf32>
    %170 = arith.addf %166, %169 : vector<16x1xf32>
    %171 = math.rsqrt %170 : vector<16x1xf32>
    %172 = vector.broadcast %171 : vector<16x1xf32> to vector<16x128xf32>
    %173 = arith.mulf %168, %172 : vector<16x128xf32>
    %174 = vector.broadcast %16 : vector<1x128xf32> to vector<16x128xf32>
    %175 = arith.mulf %173, %174 : vector<16x128xf32>
    %176 = vector.broadcast %17 : vector<1x128xf32> to vector<16x128xf32>
    %177 = arith.addf %175, %176 : vector<16x128xf32>
    %178 = arith.truncf %177 : vector<16x128xf32> to vector<16x128xbf16>
    %cst_65 = arith.constant dense<0.000000e+00> : vector<16x256xf32>
    %179 = tpu.matmul %178, %18, %cst_65 {dimension_numbers = #tpu.dot_dimension_numbers<[1], [0], [0], [1], [0, 0, 1, 1], [], []>} : vector<16x128xbf16>, vector<128x256xbf16>, vector<16x256xf32> -> vector<16x256xf32>
    %180 = vector.broadcast %19 : vector<1x256xf32> to vector<16x256xf32>
    %181 = arith.addf %179, %180 : vector<16x256xf32>
    %cst_66 = arith.constant 1.702000e+00 : f32
    %182 = vector.broadcast %cst_66 : f32 to vector<16x256xf32>
    %183 = arith.mulf %182, %181 : vector<16x256xf32>
    %184 = arith.negf %183 : vector<16x256xf32>
    %185 = math.exp %184 : vector<16x256xf32>
    %cst_67 = arith.constant 1.000000e+00 : f32
    %186 = vector.broadcast %cst_67 : f32 to vector<16x256xf32>
    %187 = arith.addf %186, %185 : vector<16x256xf32>
    %188 = arith.divf %186, %187 : vector<16x256xf32>
    %189 = arith.mulf %181, %188 : vector<16x256xf32>
    %190 = arith.truncf %189 : vector<16x256xf32> to vector<16x256xbf16>
    %cst_68 = arith.constant dense<0.000000e+00> : vector<16x128xf32>
    %191 = tpu.matmul %190, %20, %cst_68 {dimension_numbers = #tpu.dot_dimension_numbers<[1], [0], [0], [1], [0, 0, 1, 1], [], []>} : vector<16x256xbf16>, vector<256x128xbf16>, vector<16x128xf32> -> vector<16x128xf32>
    %192 = vector.broadcast %21 : vector<1x128xf32> to vector<16x128xf32>
    %193 = arith.addf %191, %192 : vector<16x128xf32>
    %194 = arith.addf %155, %193 : vector<16x128xf32>
    %c0_69 = arith.constant 0 : index
    %c0_70 = arith.constant 0 : index
    %195 = vector.load %arg16[%c0_69, %c0_70] : memref<1x128xf32, #tpu.memory_space<vmem>>, vector<1x128xf32>
    %c0_71 = arith.constant 0 : index
    %c0_72 = arith.constant 0 : index
    %196 = vector.load %arg17[%c0_71, %c0_72] : memref<1x128xf32, #tpu.memory_space<vmem>>, vector<1x128xf32>
    %cst_73 = arith.constant dense<0.000000e+00> : vector<16xf32>
    %197 = vector.multi_reduction <add>, %194, %cst_73 [1] : vector<16x128xf32> to vector<16xf32>
    %198 = vector.shape_cast %197 : vector<16xf32> to vector<16x1xf32>
    %cst_74 = arith.constant 1.280000e+02 : f32
    %199 = vector.broadcast %cst_74 : f32 to vector<16x1xf32>
    %200 = arith.divf %198, %199 : vector<16x1xf32>
    %201 = vector.broadcast %200 : vector<16x1xf32> to vector<16x128xf32>
    %202 = arith.subf %194, %201 : vector<16x128xf32>
    %203 = arith.mulf %202, %202 : vector<16x128xf32>
    %cst_75 = arith.constant dense<0.000000e+00> : vector<16xf32>
    %204 = vector.multi_reduction <add>, %203, %cst_75 [1] : vector<16x128xf32> to vector<16xf32>
    %205 = vector.shape_cast %204 : vector<16xf32> to vector<16x1xf32>
    %cst_76 = arith.constant 1.280000e+02 : f32
    %206 = vector.broadcast %cst_76 : f32 to vector<16x1xf32>
    %207 = arith.divf %205, %206 : vector<16x1xf32>
    %208 = vector.broadcast %200 : vector<16x1xf32> to vector<16x128xf32>
    %209 = arith.subf %194, %208 : vector<16x128xf32>
    %cst_77 = arith.constant 9.99999974E-6 : f32
    %210 = vector.broadcast %cst_77 : f32 to vector<16x1xf32>
    %211 = arith.addf %207, %210 : vector<16x1xf32>
    %212 = math.rsqrt %211 : vector<16x1xf32>
    %213 = vector.broadcast %212 : vector<16x1xf32> to vector<16x128xf32>
    %214 = arith.mulf %209, %213 : vector<16x128xf32>
    %215 = vector.broadcast %195 : vector<1x128xf32> to vector<16x128xf32>
    %216 = arith.mulf %214, %215 : vector<16x128xf32>
    %217 = vector.broadcast %196 : vector<1x128xf32> to vector<16x128xf32>
    %218 = arith.addf %216, %217 : vector<16x128xf32>
    %219 = arith.index_cast %arg0 : i32 to index
    %220 = memref.load %arg1[%219] : memref<12xi32, #tpu.memory_space<smem>>
    %221 = tpu.iota {dimensions = array<i32: 1>} : vector<1x16xi32>
    %222 = vector.broadcast %220 : i32 to vector<1x16xi32>
    %223 = arith.cmpi eq, %221, %222 : vector<1x16xi32>
    %224 = arith.extui %223 : vector<1x16xi1> to vector<1x16xi32>
    %225 = arith.sitofp %224 : vector<1x16xi32> to vector<1x16xf32>
    %cst_78 = arith.constant dense<0.000000e+00> : vector<1x128xf32>
    %226 = tpu.matmul %225, %218, %cst_78 {dimension_numbers = #tpu.dot_dimension_numbers<[1], [0], [0], [1], [0, 0, 1, 1], [], []>} : vector<1x16xf32>, vector<16x128xf32>, vector<1x128xf32> -> vector<1x128xf32>
    %c0_79 = arith.constant 0 : index
    %c0_80 = arith.constant 0 : index
    %227 = vector.load %arg18[%c0_79, %c0_80] : memref<128x128xbf16, #tpu.memory_space<vmem>>, vector<128x128xbf16>
    %228 = arith.truncf %226 : vector<1x128xf32> to vector<1x128xbf16>
    %cst_81 = arith.constant dense<0.000000e+00> : vector<1x128xf32>
    %229 = tpu.matmul %228, %227, %cst_81 {dimension_numbers = #tpu.dot_dimension_numbers<[1], [0], [0], [1], [0, 0, 1, 1], [], []>} : vector<1x128xbf16>, vector<128x128xbf16>, vector<1x128xf32> -> vector<1x128xf32>
    %c0_82 = arith.constant 0 : index
    %c0_83 = arith.constant 0 : index
    %c0_84 = arith.constant 0 : index
    %230 = vector.load %arg19[%c0_82, %c0_83, %c0_84] : memref<1x1x128xf32, #tpu.memory_space<vmem>>, vector<1x1x128xf32>
    %231 = vector.shape_cast %230 : vector<1x1x128xf32> to vector<1x128xf32>
    %232 = vector.shape_cast %229 : vector<1x128xf32> to vector<1x1x128xf32>
    tpu.vector_store %arg19[%c0_82, %c0_83, %c0_84], %232 {strides = array<i32>} : memref<1x1x128xf32, #tpu.memory_space<vmem>>, vector<1x1x128xf32>,
    return
  }
  func.func @transform_0(%arg0: i32, %arg1: memref<12xi32, #tpu.memory_space<smem>>) -> (i32, i32, i32) {
    %c0_i32 = arith.constant 0 : i32
    %c0_i32_0 = arith.constant 0 : i32
    %c0_i32_1 = arith.constant 0 : i32
    return %arg0, %c0_i32, %c0_i32_0 : i32, i32, i32
  }
  func.func @transform_1(%arg0: i32, %arg1: memref<12xi32, #tpu.memory_space<smem>>) -> (i32, i32) {
    %c0_i32 = arith.constant 0 : i32
    %c0_i32_0 = arith.constant 0 : i32
    %c0_i32_1 = arith.constant 0 : i32
    return %c0_i32, %c0_i32_0 : i32, i32
  }
  func.func @transform_2(%arg0: i32, %arg1: memref<12xi32, #tpu.memory_space<smem>>) -> (i32, i32) {
    %c0_i32 = arith.constant 0 : i32
    %c0_i32_0 = arith.constant 0 : i32
    %c0_i32_1 = arith.constant 0 : i32
    return %c0_i32, %c0_i32_0 : i32, i32
  }
  func.func @transform_3(%arg0: i32, %arg1: memref<12xi32, #tpu.memory_space<smem>>) -> (i32, i32) {
    %c0_i32 = arith.constant 0 : i32
    %c0_i32_0 = arith.constant 0 : i32
    %c0_i32_1 = arith.constant 0 : i32
    return %c0_i32, %c0_i32_0 : i32, i32
  }
  func.func @transform_4(%arg0: i32, %arg1: memref<12xi32, #tpu.memory_space<smem>>) -> (i32, i32) {
    %c0_i32 = arith.constant 0 : i32
    %c0_i32_0 = arith.constant 0 : i32
    %c0_i32_1 = arith.constant 0 : i32
    return %c0_i32, %c0_i32_0 : i32, i32
  }
  func.func @transform_5(%arg0: i32, %arg1: memref<12xi32, #tpu.memory_space<smem>>) -> (i32, i32) {
    %c0_i32 = arith.constant 0 : i32
    %c0_i32_0 = arith.constant 0 : i32
    %c0_i32_1 = arith.constant 0 : i32
    return %c0_i32, %c0_i32_0 : i32, i32
  }
  func.func @transform_6(%arg0: i32, %arg1: memref<12xi32, #tpu.memory_space<smem>>) -> (i32, i32) {
    %c0_i32 = arith.constant 0 : i32
    %c0_i32_0 = arith.constant 0 : i32
    %c0_i32_1 = arith.constant 0 : i32
    return %c0_i32, %c0_i32_0 : i32, i32
  }
  func.func @transform_7(%arg0: i32, %arg1: memref<12xi32, #tpu.memory_space<smem>>) -> (i32, i32) {
    %c0_i32 = arith.constant 0 : i32
    %c0_i32_0 = arith.constant 0 : i32
    %c0_i32_1 = arith.constant 0 : i32
    return %c0_i32, %c0_i32_0 : i32, i32
  }
  func.func @transform_8(%arg0: i32, %arg1: memref<12xi32, #tpu.memory_space<smem>>) -> (i32, i32) {
    %c0_i32 = arith.constant 0 : i32
    %c0_i32_0 = arith.constant 0 : i32
    %c0_i32_1 = arith.constant 0 : i32
    return %c0_i32, %c0_i32_0 : i32, i32
  }
  func.func @transform_9(%arg0: i32, %arg1: memref<12xi32, #tpu.memory_space<smem>>) -> (i32, i32) {
    %c0_i32 = arith.constant 0 : i32
    %c0_i32_0 = arith.constant 0 : i32
    %c0_i32_1 = arith.constant 0 : i32
    return %c0_i32, %c0_i32_0 : i32, i32
  }
  func.func @transform_10(%arg0: i32, %arg1: memref<12xi32, #tpu.memory_space<smem>>) -> (i32, i32) {
    %c0_i32 = arith.constant 0 : i32
    %c0_i32_0 = arith.constant 0 : i32
    %c0_i32_1 = arith.constant 0 : i32
    return %c0_i32, %c0_i32_0 : i32, i32
  }
  func.func @transform_11(%arg0: i32, %arg1: memref<12xi32, #tpu.memory_space<smem>>) -> (i32, i32) {
    %c0_i32 = arith.constant 0 : i32
    %c0_i32_0 = arith.constant 0 : i32
    %c0_i32_1 = arith.constant 0 : i32
    return %c0_i32, %c0_i32_0 : i32, i32
  }
  func.func @transform_12(%arg0: i32, %arg1: memref<12xi32, #tpu.memory_space<smem>>) -> (i32, i32) {
    %c0_i32 = arith.constant 0 : i32
    %c0_i32_0 = arith.constant 0 : i32
    %c0_i32_1 = arith.constant 0 : i32
    return %c0_i32, %c0_i32_0 : i32, i32
  }
  func.func @transform_13(%arg0: i32, %arg1: memref<12xi32, #tpu.memory_space<smem>>) -> (i32, i32) {
    %c0_i32 = arith.constant 0 : i32
    %c0_i32_0 = arith.constant 0 : i32
    %c0_i32_1 = arith.constant 0 : i32
    return %c0_i32, %c0_i32_0 : i32, i32
  }
  func.func @transform_14(%arg0: i32, %arg1: memref<12xi32, #tpu.memory_space<smem>>) -> (i32, i32) {
    %c0_i32 = arith.constant 0 : i32
    %c0_i32_0 = arith.constant 0 : i32
    %c0_i32_1 = arith.constant 0 : i32
    return %c0_i32, %c0_i32_0 : i32, i32
  }
  func.func @transform_15(%arg0: i32, %arg1: memref<12xi32, #tpu.memory_space<smem>>) -> (i32, i32) {
    %c0_i32 = arith.constant 0 : i32
    %c0_i32_0 = arith.constant 0 : i32
    %c0_i32_1 = arith.constant 0 : i32
    return %c0_i32, %c0_i32_0 : i32, i32
  }
  func.func @transform_16(%arg0: i32, %arg1: memref<12xi32, #tpu.memory_space<smem>>) -> (i32, i32) {
    %c0_i32 = arith.constant 0 : i32
    %c0_i32_0 = arith.constant 0 : i32
    %c0_i32_1 = arith.constant 0 : i32
    return %c0_i32, %c0_i32_0 : i32, i32
  }
  func.func @transform_17(%arg0: i32, %arg1: memref<12xi32, #tpu.memory_space<smem>>) -> (i32, i32, i32) {
    %c0_i32 = arith.constant 0 : i32
    %c0_i32_0 = arith.constant 0 : i32
    %c0_i32_1 = arith.constant 0 : i32
    return %arg0, %c0_i32, %c0_i32_0 : i32, i32, i32
  }
}

module attributes {stable_mosaic.version = 11 : i64} {
  func.func @_clip_logits_kernel(%arg0: memref<2x128xf32, #tpu.memory_space<vmem>>, %arg1: memref<12x128xf32, #tpu.memory_space<vmem>>, %arg2: memref<1x1xf32, #tpu.memory_space<smem>>, %arg3: memref<2x12xf32, #tpu.memory_space<vmem>>, %arg4: memref<12x128xf32, #tpu.memory_space<vmem>>) attributes {dimension_semantics = [], scalar_prefetch = 0 : i64, scratch_operands = 0 : i64, tpu.core_type = #tpu.core_type<tc>} {
    %c0 = arith.constant 0 : index
    %c0_0 = arith.constant 0 : index
    %0 = vector.load %arg0[%c0, %c0_0] : memref<2x128xf32, #tpu.memory_space<vmem>>, vector<2x128xf32>
    %c0_1 = arith.constant 0 : index
    %c0_2 = arith.constant 0 : index
    %1 = vector.load %arg1[%c0_1, %c0_2] : memref<12x128xf32, #tpu.memory_space<vmem>>, vector<12x128xf32>
    %2 = arith.mulf %0, %0 : vector<2x128xf32>
    %cst = arith.constant dense<0.000000e+00> : vector<2xf32>
    %3 = vector.multi_reduction <add>, %2, %cst [1] : vector<2x128xf32> to vector<2xf32>
    %4 = vector.shape_cast %3 : vector<2xf32> to vector<2x1xf32>
    %cst_3 = arith.constant 9.99999996E-13 : f32
    %5 = vector.broadcast %cst_3 : f32 to vector<2x1xf32>
    %6 = arith.addf %4, %5 : vector<2x1xf32>
    %7 = math.rsqrt %6 : vector<2x1xf32>
    %8 = vector.broadcast %7 : vector<2x1xf32> to vector<2x128xf32>
    %9 = arith.mulf %0, %8 : vector<2x128xf32>
    %10 = arith.mulf %1, %1 : vector<12x128xf32>
    %cst_4 = arith.constant dense<0.000000e+00> : vector<12xf32>
    %11 = vector.multi_reduction <add>, %10, %cst_4 [1] : vector<12x128xf32> to vector<12xf32>
    %12 = vector.shape_cast %11 : vector<12xf32> to vector<12x1xf32>
    %cst_5 = arith.constant 9.99999996E-13 : f32
    %13 = vector.broadcast %cst_5 : f32 to vector<12x1xf32>
    %14 = arith.addf %12, %13 : vector<12x1xf32>
    %15 = math.rsqrt %14 : vector<12x1xf32>
    %16 = vector.broadcast %15 : vector<12x1xf32> to vector<12x128xf32>
    %17 = arith.mulf %1, %16 : vector<12x128xf32>
    %c0_6 = arith.constant 0 : index
    %c0_7 = arith.constant 0 : index
    %18 = memref.load %arg2[%c0_6, %c0_7] : memref<1x1xf32, #tpu.memory_space<smem>>
    %19 = math.exp %18 : f32
    %cst_8 = arith.constant dense<0.000000e+00> : vector<2x12xf32>
    %20 = tpu.matmul %9, %17, %cst_8 {dimension_numbers = #tpu.dot_dimension_numbers<[1], [1], [0], [0], [0, 0, 1, 0], [], []>} : vector<2x128xf32>, vector<12x128xf32>, vector<2x12xf32> -> vector<2x12xf32>
    %21 = vector.broadcast %19 : f32 to vector<2x12xf32>
    %22 = arith.mulf %21, %20 : vector<2x12xf32>
    %c0_9 = arith.constant 0 : index
    %c0_10 = arith.constant 0 : index
    %23 = vector.load %arg3[%c0_9, %c0_10] : memref<2x12xf32, #tpu.memory_space<vmem>>, vector<2x12xf32>
    tpu.vector_store %arg3[%c0_9, %c0_10], %22 {strides = array<i32>} : memref<2x12xf32, #tpu.memory_space<vmem>>, vector<2x12xf32>,
    %c0_11 = arith.constant 0 : index
    %c0_12 = arith.constant 0 : index
    %24 = vector.load %arg4[%c0_11, %c0_12] : memref<12x128xf32, #tpu.memory_space<vmem>>, vector<12x128xf32>
    tpu.vector_store %arg4[%c0_11, %c0_12], %17 {strides = array<i32>} : memref<12x128xf32, #tpu.memory_space<vmem>>, vector<12x128xf32>,
    return
  }
}

</mosaic_0001>

<bundles_post_ra>
// kernel: nega_prompt_clip_forward.5
= control target key start
LH: loop header
LB: loop body
LE: loop exit
PB: predicated region body
PF: predicated region fallthrough
CT: control target
= control target key end

     0   :  { %11 = vsyncpa [#allocation4], 0  ;;  %vm43_vm0 = vcmask 1043456   ;;  %vm23_vm1 = vcmask 1041408   ;;  %s249_s0 = inlined_call_operand.vmem [shape: f32[2,128], index: 0, kind: input, shape index: {}]   ;;  %s250_s1 = inlined_call_operand.vmem [shape: f32[12,128], index: 1, kind: input, shape index: {}]   ;;  %s251_s2 = inlined_call_operand.<no memory space> [shape: f32[1,1], index: 2, kind: input, shape index: {}]   ;;  %s252_s3 = inlined_call_operand.hbm [shape: f32[2,12], index: 3, kind: output, shape index: {0}]   ;;  %s253_s4 = inlined_call_operand.hbm [shape: f32[12,128], index: 4, kind: output, shape index: {1}]  }
   0x1   :  { %v21_v0 = vld [vmem:[%s250_s1 + $0x8] sm:$0xf]  ;;  %v19_v1 = vld [vmem:[%s249_s0] sm:$0x3] }
   0x2   :  { %v40_v2 = vmul.f32 %v21_v0, %v21_v0  ;;  %v22_v3 = vmul.f32 %v19_v1, %v19_v1 }
   0x3   :  { %12 = vsyncpa [#allocation6], 0  ;;  %v20_v6 = vld [vmem:[%s250_s1] sm:$0xff]  ;;  %v72_v12 = vstv %s251_s2  ;;  %s202_s1 = smov [#allocation5]   ;;  %s119_s24 = sshll.u32 %s253_s4, 4  ;;  %vm98_vm11 = vcmask 91136   ;;  %s120_s24 = int_to_ptr.hbm [resolvable:$true] %s119_s24 }
   0x4   :  { %v44_v4 = vsel %vm43_vm0, %v40_v2, 0.0  ;;  %v24_v5 = vsel %vm23_vm1, %v22_v3, 0.0  ;;  %v39_v7 = vmul.f32 %v20_v6, %v20_v6  ;;  %v73_v13 = vmul.f32 1.442695, %v72_v12  ;;  %s117_s2 = sshll.u32 %s202_s1, 4  ;;  %s203_s25 = smov 128   ;;  %s118_s2 = int_to_ptr.vmem [resolvable:$true] %s117_s2 }
   0x5   :  { %45 = vadd.xlane.f32.xlu0 %v44_v4  ;;  %25 = vadd.xlane.f32.xlu1 %v24_v5  ;;  %s204_s26 = smov 8   ;;  %s205_s28 = smov [#allocation3]  }
   0x6   :  { %s107_s29 = sshll.u32 %s205_s28, 4  ;;  %s109_s6 = sshll.u32 %s252_s3, 4  ;;  %s108_s29 = int_to_ptr.vmem [resolvable:$true] %s107_s29  ;;  %s110_s6 = int_to_ptr.hbm [resolvable:$true] %s109_s6 }
   0xd   :  { %41 = vadd.xlane.f32.xlu0 %v39_v7 }
  0x78   :  { %v46_v8 = vpop.xlane.xlu0 %45  ;;  %v26_v9 = vpop.xlane.xlu1 %25 }
  0x79   :  { %v48_v10 = vadd.f32 1e-12, %v46_v8  ;;  %v27_v11 = vadd.f32 1e-12, %v26_v9 }
  0x7b   :  { %142 = vrsqrt.f32 %v48_v10  ;;  %vm65_vm3 = vweird.f32 %v48_v10  ;;  %vm34_vm6 = vweird.f32 %v27_v11 }
  0x7c   :  { %144 = vrsqrt.f32 %v27_v11 }
  0x7d   :  { %146 = vpow2.f32 %v73_v13 }
  0x80   :  { %v42_v14 = vpop.xlane.xlu0 %41 }
  0x81   :  { %v143_v15 = vpop.eup %142  ;;  %v47_v16 = vadd.f32 1e-12, %v42_v14 }
  0x82   :  { %v145_v17 = vpop.eup %144  ;;  %v60_v18 = vmul.f32 %v143_v15, %v48_v10  ;;  %vm66_vm2 = vweird.f32 %v143_v15 }
  0x83   :  { %v147_v19 = vpop.eup %146  ;;  %v29_v20 = vmul.f32 %v145_v17, %v27_v11  ;;  %148 = vrsqrt.f32 %v47_v16  ;;  %vm67_vm4 = vmor %vm65_vm3, %vm66_vm2  ;;  %vm35_vm7 = vweird.f32 %v145_v17  ;;  %vm55_vm8 = vweird.f32 %v47_v16 }
  0x84   :  { %v61_v21 = vmul.f32 %v143_v15, %v60_v18  ;;  %136 = vpush %v147_v19  ;;  %vm36_vm10 = vmor %vm34_vm6, %vm35_vm7 }
  0x85   :  { %v30_v22 = vmul.f32 %v145_v17, %v29_v20 }
  0x86   :  { %v62_v23 = vmul.f32 0.5, %v61_v21 }
  0x87   :  { %v31_v26 = vmul.f32 0.5, %v30_v22 }
  0x88   :  { %v63_v24 = vsub.f32 1.5, %v62_v23 }
  0x89   :  { %v149_v25 = vpop.eup %148  ;;  %v32_v31 = vsub.f32 1.5, %v31_v26 }
  0x8a   :  { %v50_v27 = vmul.f32 %v149_v25, %v47_v16  ;;  %v64_v28 = vmul.f32 %v143_v15, %v63_v24  ;;  %vm56_vm5 = vweird.f32 %v149_v25 }
  0x8b   :  { %v33_v35 = vmul.f32 %v145_v17, %v32_v31  ;;  %vm57_vm9 = vmor %vm55_vm8, %vm56_vm5 }
  0x8c   :  { %v51_v29 = vmul.f32 %v149_v25, %v50_v27  ;;  %v68_v30 = vsel %vm67_vm4, %v143_v15, %v64_v28 }
  0x8d   :  { %v70_v32 = vmul.f32 %v68_v30, %v21_v0  ;;  %v37_v39 = vsel %vm36_vm10, %v145_v17, %v33_v35 }
  0x8e   :  { %v52_v33 = vmul.f32 0.5, %v51_v29  ;;  %v38_v40 = vmul.f32 %v37_v39, %v19_v1 }
  0x8f   :  { %90 = vmatpush.xpose.msra.mxu0 %v70_v32  ;;  %101 = vst [vmem:[#allocation5 + $0x8] sm:$0xf] %v70_v32 }
  0x90   :  { %v53_v34 = vsub.f32 1.5, %v52_v33 }
  0x92   :  { %v54_v36 = vmul.f32 %v149_v25, %v53_v34 }
  0x94   :  { %v58_v37 = vsel %vm57_vm9, %v149_v25, %v54_v36 }
  0x95   :  { %v69_v38 = vmul.f32 %v58_v37, %v20_v6 }
  0x97   :  { %91 = vmatpush.xpose.msra.mxu0 %v69_v38  ;;  %100 = vst [vmem:[#allocation5] sm:$0xff] %v69_v38 }
  0x98   :  { %125 = dma.vmem_to_hbm [thread:$0]  %s118_s2, 256, %s120_s24, [#allocation6], %s203_s25, %s203_s25, %s204_s26  }
  0x9a   :  { %92 = vmatmul.f32.vlgmr.msra.gmra.mxu0 %v38_v40 }
  0xb5   :  { %s137_s27 = spop %136 }
  0xb6   :  { %v96_v41 = vstv %s137_s27 }
 0x117   :  { %v93_v42 = vpop.f32.mrf.mxu0 }
 0x118   :  { %v97_v43 = vmul.f32 %v96_v41, %v93_v42 }
 0x11a   :  { %99 = vst.msk [vmem:[#allocation3] sm:$0x3] %vm98_vm11, %v97_v43 }
 0x11b   :  { %112 = dma.vmem_to_hbm [thread:$0]  %s108_s29, 32, %s110_s6, [#allocation4]  }
 0x11c   :  { %198 = dma.done.wait [#allocation4], 32  }
 0x11d   :  { %199 = vsyncadd [#allocation4], 4294967264 }
 0x11e   :  { %200 = dma.done.wait [#allocation6], 256  }
 0x11f   :  { %201 = vsyncadd [#allocation6], 4294967040 }
 0x120   :  { %134 = vsyncpa [#allocation4], 1 }
 0x121   :  { %135 = vsyncpa [#allocation6], 1 }

// kernel: nega_prompt_clip_forward.3
= control target key start
LH: loop header
LB: loop body
LE: loop exit
PB: predicated region body
PF: predicated region fallthrough
CT: control target
= control target key end

     0   :  { %s2405_s30 = smov [#allocation3]   ;;  %s3064_s0 = inlined_call_operand.vmem [shape: s32[12], index: 0, kind: input, shape index: {}]   ;;  %s3065_s1 = inlined_call_operand.vmem [shape: f32[12,16,128], index: 1, kind: input, shape index: {}]   ;;  %s3066_s2 = inlined_call_operand.vmem [shape: f32[16,128], index: 2, kind: input, shape index: {}]   ;;  %s3067_s3 = inlined_call_operand.vmem [shape: f32[1,128], index: 3, kind: input, shape index: {}]   ;;  %s3068_s4 = inlined_call_operand.vmem [shape: f32[1,128], index: 4, kind: input, shape index: {}]   ;;  %s3069_s5 = inlined_call_operand.vmem [shape: bf16[128,384], index: 5, kind: input, shape index: {}]   ;;  %s3070_s6 = inlined_call_operand.vmem [shape: f32[1,384], index: 6, kind: input, shape index: {}]   ;;  %s3071_s7 = inlined_call_operand.vmem [shape: bf16[128,128], index: 7, kind: input, shape index: {}]   ;;  %s3072_s8 = inlined_call_operand.vmem [shape: f32[1,128], index: 8, kind: input, shape index: {}]   ;;  %s3073_s9 = inlined_call_operand.vmem [shape: f32[1,128], index: 9, kind: input, shape index: {}]   ;;  %s3074_s10 = inlined_call_operand.vmem [shape: f32[1,128], index: 10, kind: input, shape index: {}]   ;;  %s3075_s11 = inlined_call_operand.vmem [shape: bf16[128,256], index: 11, kind: input, shape index: {}]   ;;  %s3076_s12 = inlined_call_operand.vmem [shape: f32[1,256], index: 12, kind: input, shape index: {}]   ;;  %s3077_s13 = inlined_call_operand.vmem [shape: bf16[256,128], index: 13, kind: input, shape index: {}]   ;;  %s3078_s14 = inlined_call_operand.vmem [shape: f32[1,128], index: 14, kind: input, shape index: {}]   ;;  %s3079_s15 = inlined_call_operand.vmem [shape: f32[1,128], index: 15, kind: input, shape index: {}]   ;;  %s3080_s16 = inlined_call_operand.vmem [shape: f32[1,128], index: 16, kind: input, shape index: {}]   ;;  %s3081_s17 = inlined_call_operand.vmem [shape: bf16[128,128], index: 17, kind: input, shape index: {}]   ;;  %s3082_s18 = inlined_call_operand.vmem [shape: f32[12,1,128], index: 18, kind: output, shape index: {}]  }
   0x1   :  { %3084 = sst [smem:[#allocation5_spill]] %s3064_s0 }
   0x2   :  { %3085 = sst [smem:[#allocation6_spill]] %s3065_s1 }
   0x3   :  { %3086 = sst [smem:[#allocation7_spill]] %s3066_s2 }
   0x4   :  { %3087 = sst [smem:[#allocation8_spill]] %s3076_s12 }
   0x5   :  { %s3088_s29 = sld [smem:[#allocation5_spill]] }
   0xb   :  { %s24_s12 = sshll.u32 %s3088_s29, 4  ;;  %s25_s12 = int_to_ptr.vmem [resolvable:$true] %s24_s12 }
   0xc   :  { %27 = dma.vmem_to_smem %s25_s12, 16, %s2405_s30, [#allocation2] }
   0xd   :  { %2399 = dma.done.wait [#allocation2], 16 }
   0xe   :  { %2400 = vsyncadd [#allocation2], 4294967280 }
   0xf   :  { %30 = sfence }
  0x10   :  { %s2510_s0 = smov 0  }
  0x11 LB: > { %s2516_s19 = sadd.s32 4294967295, %s2403_s0   ;;  %p1914_p0 = scmp.ge.s32.totalorder %s2403_s0, 1  ;;  %s2403_s0 = sphi %s2510_s0, %s36_s0  }
  0x12   : > { %p496_p1 = scmp.lt.s32.totalorder %s2403_s0, 13 }
  0x14   : > { %p497_p2 = pnand %p1914_p0, %p496_p1 }
  0x15   : > { %p546_p3 = scmp.lt.s32.totalorder (!%p497_p2), %s2516_s19, 11  ;;  %s3089_s22 = sld [smem:[#allocation7_spill]] (!%p497_p2) }
  0x16   : > { %500 = sbr.rel (%p497_p2) target bundleno = 2728 (0xaa8), region = 88  ;;  %s3090_s24 = sld [smem:[#allocation6_spill]] (!%p497_p2) }
  0x17   : > { %s2408_s2 = smov (!%p497_p2), 96   ;;  %s2409_s23 = smov (!%p497_p2), 64  }
  0x18   : > { %s3091_s27 = sld [smem:[#allocation8_spill]] (!%p497_p2) }
  0x19   : > { %s1756_s28 = sld [smem:[#allocation3 + %s2516_s19]] (!%p497_p2) }
  0x1b   : > { %s2522_s12 = scalar_select %p546_p3, %s2516_s19, 11  ;;  %v557_v0 = vld [vmem:[%s3089_s22] sm:$0xff]  ;;  %v558_v4 = vld [vmem:[%s3089_s22 + $0x8] sm:$0xff]  ;;  %v2406_v6 = vmov 128.0   ;;  %v2248_v22 = vld [vmem:[%s3069_s5 + $0xb0] sm:$0xf0] }
  0x1c   : > { %2321 = vrcp.f32 %v2406_v6  ;;  %v2003_v21 = vld [vmem:[%s3069_s5 + $0xa8] sm:$0xf]  ;;  %v2247_v23 = vld [vmem:[%s3069_s5 + $0xac] sm:$0xf]  ;;  %v2005_v25 = vld [vmem:[%s3069_s5 + $0xb4] sm:$0xf0] }
  0x1d   : > { %s2225_s1 = sshll.u32 %s2522_s12, 4  ;;  %v2004_v24 = vor.u32 %v2248_v22, %v2003_v21  ;;  %v2011_v26 = vld [vmem:[%s3069_s5 + $0xb0] sm:$0xf]  ;;  %v2249_v27 = vld [vmem:[%s3069_s5 + $0xb8] sm:$0xf0]  ;;  %v2008_v28 = vor.u32 %v2247_v23, %v2005_v25  ;;  %vm911_vm7 = vcmask 261120   ;;  %s553_s26 = scalar_lea.vmem %s3082_s18, %s2522_s12 }
  0x1e   : > { %s550_s25 = scalar_lea.vmem %s3090_s24, %s2225_s1  ;;  %v2012_v29 = vor.u32 %v2249_v27, %v2011_v26  ;;  %v1991_v30 = vld [vmem:[%s3069_s5 + $0x90] sm:$0xf]  ;;  %v2245_v31 = vld [vmem:[%s3069_s5 + $0x98] sm:$0xf0]  ;;  %v2244_v32 = vld [vmem:[%s3069_s5 + $0x94] sm:$0xf] }
  0x1f   : > { %v555_v1 = vld [vmem:[%s550_s25] sm:$0xff]  ;;  %v556_v3 = vld [vmem:[%s550_s25 + $0x8] sm:$0xff]  ;;  %867 = vmatpush.bf16.msra.mxu0 %v2004_v24  ;;  %881 = vmatpush.bf16.msra.mxu1 %v2008_v28  ;;  %v1992_v33 = vor.u32 %v2245_v31, %v1991_v30  ;;  %v1999_v35 = vld [vmem:[%s3069_s5 + $0x98] sm:$0xf]  ;;  %vm936_vm9 = vcmask 130048   ;;  %s2410_s24 = smov 32  }
  0x20   : > { %v2531_v2 = vadd.f32 %v557_v0, %v555_v1  ;;  %v2537_v5 = vadd.f32 %v558_v4, %v556_v3  ;;  %895 = vmatpush.bf16.msra.mxu2 %v2012_v29  ;;  %v1993_v34 = vld [vmem:[%s3069_s5 + $0x9c] sm:$0xf0]  ;;  %v2246_v36 = vld [vmem:[%s3069_s5 + $0xa0] sm:$0xf0]  ;;  %v1979_v39 = vld [vmem:[%s3069_s5 + $0x78] sm:$0xf] }
  0x21   : > { %v1996_v37 = vor.u32 %v2244_v32, %v1993_v34  ;;  %v2000_v38 = vor.u32 %v2246_v36, %v1999_v35  ;;  %v2242_v40 = vld [vmem:[%s3069_s5 + $0x80] sm:$0xf0]  ;;  %v2241_v41 = vld [vmem:[%s3069_s5 + $0x7c] sm:$0xf]  ;;  %v1981_v43 = vld [vmem:[%s3069_s5 + $0x84] sm:$0xf0] }
  0x22   : > { %674 = vadd.xlane.f32.xlu0 %v2531_v2  ;;  %v2322_v7 = vpop.eup %2321  ;;  %v1980_v42 = vor.u32 %v2242_v40, %v1979_v39  ;;  %v1987_v44 = vld [vmem:[%s3069_s5 + $0x80] sm:$0xf]  ;;  %v2243_v45 = vld [vmem:[%s3069_s5 + $0x88] sm:$0xf0]  ;;  %v1984_v46 = vor.u32 %v2241_v41, %v1981_v43  ;;  %v2238_v50 = vld [vmem:[%s3069_s5 + $0x64] sm:$0xf] }
  0x23   : > { %v679_v8 = vmul.f32 128.0, %v2322_v7  ;;  %vm683_vm0 = vweird.f32 %v2322_v7  ;;  %868 = vmatpush.bf16.msra.mxu0 %v1992_v33  ;;  %882 = vmatpush.bf16.msra.mxu1 %v1996_v37  ;;  %v1988_v47 = vor.u32 %v2243_v45, %v1987_v44  ;;  %v1967_v48 = vld [vmem:[%s3069_s5 + $0x60] sm:$0xf]  ;;  %v2239_v49 = vld [vmem:[%s3069_s5 + $0x68] sm:$0xf0] }
  0x24   : > { %896 = vmatpush.bf16.msra.mxu2 %v2000_v38  ;;  %v1968_v51 = vor.u32 %v2239_v49, %v1967_v48  ;;  %v1969_v52 = vld [vmem:[%s3069_s5 + $0x6c] sm:$0xf0]  ;;  %v1975_v53 = vld [vmem:[%s3069_s5 + $0x68] sm:$0xf]  ;;  %v2240_v54 = vld [vmem:[%s3069_s5 + $0x70] sm:$0xf0] }
  0x25   : > { %v680_v9 = vsub.f32 1.0, %v679_v8  ;;  %v1972_v55 = vor.u32 %v2238_v50, %v1969_v52  ;;  %v1976_v56 = vor.u32 %v2240_v54, %v1975_v53  ;;  %v1955_v57 = vld [vmem:[%s3069_s5 + $0x48] sm:$0xf]  ;;  %v2236_v58 = vld [vmem:[%s3069_s5 + $0x50] sm:$0xf0] }
  0x26   : > { %v2235_v59 = vld [vmem:[%s3069_s5 + $0x4c] sm:$0xf]  ;;  %v1956_v60 = vor.u32 %v2236_v58, %v1955_v57  ;;  %v1957_v61 = vld [vmem:[%s3069_s5 + $0x54] sm:$0xf0]  ;;  %v1963_v62 = vld [vmem:[%s3069_s5 + $0x50] sm:$0xf] }
  0x27   : > { %v681_v10 = vmul.f32 %v2322_v7, %v680_v9  ;;  %869 = vmatpush.bf16.msra.mxu0 %v1980_v42  ;;  %883 = vmatpush.bf16.msra.mxu1 %v1984_v46  ;;  %v2237_v63 = vld [vmem:[%s3069_s5 + $0x58] sm:$0xf0]  ;;  %v1960_v0 = vor.u32 %v2235_v59, %v1957_v61  ;;  %v1943_v3 = vld [vmem:[%s3069_s5 + $0x30] sm:$0xf]  ;;  %v2232_v6 = vld [vmem:[%s3069_s5 + $0x34] sm:$0xf] }
  0x28   : > { %897 = vmatpush.bf16.msra.mxu2 %v1988_v47  ;;  %v1964_v1 = vor.u32 %v2237_v63, %v1963_v62  ;;  %v2233_v4 = vld [vmem:[%s3069_s5 + $0x38] sm:$0xf0]  ;;  %v1945_v8 = vld [vmem:[%s3069_s5 + $0x3c] sm:$0xf0]  ;;  %v1951_v9 = vld [vmem:[%s3069_s5 + $0x38] sm:$0xf] }
  0x29   : > { %v682_v11 = vadd.f32 %v2322_v7, %v681_v10  ;;  %v2234_v10 = vld [vmem:[%s3069_s5 + $0x40] sm:$0xf0]  ;;  %v1939_v21 = vld [vmem:[%s3069_s5 + $0x20] sm:$0xf]  ;;  %v2231_v22 = vld [vmem:[%s3069_s5 + $0x28] sm:$0xf0] }
  0x2a   : > { %676 = vadd.xlane.f32.xlu0 %v2537_v5  ;;  %v1940_v24 = vor.u32 %v2231_v22, %v1939_v21  ;;  %v1919_v25 = vld [vmem:[%s3069_s5] sm:$0xf]  ;;  %v2227_v26 = vld [vmem:[%s3069_s5 + $0x8] sm:$0xf0]  ;;  %v2226_v27 = vld [vmem:[%s3069_s5 + $0x4] sm:$0xf]  ;;  %v561_v22 = vlaneseq }
  0x2b   : > { %v2540_v12 = vsel %vm683_vm0, %v2322_v7, %v682_v11  ;;  %870 = vmatpush.bf16.msra.mxu0 %v1968_v51  ;;  %884 = vmatpush.bf16.msra.mxu1 %v1972_v55  ;;  %v1944_v7 = vor.u32 %v2233_v4, %v1943_v3  ;;  %v1948_v11 = vor.u32 %v2232_v6, %v1945_v8  ;;  %v1921_v30 = vld [vmem:[%s3069_s5 + $0xc] sm:$0xf0]  ;;  %v1927_v31 = vld [vmem:[%s3069_s5 + $0x8] sm:$0xf]  ;;  %v2228_v32 = vld [vmem:[%s3069_s5 + $0x10] sm:$0xf0] }
  0x2c   : > { %898 = vmatpush.bf16.msra.mxu2 %v1976_v56  ;;  %v1920_v29 = vor.u32 %v2227_v26, %v1919_v25  ;;  %v1924_v34 = vor.u32 %v2226_v27, %v1921_v30  ;;  %v1928_v35 = vor.u32 %v2228_v32, %v1927_v31  ;;  %v2313_v53 = vld [vmem:[%s3067_s3] ss:$0 sm:$0xff]  ;;  %v2407_v26 = vmov -1e+09  }
  0x2d   : > { %v2314_v58 = vld [vmem:[%s3068_s4] ss:$0 sm:$0xff] }
  0x2e   : > { %v604_v63 = vld [vmem:[%s3070_s6] sm:$0x7] }
  0x2f   : > { %871 = vmatpush.bf16.msra.mxu0 %v1956_v60  ;;  %885 = vmatpush.bf16.msra.mxu1 %v1960_v0  ;;  %v735_v8 = vperm.slane %v604_v63, 2 }
  0x30   : > { %899 = vmatpush.bf16.msra.mxu2 %v1964_v1  ;;  %v734_v1 = vperm.slane %v604_v63, 1 }
  0x33   : > { %872 = vmatpush.bf16.msra.mxu0 %v1944_v7  ;;  %886 = vmatpush.bf16.msra.mxu1 %v1948_v11 }
  0x95   : > { %v675_v13 = vpop.xlane.xlu0 %674 }
  0x96   : > { %v685_v14 = vmul.f32 %v2540_v12, %v675_v13  ;;  %v1952_v13 = vor.u32 %v2234_v10, %v1951_v9  ;;  %v733_v10 = vperm.slane %v604_v63, 0 }
  0x98   : > { %v2544_v15 = vsub.f32 %v2531_v2, %v685_v14  ;;  %900 = vmatpush.bf16.msra.mxu2 %v1952_v13  ;;  %v1931_v14 = vld [vmem:[%s3069_s5 + $0x18] sm:$0xf] }
  0x9a   : > { %v689_v16 = vmul.f32 %v2544_v15, %v2544_v15 }
  0x9c   : > { %691 = vadd.xlane.f32.xlu1 %v689_v16  ;;  %v2230_v16 = vld [vmem:[%s3069_s5 + $0x20] sm:$0xf0]  ;;  %901 = vmatpush.bf16.msra.mxu2 %v1940_v24  ;;  %v2716_v24 = vand.u32 127, %v561_v22 }
  0x9d   : > { %v677_v17 = vpop.xlane.xlu0 %676 }
  0x9e   : > { %v686_v18 = vmul.f32 %v2540_v12, %v677_v17  ;;  %v2229_v17 = vld [vmem:[%s3069_s5 + $0x1c] sm:$0xf] }
  0xa0   : > { %v2550_v19 = vsub.f32 %v2537_v5, %v686_v18  ;;  %v1932_v18 = vor.u32 %v2230_v16, %v1931_v14  ;;  %902 = vmatpush.bf16.msra.mxu2 %v1928_v35 }
  0xa2   : > { %v690_v20 = vmul.f32 %v2550_v19, %v2550_v19  ;;  %873 = vmatpush.bf16.msra.mxu0 %v1932_v18 }
  0xa4   : > { %693 = vadd.xlane.f32.xlu1 %v690_v20  ;;  %v1933_v20 = vld [vmem:[%s3069_s5 + $0x24] sm:$0xf0] }
  0xa5   : > { %v1936_v23 = vor.u32 %v2229_v17, %v1933_v20 }
  0xa6   : > { %874 = vmatpush.bf16.msra.mxu0 %v1920_v29 }
  0xa7   : > { %887 = vmatpush.bf16.msra.mxu1 %v1936_v23  ;;  %v562_v23 = vshrl.u32 %v561_v22, 7 }
  0xa9   : > { %vm566_vm8 = vcmp.le.s32.totalorder %v2716_v24, %v562_v23  ;;  %v563_v29 = vadd.s32 8, %v562_v23 }
  0xaa   : > { %v2719_v27 = vsel %vm566_vm8, 0.0, %v2407_v26 }
  0xab   : > { %888 = vmatpush.bf16.msra.mxu1 %v1924_v34  ;;  %vm567_vm10 = vcmp.le.s32.totalorder %v2716_v24, %v563_v29 }
 0x10f   : > { %v692_v28 = vpop.xlane.xlu1 %691 }
 0x110   : > { %v695_v33 = vmul.f32 %v692_v28, %v2540_v12 }
 0x112   : > { %v697_v36 = vadd.f32 1e-05, %v695_v33  ;;  %v2724_v33 = vsel %vm567_vm10, 0.0, %v2407_v26 }
 0x114   : > { %2323 = vrsqrt.f32 %v697_v36  ;;  %vm705_vm2 = vweird.f32 %v697_v36 }
 0x117   : > { %v694_v37 = vpop.xlane.xlu1 %693 }
 0x118   : > { %v696_v38 = vmul.f32 %v694_v37, %v2540_v12 }
 0x11a   : > { %v2324_v39 = vpop.eup %2323  ;;  %v698_v40 = vadd.f32 1e-05, %v696_v38 }
 0x11b   : > { %v700_v41 = vmul.f32 %v2324_v39, %v697_v36  ;;  %vm706_vm1 = vweird.f32 %v2324_v39 }
 0x11c   : > { %2325 = vrsqrt.f32 %v698_v40  ;;  %vm707_vm3 = vmor %vm705_vm2, %vm706_vm1  ;;  %vm715_vm5 = vweird.f32 %v698_v40 }
 0x11d   : > { %v701_v42 = vmul.f32 %v2324_v39, %v700_v41 }
 0x11f   : > { %v702_v43 = vmul.f32 0.5, %v701_v42 }
 0x121   : > { %v703_v44 = vsub.f32 1.5, %v702_v43 }
 0x122   : > { %v2326_v45 = vpop.eup %2325 }
 0x123   : > { %v704_v46 = vmul.f32 %v2324_v39, %v703_v44  ;;  %v710_v47 = vmul.f32 %v2326_v45, %v698_v40  ;;  %vm716_vm4 = vweird.f32 %v2326_v45 }
 0x124   : > { %vm717_vm6 = vmor %vm715_vm5, %vm716_vm4 }
 0x125   : > { %v711_v48 = vmul.f32 %v2326_v45, %v710_v47  ;;  %v708_v49 = vsel %vm707_vm3, %v2324_v39, %v704_v46 }
 0x126   : > { %v719_v52 = vmul.f32 %v708_v49, %v2544_v15 }
 0x127   : > { %v712_v50 = vmul.f32 0.5, %v711_v48 }
 0x128   : > { %v724_v57 = vmul.f32 %v2313_v53, %v719_v52 }
 0x129   : > { %v713_v51 = vsub.f32 1.5, %v712_v50 }
 0x12a   : > { %v729_v60 = vadd.f32 %v2314_v58, %v724_v57 }
 0x12b   : > { %v714_v54 = vmul.f32 %v2326_v45, %v713_v51 }
 0x12d   : > { %v718_v55 = vsel %vm717_vm6, %v2326_v45, %v714_v54 }
 0x12e   : > { %v720_v56 = vmul.f32 %v718_v55, %v2550_v19 }
 0x130   : > { %v725_v59 = vmul.f32 %v2313_v53, %v720_v56 }
 0x132   : > { %v730_v61 = vadd.f32 %v2314_v58, %v725_v59 }
 0x134   : > { %v731_v62 = vpack.c.bf16 %v730_v61, %v729_v60 }
 0x136   : > { %875 = vmatmul.bf16.vlgmr.msra.gmra.mxu0 %v731_v62  ;;  %889 = vmatmul.bf16.vlgmr.msra.gmra.mxu1 %v731_v62 }
 0x137   : > { %903 = vmatmul.bf16.vlgmr.msra.gmra.mxu2 %v731_v62 }
 0x1b3   : > { %v890_v15 = vpop.f32.mrf.mxu1  ;;  %v876_v0 = vpop.f32.mrf.mxu0 }
 0x1b4   : > { %v891_v4 = vadd.f32 %v890_v15, %v734_v1  ;;  %v877_v18 = vadd.f32 %v876_v0, %v733_v10 }
 0x1ba   : > { %v904_v19 = vpop.f32.mrf.mxu2 }
 0x1bb   : > { %v892_v3 = vpop.f32.mrf.mxu1  ;;  %v878_v9 = vpop.f32.mrf.mxu0  ;;  %v905_v16 = vadd.f32 %v904_v19, %v735_v8 }
 0x1bc   : > { %v893_v6 = vadd.f32 %v892_v3, %v734_v1  ;;  %v879_v13 = vadd.f32 %v878_v9, %v733_v10 }
 0x1be   : > { %v910_v7 = vpack.c.bf16 %v893_v6, %v891_v4  ;;  %v909_v21 = vpack.c.bf16 %v879_v13, %v877_v18 }
 0x1c0   : > { %v916_v11 = vsel %vm911_vm7, %v910_v7, 0 }
 0x1c1   : > { %925 = vmatpush.bf16.xpose.msra.mxu3 %v916_v11 }
 0x1c2   : > { %v906_v14 = vpop.f32.mrf.mxu2 }
 0x1c3   : > { %v907_v17 = vadd.f32 %v906_v14, %v735_v8 }
 0x1c5   : > { %v2712_v20 = vpack.c.bf16 %v907_v17, %v905_v16 }
 0x1c8   : > { %2013 = vmatmul.msk.bf16.vlgmr.msra.gmra.mxu3 %vm911_vm7, %v909_v21 }
 0x1c9   : > { %971 = vmatpush.bf16.msrb.mxu3 %v2712_v20 }
 0x24b   : > { %v927_v25 = vpop.f32.mrf.mxu3 }
 0x24c   : > { %v932_v28 = vmul.f32 0.17677669, %v927_v25 }
 0x24e   : > { %v934_v30 = vadd.f32 %v932_v28, %v2719_v27 }
 0x250   : > { %v937_v31 = vsel %vm936_vm9, %v934_v30, -inf }
 0x251   : > { %938 = vmax.xlane.f32.xlu2 %v937_v31 }
 0x253   : > { %v929_v32 = vpop.f32.mrf.mxu3 }
 0x254   : > { %v933_v34 = vmul.f32 0.17677669, %v929_v32 }
 0x256   : > { %v935_v35 = vadd.f32 %v933_v34, %v2724_v33 }
 0x258   : > { %v940_v36 = vsel %vm936_vm9, %v935_v35, -inf }
 0x259   : > { %941 = vmax.xlane.f32.xlu2 %v940_v36 }
 0x271   : > { %983 = vrot.lane.b32.xlu2 %v910_v7, %s2408_s2 }
 0x279   : > { %1114 = vrot.lane.b32.xlu2 %v910_v7, %s2409_s23 }
 0x281   : > { %1112 = vrot.lane.b32.xlu2 %v909_v21, %s2409_s23 }
 0x2c4   : > { %v939_v37 = vpop.xlane.xlu2 %938 }
 0x2c5   : > { %v943_v38 = vsub.f32 %v934_v30, %v939_v37 }
 0x2c7   : > { %v945_v39 = vmul.f32 1.442695, %v943_v38 }
 0x2c9   : > { %2327 = vpow2.f32 %v945_v39 }
 0x2cc   : > { %v942_v40 = vpop.xlane.xlu2 %941 }
 0x2cd   : > { %v944_v41 = vsub.f32 %v935_v35, %v942_v40 }
 0x2cf   : > { %v2328_v42 = vpop.eup %2327  ;;  %v947_v43 = vmul.f32 1.442695, %v944_v41 }
 0x2d0   : > { %v949_v44 = vsel %vm936_vm9, %v2328_v42, 0.0 }
 0x2d1   : > { %2329 = vpow2.f32 %v947_v43  ;;  %950 = vadd.xlane.f32.xlu0 %v949_v44 }
 0x2d4   : > { %v984_v45 = vpop.permute.xlu2 %983 }
 0x2d5   : > { %v989_v46 = vsel %vm911_vm7, %v984_v45, 0 }
 0x2d6   : > { %998 = vmatpush.bf16.xpose.msra.mxu3 %v989_v46 }
 0x2d7   : > { %v2330_v47 = vpop.eup %2329 }
 0x2d8   : > { %v952_v48 = vsel %vm936_vm9, %v2330_v47, 0.0 }
 0x2d9   : > { %953 = vadd.xlane.f32.xlu1 %v952_v48 }
 0x2dc   : > { %v1115_v55 = vpop.permute.xlu2 %1114 }
 0x2dd   : > { %v1120_v57 = vsel %vm911_vm7, %v1115_v55, 0 }
 0x2e4   : > { %v1113_v62 = vpop.permute.xlu2 %1112 }
 0x2e5   : > { %980 = vrot.lane.b32.xlu0 %v909_v21, %s2408_s2 }
 0x2ed   : > { %1215 = vrot.lane.b32.xlu0 %v909_v21, %s2410_s24 }
 0x2f2   : > { %1217 = vrot.lane.b32.xlu1 %v910_v7, %s2410_s24 }
 0x344   : > { %v951_v49 = vpop.xlane.xlu0 %950 }
 0x345   : > { %2331 = vrcp.f32 %v951_v49 }
 0x34b   : > { %v2332_v51 = vpop.eup %2331 }
 0x34c   : > { %v954_v50 = vpop.xlane.xlu1 %953  ;;  %v957_v53 = vmul.f32 %v2332_v51, %v2328_v42 }
 0x34d   : > { %2333 = vrcp.f32 %v954_v50 }
 0x353   : > { %v2334_v52 = vpop.eup %2333 }
 0x354   : > { %v958_v54 = vmul.f32 %v2334_v52, %v2330_v47 }
 0x356   : > { %v959_v56 = vpack.c.bf16 %v958_v54, %v957_v53 }
 0x357   : > { %v981_v58 = vpop.permute.xlu0 %980 }
 0x358   : > { %2014 = vmatmul.msk.bf16.vlgmr.msrb.gmra.mxu3 %vm936_vm9, %v959_v56 }
 0x359   : > { %1129 = vmatpush.bf16.xpose.msrb.mxu3 %v1120_v57 }
 0x35f   : > { %v1216_v61 = vpop.permute.xlu0 %1215 }
 0x364   : > { %v1218_v59 = vpop.permute.xlu1 %1217 }
 0x365   : > { %v1223_v60 = vsel %vm911_vm7, %v1218_v59, 0 }
 0x366   : > { %1232 = vmatpush.bf16.xpose.msrb.mxu2 %v1223_v60 }
 0x368   : > { %2015 = vmatmul.msk.bf16.vlgmr.msra.gmra.mxu3 %vm911_vm7, %v981_v58 }
 0x36d   : > { %2046 = vmatmul.msk.bf16.vlgmr.msrb.gmra.mxu2 %vm911_vm7, %v1216_v61 }
 0x378   : > { %2035 = vmatmul.msk.bf16.vlgmr.msrb.gmra.mxu3 %vm911_vm7, %v1113_v62 }
 0x3db   : > { %v2743_v15 = vpop.f32.mrf.mxu3 }
 0x3e3   : > { %v2745_v63 = vpop.f32.mrf.mxu3 }
 0x3e4   : > { %v978_v0 = vpack.c.bf16 %v2745_v63, %v2743_v15  ;;  %v2315_v63 = vld [vmem:[%s3072_s8] ss:$0 sm:$0xff] }
 0x3eb   : > { %v1000_v1 = vpop.f32.mrf.mxu3 }
 0x3ec   : > { %v1005_v19 = vmul.f32 0.17677669, %v1000_v1 }
 0x3ee   : > { %v1007_v3 = vadd.f32 %v1005_v19, %v2719_v27 }
 0x3f0   : > { %v1234_v4 = vpop.f32.mrf.mxu2  ;;  %v1009_v6 = vsel %vm936_vm9, %v1007_v3, -inf }
 0x3f1   : > { %v1239_v7 = vmul.f32 0.17677669, %v1234_v4  ;;  %1010 = vmax.xlane.f32.xlu1 %v1009_v6 }
 0x3f3   : > { %v1002_v8 = vpop.f32.mrf.mxu3  ;;  %v1241_v9 = vadd.f32 %v1239_v7, %v2719_v27 }
 0x3f4   : > { %v1006_v10 = vmul.f32 0.17677669, %v1002_v8 }
 0x3f5   : > { %v1243_v11 = vsel %vm936_vm9, %v1241_v9, -inf }
 0x3f6   : > { %1244 = vmax.xlane.f32.xlu2 %v1243_v11  ;;  %v1008_v13 = vadd.f32 %v1006_v10, %v2724_v33 }
 0x3f8   : > { %v1236_v14 = vpop.f32.mrf.mxu2  ;;  %v1012_v16 = vsel %vm936_vm9, %v1008_v13, -inf }
 0x3f9   : > { %v1240_v17 = vmul.f32 0.17677669, %v1236_v14  ;;  %1013 = vmax.xlane.f32.xlu0 %v1012_v16 }
 0x3fb   : > { %v1131_v18 = vpop.f32.mrf.mxu3  ;;  %v1242_v21 = vadd.f32 %v1240_v17, %v2724_v33 }
 0x3fc   : > { %v1136_v22 = vmul.f32 0.17677669, %v1131_v18 }
 0x3fd   : > { %v1246_v23 = vsel %vm936_vm9, %v1242_v21, -inf }
 0x3fe   : > { %1247 = vmax.xlane.f32.xlu1 %v1246_v23  ;;  %v1138_v25 = vadd.f32 %v1136_v22, %v2719_v27 }
 0x400   : > { %v1140_v26 = vsel %vm936_vm9, %v1138_v25, -inf }
 0x401   : > { %1141 = vmax.xlane.f32.xlu0 %v1140_v26 }
 0x403   : > { %v1133_v28 = vpop.f32.mrf.mxu3 }
 0x404   : > { %v1137_v29 = vmul.f32 0.17677669, %v1133_v28 }
 0x406   : > { %v1139_v30 = vadd.f32 %v1137_v29, %v2724_v33  ;;  %v2253_v29 = vld [vmem:[%s3071_s7 + $0x18] sm:$0xff] }
 0x407   : > { %1075 = vmatpush.bf16.msrb.mxu1 %v2253_v29  ;;  %v2091_v29 = vld [vmem:[%s3075_s11 + $0x40] sm:$0xf] }
 0x408   : > { %v1143_v31 = vsel %vm936_vm9, %v1139_v30, -inf }
 0x409   : > { %1144 = vmax.xlane.f32.xlu2 %v1143_v31  ;;  %v2251_v31 = vld [vmem:[%s3071_s7 + $0x8] sm:$0xff] }
 0x421   : > { %1033 = vrot.lane.b32.xlu2 %v2712_v20, %s2408_s2 }
 0x464   : > { %v1011_v32 = vpop.xlane.xlu1 %1010 }
 0x465   : > { %v1015_v36 = vsub.f32 %v1007_v3, %v1011_v32  ;;  %v2250_v32 = vld [vmem:[%s3071_s7] sm:$0xff] }
 0x467   : > { %v1017_v27 = vmul.f32 1.442695, %v1015_v36 }
 0x469   : > { %v1245_v34 = vpop.xlane.xlu2 %1244 }
 0x46a   : > { %v1249_v35 = vsub.f32 %v1241_v9, %v1245_v34  ;;  %v2257_v34 = vld [vmem:[%s3071_s7 + $0x38] sm:$0xff] }
 0x46c   : > { %v1251_v37 = vmul.f32 1.442695, %v1249_v35  ;;  %v1014_v38 = vpop.xlane.xlu0 %1013  ;;  %v2256_v35 = vld [vmem:[%s3071_s7 + $0x30] sm:$0xff] }
 0x46d   : > { %v1016_v41 = vsub.f32 %v1008_v13, %v1014_v38  ;;  %v2255_v38 = vld [vmem:[%s3071_s7 + $0x28] sm:$0xff] }
 0x46e   : > { %2335 = vpow2.f32 %v1251_v37 }
 0x46f   : > { %2337 = vpow2.f32 %v1017_v27  ;;  %v1019_v46 = vmul.f32 1.442695, %v1016_v41 }
 0x471   : > { %v1248_v39 = vpop.xlane.xlu1 %1247 }
 0x472   : > { %v1250_v40 = vsub.f32 %v1242_v21, %v1248_v39  ;;  %v2254_v39 = vld [vmem:[%s3071_s7 + $0x20] sm:$0xff] }
 0x474   : > { %v2336_v42 = vpop.eup %2335  ;;  %v1253_v33 = vmul.f32 1.442695, %v1250_v40  ;;  %v1142_v43 = vpop.xlane.xlu0 %1141 }
 0x475   : > { %v1146_v44 = vsub.f32 %v1138_v25, %v1142_v43  ;;  %v1255_v45 = vsel %vm936_vm9, %v2336_v42, 0.0  ;;  %v2338_v48 = vpop.eup %2337 }
 0x476   : > { %2339 = vpow2.f32 %v1253_v33  ;;  %1256 = vadd.xlane.f32.xlu1 %v1255_v45  ;;  %v1021_v53 = vsel %vm936_vm9, %v2338_v48, 0.0 }
 0x477   : > { %v1148_v47 = vmul.f32 1.442695, %v1146_v44  ;;  %2341 = vpow2.f32 %v1019_v46 }
 0x479   : > { %2343 = vpow2.f32 %v1148_v47 }
 0x47c   : > { %v2340_v49 = vpop.eup %2339  ;;  %v1145_v50 = vpop.xlane.xlu2 %1144 }
 0x47d   : > { %v1147_v51 = vsub.f32 %v1139_v30, %v1145_v50  ;;  %v1258_v52 = vsel %vm936_vm9, %v2340_v49, 0.0  ;;  %v2342_v55 = vpop.eup %2341  ;;  %v2252_v30 = vld [vmem:[%s3071_s7 + $0x10] sm:$0xff] }
 0x47e   : > { %1259 = vadd.xlane.f32.xlu0 %v1258_v52  ;;  %1022 = vadd.xlane.f32.xlu1 %v1021_v53  ;;  %v1024_v58 = vsel %vm936_vm9, %v2342_v55, 0.0 }
 0x47f   : > { %v1150_v54 = vmul.f32 1.442695, %v1147_v51  ;;  %v2344_v56 = vpop.eup %2343  ;;  %1076 = vmatpush.bf16.msrb.mxu1 %v2252_v30  ;;  %v2267_v30 = vld [vmem:[%s3075_s11 + $0x44] sm:$0xf0] }
 0x480   : > { %v1152_v59 = vsel %vm936_vm9, %v2344_v56, 0.0 }
 0x481   : > { %2345 = vpow2.f32 %v1150_v54 }
 0x483   : > { %1104 = vmatpush.bf16.msra.mxu1 %v2251_v31  ;;  %v2266_v31 = vld [vmem:[%s3075_s11 + $0x44] sm:$0xf] }
 0x484   : > { %v1034_v57 = vpop.permute.xlu2 %1033 }
 0x485   : > { %1046 = vmatpush.bf16.msrb.mxu0 %v1034_v57 }
 0x486   : > { %1025 = vadd.xlane.f32.xlu0 %v1024_v58  ;;  %1153 = vadd.xlane.f32.xlu1 %v1152_v59 }
 0x487   : > { %v2346_v60 = vpop.eup %2345  ;;  %1105 = vmatpush.bf16.msra.mxu1 %v2250_v32  ;;  %v2092_v32 = vor.u32 %v2267_v30, %v2091_v29  ;;  %v2289_v30 = vld [vmem:[%s3077_s13 + $0x78] sm:$0xff] }
 0x488   : > { %v1155_v61 = vsel %vm936_vm9, %v2346_v60, 0.0 }
 0x48e   : > { %1156 = vadd.xlane.f32.xlu0 %v1155_v61 }
 0x49f   : > { %1266 = vrot.lane.b32.xlu1 %v2712_v20, %s2410_s24 }
 0x4a2   : > { %1163 = vrot.lane.b32.xlu0 %v2712_v20, %s2409_s23 }
 0x4e9   : > { %v1257_v62 = vpop.xlane.xlu1 %1256 }
 0x4f1   : > { %v1260_v1 = vpop.xlane.xlu0 %1259  ;;  %v1023_v19 = vpop.xlane.xlu1 %1022 }
 0x4f2   : > { %2347 = vrcp.f32 %v1023_v19 }
 0x4f8   : > { %v2348_v4 = vpop.eup %2347 }
 0x4f9   : > { %v1026_v3 = vpop.xlane.xlu0 %1025  ;;  %v1029_v7 = vmul.f32 %v2348_v4, %v2338_v48  ;;  %v1154_v11 = vpop.xlane.xlu1 %1153 }
 0x4fa   : > { %2349 = vrcp.f32 %v1026_v3 }
 0x4fb   : > { %2351 = vrcp.f32 %v1260_v1 }
 0x4fc   : > { %2353 = vrcp.f32 %v1257_v62 }
 0x500   : > { %v2350_v6 = vpop.eup %2349 }
 0x501   : > { %v1030_v8 = vmul.f32 %v2350_v6, %v2342_v55  ;;  %v1157_v10 = vpop.xlane.xlu0 %1156  ;;  %v2352_v20 = vpop.eup %2351  ;;  %v2115_v6 = vld [vmem:[%s3075_s11 + $0x70] sm:$0xf] }
 0x502   : > { %2355 = vrcp.f32 %v1157_v10  ;;  %v2354_v13 = vpop.eup %2353  ;;  %v1264_v16 = vmul.f32 %v2352_v20, %v2340_v49  ;;  %v2117_v10 = vld [vmem:[%s3075_s11 + $0x78] sm:$0xf0]  ;;  %v2107_v20 = vld [vmem:[%s3075_s11 + $0x60] sm:$0xf] }
 0x503   : > { %v1031_v9 = vpack.c.bf16 %v1030_v8, %v1029_v7  ;;  %2357 = vrcp.f32 %v1154_v11  ;;  %v1263_v18 = vmul.f32 %v2354_v13, %v2336_v42  ;;  %v2273_v7 = vld [vmem:[%s3075_s11 + $0x74] sm:$0xf0]  ;;  %v2272_v8 = vld [vmem:[%s3075_s11 + $0x74] sm:$0xf]  ;;  %v2271_v13 = vld [vmem:[%s3075_s11 + $0x64] sm:$0xf0] }
 0x504   : > { %v2120_v11 = vor.u32 %v2272_v8, %v2117_v10 }
 0x505   : > { %2016 = vmatmul.msk.bf16.vlgmr.msrb.gmra.mxu0 %vm936_vm9, %v1031_v9  ;;  %v1265_v23 = vpack.c.bf16 %v1264_v16, %v1263_v18  ;;  %v2116_v9 = vor.u32 %v2273_v7, %v2115_v6  ;;  %v2108_v16 = vor.u32 %v2271_v13, %v2107_v20 }
 0x506   : > { %1475 = vmatpush.bf16.msra.mxu2 %v2120_v11 }
 0x508   : > { %v2356_v14 = vpop.eup %2355 }
 0x509   : > { %v2358_v17 = vpop.eup %2357  ;;  %v1161_v22 = vmul.f32 %v2356_v14, %v2346_v60  ;;  %v2270_v14 = vld [vmem:[%s3075_s11 + $0x64] sm:$0xf] }
 0x50a   : > { %v1160_v25 = vmul.f32 %v2358_v17, %v2344_v56  ;;  %v2109_v17 = vld [vmem:[%s3075_s11 + $0x68] sm:$0xf0] }
 0x50b   : > { %v2112_v18 = vor.u32 %v2270_v14, %v2109_v17 }
 0x50c   : > { %v1162_v28 = vpack.c.bf16 %v1161_v22, %v1160_v25  ;;  %v2269_v22 = vld [vmem:[%s3075_s11 + $0x54] sm:$0xf0] }
 0x50d   : > { %1476 = vmatpush.bf16.msra.mxu2 %v2112_v18 }
 0x511   : > { %v1267_v21 = vpop.permute.xlu1 %1266 }
 0x512   : > { %1279 = vmatpush.bf16.msra.mxu3 %v1267_v21  ;;  %v2099_v21 = vld [vmem:[%s3075_s11 + $0x50] sm:$0xf] }
 0x513   : > { %v2100_v25 = vor.u32 %v2269_v22, %v2099_v21 }
 0x514   : > { %v1164_v26 = vpop.permute.xlu0 %1163 }
 0x515   : > { %1176 = vmatpush.bf16.msra.mxu0 %v1164_v26  ;;  %2047 = vmatmul.msk.bf16.vlgmr.msra.gmra.mxu3 %vm936_vm9, %v1265_v23  ;;  %v2268_v23 = vld [vmem:[%s3075_s11 + $0x54] sm:$0xf]  ;;  %v2101_v26 = vld [vmem:[%s3075_s11 + $0x58] sm:$0xf0] }
 0x518   : > { %2036 = vmatmul.msk.bf16.vlgmr.msra.gmra.mxu0 %vm936_vm9, %v1162_v28  ;;  %v2104_v28 = vor.u32 %v2268_v23, %v2101_v26  ;;  %v2317_v23 = vld [vmem:[%s3074_s10] ss:$0 sm:$0xff] }
 0x519   : > { %1308 = vmatpush.bf16.msrb.mxu0 %v2257_v34  ;;  %v2093_v34 = vld [vmem:[%s3075_s11 + $0x48] sm:$0xf0] }
 0x51a   : > { %1477 = vmatpush.bf16.msra.mxu2 %v2104_v28 }
 0x51d   : > { %1309 = vmatpush.bf16.msrb.mxu0 %v2256_v35  ;;  %v2096_v35 = vor.u32 %v2266_v31, %v2093_v34  ;;  %v2279_v31 = vld [vmem:[%s3077_s13 + $0x28] sm:$0xff]  ;;  %v640_v34 = vld [vmem:[%s3091_s27] sm:$0x3] }
 0x51f   : > { %1478 = vmatpush.bf16.msra.mxu2 %v2096_v35  ;;  %v2278_v35 = vld [vmem:[%s3077_s13 + $0x20] sm:$0xff] }
 0x521   : > { %1688 = vmatpush.bf16.msra.mxu0 %v2289_v30 }
 0x582   : > { %v1048_v36 = vpop.f32.mrf.mxu0 }
 0x58a   : > { %v1050_v37 = vpop.f32.mrf.mxu0 }
 0x58b   : > { %v1053_v27 = vpack.c.bf16 %v1050_v37, %v1048_v36  ;;  %v2083_v36 = vld [vmem:[%s3075_s11 + $0x30] sm:$0xf]  ;;  %v2265_v37 = vld [vmem:[%s3075_s11 + $0x34] sm:$0xf0] }
 0x58d   : > { %2025 = vmatmul.msk.bf16.vlgmr.msrb.gmra.mxu1 %vm911_vm7, %v1053_v27  ;;  %v2084_v27 = vor.u32 %v2265_v37, %v2083_v36  ;;  %v2287_v36 = vld [vmem:[%s3077_s13 + $0x68] sm:$0xff]  ;;  %v1377_v37 = vperm.slane %v640_v34, 0 }
 0x58e   : > { %1205 = vmatpush.bf16.msrb.mxu1 %v2255_v38  ;;  %v2264_v38 = vld [vmem:[%s3075_s11 + $0x34] sm:$0xf] }
 0x592   : > { %1206 = vmatpush.bf16.msrb.mxu1 %v2254_v39  ;;  %v2085_v39 = vld [vmem:[%s3075_s11 + $0x38] sm:$0xf0] }
 0x595   : > { %v1178_v41 = vpop.f32.mrf.mxu0 }
 0x598   : > { %v1281_v40 = vpop.f32.mrf.mxu3 }
 0x59d   : > { %2034 = vmatmul.msk.bf16.vlgmr.msra.gmra.mxu1 %vm911_vm7, %v978_v0  ;;  %v1180_v43 = vpop.f32.mrf.mxu0 }
 0x59e   : > { %v1183_v44 = vpack.c.bf16 %v1180_v43, %v1178_v41  ;;  %1461 = vmatpush.bf16.msra.mxu1 %v2116_v9  ;;  %v2075_v41 = vld [vmem:[%s3075_s11 + $0x20] sm:$0xf] }
 0x5a0   : > { %v1283_v42 = vpop.f32.mrf.mxu3 }
 0x5a1   : > { %v1286_v33 = vpack.c.bf16 %v1283_v42, %v1281_v40  ;;  %v2088_v40 = vor.u32 %v2264_v38, %v2085_v39  ;;  %v2263_v42 = vld [vmem:[%s3075_s11 + $0x24] sm:$0xf0]  ;;  %v2277_v38 = vld [vmem:[%s3077_s13 + $0x18] sm:$0xff]  ;;  %v2286_v39 = vld [vmem:[%s3077_s13 + $0x60] sm:$0xff] }
 0x5a2   : > { %1462 = vmatpush.bf16.msra.mxu1 %v2108_v16  ;;  %v2076_v43 = vor.u32 %v2263_v42, %v2075_v41  ;;  %v2316_v16 = vld [vmem:[%s3073_s9] ss:$0 sm:$0xff]  ;;  %v2276_v41 = vld [vmem:[%s3077_s13 + $0x10] sm:$0xff] }
 0x5a3   : > { %2056 = vmatmul.msk.bf16.vlgmr.msrb.gmra.mxu0 %vm911_vm7, %v1286_v33  ;;  %1479 = vmatpush.bf16.msra.mxu2 %v2088_v40  ;;  %v2262_v33 = vld [vmem:[%s3075_s11 + $0x24] sm:$0xf] }
 0x5a6   : > { %1463 = vmatpush.bf16.msra.mxu1 %v2100_v25 }
 0x5aa   : > { %1464 = vmatpush.bf16.msra.mxu1 %v2092_v32  ;;  %v2288_v32 = vld [vmem:[%s3077_s13 + $0x70] sm:$0xff] }
 0x5ab   : > { %1689 = vmatpush.bf16.msra.mxu0 %v2288_v32 }
 0x5ad   : > { %2045 = vmatmul.msk.bf16.vlgmr.msrb.gmra.mxu1 %vm911_vm7, %v1183_v44  ;;  %v2077_v44 = vld [vmem:[%s3075_s11 + $0x28] sm:$0xf0] }
 0x5ae   : > { %1465 = vmatpush.bf16.msra.mxu1 %v2084_v27 }
 0x5af   : > { %1690 = vmatpush.bf16.msra.mxu0 %v2287_v36 }
 0x5b2   : > { %1466 = vmatpush.bf16.msra.mxu1 %v2076_v43  ;;  %v2285_v43 = vld [vmem:[%s3077_s13 + $0x58] sm:$0xff] }
 0x5b3   : > { %1691 = vmatpush.bf16.msra.mxu0 %v2286_v39 }
 0x5b7   : > { %1692 = vmatpush.bf16.msra.mxu0 %v2285_v43 }
 0x60a   : > { %v1078_v45 = vpop.f32.mrf.mxu1 }
 0x612   : > { %v1080_v46 = vpop.f32.mrf.mxu1 }
 0x61a   : > { %v1107_v47 = vpop.f32.mrf.mxu1 }
 0x61b   : > { %v1108_v49 = vadd.f32 %v1107_v47, %v1078_v45  ;;  %v2080_v45 = vor.u32 %v2262_v33, %v2077_v44  ;;  %v2261_v47 = vld [vmem:[%s3075_s11 + $0x14] sm:$0xf0]  ;;  %v1378_v33 = vperm.slane %v640_v34, 1 }
 0x61d   : > { %1480 = vmatpush.bf16.msra.mxu2 %v2080_v45 }
 0x620   : > { %v1311_v50 = vpop.f32.mrf.mxu0 }
 0x622   : > { %v1109_v48 = vpop.f32.mrf.mxu1 }
 0x623   : > { %v1110_v53 = vadd.f32 %v1109_v48, %v1080_v46  ;;  %v2067_v46 = vld [vmem:[%s3075_s11 + $0x10] sm:$0xf]  ;;  %v2260_v48 = vld [vmem:[%s3075_s11 + $0x14] sm:$0xf] }
 0x628   : > { %v1313_v57 = vpop.f32.mrf.mxu0 }
 0x62a   : > { %v1208_v51 = vpop.f32.mrf.mxu1 }
 0x62b   : > { %v1213_v52 = vadd.f32 %v1208_v51, %v1108_v49  ;;  %v2068_v49 = vor.u32 %v2261_v47, %v2067_v46  ;;  %v2059_v51 = vld [vmem:[%s3075_s11] sm:$0xf]  ;;  %v2275_v46 = vld [vmem:[%s3077_s13 + $0x8] sm:$0xff] }
 0x62d   : > { %v1316_v15 = vadd.f32 %v1311_v50, %v1213_v52  ;;  %v2069_v50 = vld [vmem:[%s3075_s11 + $0x18] sm:$0xf0]  ;;  %v2259_v52 = vld [vmem:[%s3075_s11 + $0x4] sm:$0xf0]  ;;  %1467 = vmatpush.bf16.msra.mxu1 %v2068_v49  ;;  %v2284_v49 = vld [vmem:[%s3077_s13 + $0x50] sm:$0xff] }
 0x62e   : > { %1693 = vmatpush.bf16.msra.mxu0 %v2284_v49 }
 0x62f   : > { %v1318_v0 = vadd.f32 %v1316_v15, %v2531_v2 }
 0x631   : > { %v2811_v54 = vadd.f32 %v2315_v63, %v1318_v0  ;;  %v2258_v0 = vld [vmem:[%s3075_s11 + $0x4] sm:$0xf] }
 0x632   : > { %v1210_v55 = vpop.f32.mrf.mxu1 }
 0x633   : > { %v1214_v56 = vadd.f32 %v1210_v55, %v1110_v53  ;;  %1325 = vadd.xlane.f32.xlu2 %v2811_v54  ;;  %v2061_v53 = vld [vmem:[%s3075_s11 + $0x8] sm:$0xf0] }
 0x635   : > { %v1317_v58 = vadd.f32 %v1313_v57, %v1214_v56  ;;  %v2060_v56 = vor.u32 %v2259_v52, %v2059_v51  ;;  %v2064_v57 = vor.u32 %v2258_v0, %v2061_v53  ;;  %v2274_v52 = vld [vmem:[%s3077_s13] sm:$0xff]  ;;  %v2283_v0 = vld [vmem:[%s3077_s13 + $0x48] sm:$0xff] }
 0x636   : > { %1694 = vmatpush.bf16.msra.mxu0 %v2283_v0 }
 0x637   : > { %v1319_v59 = vadd.f32 %v1317_v58, %v2537_v5  ;;  %1468 = vmatpush.bf16.msra.mxu1 %v2060_v56 }
 0x639   : > { %v2815_v60 = vadd.f32 %v2315_v63, %v1319_v59  ;;  %v2072_v63 = vor.u32 %v2260_v48, %v2069_v50 }
 0x63b   : > { %1327 = vadd.xlane.f32.xlu0 %v2815_v60  ;;  %1481 = vmatpush.bf16.msra.mxu2 %v2072_v63 }
 0x63f   : > { %1482 = vmatpush.bf16.msra.mxu2 %v2064_v57 }
 0x6a6   : > { %v1326_v61 = vpop.xlane.xlu2 %1325 }
 0x6a7   : > { %v1329_v62 = vmul.f32 %v1326_v61, %v2540_v12 }
 0x6a9   : > { %v2820_v2 = vsub.f32 %v2811_v54, %v1329_v62 }
 0x6ab   : > { %v1333_v1 = vmul.f32 %v2820_v2, %v2820_v2 }
 0x6ad   : > { %1335 = vadd.xlane.f32.xlu1 %v1333_v1 }
 0x6ae   : > { %v1328_v19 = vpop.xlane.xlu0 %1327 }
 0x6af   : > { %v1330_v3 = vmul.f32 %v1328_v19, %v2540_v12 }
 0x6b1   : > { %v2826_v4 = vsub.f32 %v2815_v60, %v1330_v3 }
 0x6b3   : > { %v1334_v5 = vmul.f32 %v2826_v4, %v2826_v4 }
 0x6b5   : > { %1337 = vadd.xlane.f32.xlu2 %v1334_v5 }
 0x720   : > { %v1336_v15 = vpop.xlane.xlu1 %1335 }
 0x721   : > { %v1339_v55 = vmul.f32 %v1336_v15, %v2540_v12 }
 0x723   : > { %v1341_v58 = vadd.f32 1e-05, %v1339_v55 }
 0x725   : > { %2359 = vrsqrt.f32 %v1341_v58  ;;  %vm1349_vm12 = vweird.f32 %v1341_v58 }
 0x728   : > { %v1338_v59 = vpop.xlane.xlu2 %1337 }
 0x729   : > { %v1340_v61 = vmul.f32 %v1338_v59, %v2540_v12  ;;  %v2282_v59 = vld [vmem:[%s3077_s13 + $0x40] sm:$0xff] }
 0x72a   : > { %1695 = vmatpush.bf16.msra.mxu0 %v2282_v59 }
 0x72b   : > { %v2360_v62 = vpop.eup %2359  ;;  %v1342_v1 = vadd.f32 1e-05, %v1340_v61 }
 0x72c   : > { %v1344_v19 = vmul.f32 %v2360_v62, %v1341_v58  ;;  %vm1350_vm11 = vweird.f32 %v2360_v62 }
 0x72d   : > { %2361 = vrsqrt.f32 %v1342_v1  ;;  %vm1351_vm13 = vmor %vm1349_vm12, %vm1350_vm11  ;;  %vm1359_vm15 = vweird.f32 %v1342_v1 }
 0x72e   : > { %v1345_v3 = vmul.f32 %v2360_v62, %v1344_v19 }
 0x730   : > { %v1346_v5 = vmul.f32 0.5, %v1345_v3 }
 0x732   : > { %v1347_v6 = vsub.f32 1.5, %v1346_v5 }
 0x733   : > { %v2362_v7 = vpop.eup %2361 }
 0x734   : > { %v1348_v8 = vmul.f32 %v2360_v62, %v1347_v6  ;;  %v1354_v9 = vmul.f32 %v2362_v7, %v1342_v1  ;;  %vm1360_vm14 = vweird.f32 %v2362_v7 }
 0x735   : > { %vm1361_vm0 = vmor %vm1359_vm15, %vm1360_vm14 }
 0x736   : > { %v1355_v10 = vmul.f32 %v2362_v7, %v1354_v9  ;;  %v1352_v11 = vsel %vm1351_vm13, %v2360_v62, %v1348_v8 }
 0x737   : > { %v1363_v14 = vmul.f32 %v1352_v11, %v2820_v2  ;;  %v2281_v2 = vld [vmem:[%s3077_s13 + $0x38] sm:$0xff] }
 0x738   : > { %v1356_v20 = vmul.f32 0.5, %v1355_v10  ;;  %1674 = vmatpush.bf16.msrb.mxu3 %v2281_v2 }
 0x739   : > { %v1368_v22 = vmul.f32 %v2316_v16, %v1363_v14 }
 0x73a   : > { %v1357_v13 = vsub.f32 1.5, %v1356_v20 }
 0x73b   : > { %v1373_v26 = vadd.f32 %v2317_v23, %v1368_v22 }
 0x73c   : > { %v1358_v17 = vmul.f32 %v2362_v7, %v1357_v13 }
 0x73e   : > { %v1362_v18 = vsel %vm1361_vm0, %v2362_v7, %v1358_v17 }
 0x73f   : > { %v1364_v21 = vmul.f32 %v1362_v18, %v2826_v4  ;;  %v2280_v4 = vld [vmem:[%s3077_s13 + $0x30] sm:$0xff] }
 0x740   : > { %1675 = vmatpush.bf16.msrb.mxu3 %v2280_v4 }
 0x741   : > { %v1369_v25 = vmul.f32 %v2316_v16, %v1364_v21 }
 0x743   : > { %v1374_v28 = vadd.f32 %v2317_v23, %v1369_v25 }
 0x744   : > { %1676 = vmatpush.bf16.msrb.mxu3 %v2279_v31 }
 0x745   : > { %v1375_v29 = vpack.c.bf16 %v1374_v28, %v1373_v26 }
 0x747   : > { %1469 = vmatmul.bf16.vlgmr.msra.gmra.mxu1 %v1375_v29  ;;  %1483 = vmatmul.bf16.vlgmr.msra.gmra.mxu2 %v1375_v29 }
 0x748   : > { %1677 = vmatpush.bf16.msrb.mxu3 %v2278_v35 }
 0x74c   : > { %1678 = vmatpush.bf16.msrb.mxu3 %v2277_v38 }
 0x750   : > { %1679 = vmatpush.bf16.msrb.mxu3 %v2276_v41  ;;  %v2292_v41 = vld [vmem:[%s3081_s17 + $0x10] sm:$0xff] }
 0x754   : > { %1680 = vmatpush.bf16.msrb.mxu3 %v2275_v46 }
 0x758   : > { %1681 = vmatpush.bf16.msrb.mxu3 %v2274_v52 }
 0x7c4   : > { %v1470_v27 = vpop.f32.mrf.mxu1 }
 0x7c5   : > { %v2966_v40 = vadd.f32 %v1470_v27, %v1377_v37 }
 0x7c7   : > { %v2121_v42 = vmul.f32 -1.702, %v2966_v40 }
 0x7c9   : > { %v1497_v44 = vmul.f32 1.442695, %v2121_v42 }
 0x7ca   : > { %v1484_v45 = vpop.f32.mrf.mxu2 }
 0x7cb   : > { %2363 = vpow2.f32 %v1497_v44  ;;  %v2978_v47 = vadd.f32 %v1484_v45, %v1378_v33 }
 0x7cc   : > { %v1472_v48 = vpop.f32.mrf.mxu1 }
 0x7cd   : > { %v2122_v50 = vmul.f32 -1.702, %v2978_v47  ;;  %v2984_v51 = vadd.f32 %v1472_v48, %v1377_v37 }
 0x7cf   : > { %v1499_v15 = vmul.f32 1.442695, %v2122_v50  ;;  %v2123_v63 = vmul.f32 -1.702, %v2984_v51 }
 0x7d1   : > { %v2364_v53 = vpop.eup %2363  ;;  %2365 = vpow2.f32 %v1499_v15  ;;  %v1501_v55 = vmul.f32 1.442695, %v2123_v63 }
 0x7d2   : > { %v1505_v56 = vadd.f32 1.0, %v2364_v53  ;;  %v1486_v57 = vpop.f32.mrf.mxu2 }
 0x7d3   : > { %2367 = vpow2.f32 %v1501_v55  ;;  %v2993_v58 = vadd.f32 %v1486_v57, %v1378_v33 }
 0x7d4   : > { %2369 = vrcp.f32 %v1505_v56  ;;  %v1518_v16 = vand.u32 2147483647, %v1505_v56  ;;  %v1520_v22 = vand.u32 2147483648, %v1505_v56  ;;  %vm1514_vm2 = vweird.f32 %v1505_v56 }
 0x7d5   : > { %v2124_v61 = vmul.f32 -1.702, %v2993_v58 }
 0x7d6   : > { %vm1519_vm4 = vcmp.eq.f32.partialorder %v1518_v16, 8.507059e+37  ;;  %v1521_v31 = vor.u32 1.1754944e-38, %v1520_v22 }
 0x7d7   : > { %v2366_v62 = vpop.eup %2365  ;;  %v1503_v1 = vmul.f32 1.442695, %v2124_v61 }
 0x7d8   : > { %v1506_v19 = vadd.f32 1.0, %v2366_v62 }
 0x7d9   : > { %v2368_v3 = vpop.eup %2367  ;;  %2371 = vpow2.f32 %v1503_v1 }
 0x7da   : > { %v2370_v5 = vpop.eup %2369  ;;  %2373 = vrcp.f32 %v1506_v19  ;;  %v1507_v7 = vadd.f32 1.0, %v2368_v3  ;;  %vm1529_vm7 = vweird.f32 %v1506_v19  ;;  %v1535_v35 = vand.u32 2147483648, %v1506_v19 }
 0x7db   : > { %v1510_v6 = vmul.f32 %v2370_v5, %v1505_v56  ;;  %vm1515_vm1 = vweird.f32 %v2370_v5  ;;  %v1533_v38 = vand.u32 2147483647, %v1506_v19 }
 0x7dc   : > { %2375 = vrcp.f32 %v1507_v7  ;;  %vm2999_vm3 = vmor %vm1514_vm2, %vm1515_vm1  ;;  %v1550_v28 = vand.u32 2147483648, %v1507_v7  ;;  %v1548_v30 = vand.u32 2147483647, %v1507_v7  ;;  %vm1544_vm8 = vweird.f32 %v1507_v7 }
 0x7dd   : > { %v1511_v8 = vsub.f32 1.0, %v1510_v6  ;;  %v1536_v49 = vor.u32 1.1754944e-38, %v1535_v35  ;;  %vm1534_vm14 = vcmp.eq.f32.partialorder %v1533_v38, 8.507059e+37  ;;  %v2319_v35 = vld [vmem:[%s3079_s15] ss:$0 sm:$0xff] }
 0x7de   : > { %v1551_v27 = vor.u32 1.1754944e-38, %v1550_v28  ;;  %vm1549_vm12 = vcmp.eq.f32.partialorder %v1548_v30, 8.507059e+37  ;;  %v2295_v28 = vld [vmem:[%s3081_s17 + $0x28] sm:$0xff] }
 0x7df   : > { %v2372_v9 = vpop.eup %2371  ;;  %v1512_v11 = vmul.f32 %v2370_v5, %v1511_v8 }
 0x7e0   : > { %v2374_v10 = vpop.eup %2373  ;;  %v1508_v20 = vadd.f32 1.0, %v2372_v9 }
 0x7e1   : > { %v1525_v13 = vmul.f32 %v2374_v10, %v1506_v19  ;;  %v1513_v18 = vadd.f32 %v2370_v5, %v1512_v11  ;;  %vm1530_vm6 = vweird.f32 %v2374_v10 }
 0x7e2   : > { %2377 = vrcp.f32 %v1508_v20  ;;  %v2376_v14 = vpop.eup %2375  ;;  %vm3005_vm11 = vmor %vm1529_vm7, %vm1530_vm6  ;;  %v1563_v33 = vand.u32 2147483647, %v1508_v20  ;;  %v1565_v43 = vand.u32 2147483648, %v1508_v20  ;;  %vm1559_vm15 = vweird.f32 %v1508_v20 }
 0x7e3   : > { %v1526_v17 = vsub.f32 1.0, %v1525_v13  ;;  %v1540_v21 = vmul.f32 %v2376_v14, %v1507_v7  ;;  %v1517_v2 = vsel %vm2999_vm3, %v2370_v5, %v1513_v18  ;;  %vm1545_vm5 = vweird.f32 %v2376_v14 }
 0x7e4   : > { %v1522_v37 = vsel %vm1519_vm4, %v1521_v31, %v1517_v2  ;;  %vm1546_vm10 = vmor %vm1544_vm8, %vm1545_vm5  ;;  %v1566_v0 = vor.u32 1.1754944e-38, %v1565_v43  ;;  %vm1564_vm1 = vcmp.eq.f32.partialorder %v1563_v33, 8.507059e+37 }
 0x7e5   : > { %v1527_v23 = vmul.f32 %v2374_v10, %v1526_v17  ;;  %v1541_v25 = vsub.f32 1.0, %v1540_v21  ;;  %v1569_v48 = vmul.f32 %v1522_v37, %v2966_v40  ;;  %v2296_v21 = vld [vmem:[%s3081_s17 + $0x30] sm:$0xff] }
 0x7e7   : > { %v1542_v4 = vmul.f32 %v2376_v14, %v1541_v25  ;;  %v1528_v32 = vadd.f32 %v2374_v10, %v1527_v23 }
 0x7e8   : > { %v2378_v29 = vpop.eup %2377 }
 0x7e9   : > { %v1555_v34 = vmul.f32 %v2378_v29, %v1508_v20  ;;  %v1543_v36 = vadd.f32 %v2376_v14, %v1542_v4  ;;  %v1532_v44 = vsel %vm3005_vm11, %v2374_v10, %v1528_v32  ;;  %vm1560_vm13 = vweird.f32 %v2378_v29  ;;  %v2294_v4 = vld [vmem:[%s3081_s17 + $0x20] sm:$0xff] }
 0x7ea   : > { %v1537_v15 = vsel %vm1534_vm14, %v1536_v49, %v1532_v44  ;;  %vm1561_vm0 = vmor %vm1559_vm15, %vm1560_vm13 }
 0x7eb   : > { %v1556_v39 = vsub.f32 1.0, %v1555_v34  ;;  %v1547_v42 = vsel %vm1546_vm10, %v2376_v14, %v1543_v36  ;;  %v1570_v56 = vmul.f32 %v1537_v15, %v2978_v47  ;;  %v2293_v34 = vld [vmem:[%s3081_s17 + $0x18] sm:$0xff]  ;;  %v2411_v15 = vmov 0.0  }
 0x7ec   : > { %v1552_v45 = vsel %vm1549_vm12, %v1551_v27, %v1547_v42  ;;  %v2320_v27 = vld [vmem:[%s3080_s16] ss:$0 sm:$0xff] }
 0x7ed   : > { %v1557_v46 = vmul.f32 %v2378_v29, %v1556_v39  ;;  %v1571_v50 = vmul.f32 %v1552_v45, %v2984_v51  ;;  %v2318_v51 = vld [vmem:[%s3078_s14] ss:$0 sm:$0xff]  ;;  %v2291_v45 = vld [vmem:[%s3081_s17 + $0x8] sm:$0xff] }
 0x7ef   : > { %v1558_v52 = vadd.f32 %v2378_v29, %v1557_v46  ;;  %v1573_v63 = vpack.c.bf16 %v1571_v50, %v1569_v48  ;;  %v1757_v46 = vstv %s1756_s28 }
 0x7f0   : > { %vm1758_vm8 = vcmp.eq.s32.totalorder %v2716_v24, %v1757_v46 }
 0x7f1   : > { %v1562_v53 = vsel %vm1561_vm0, %v2378_v29, %v1558_v52  ;;  %1682 = vmatmul.bf16.vlgmr.msrb.gmra.mxu3 %v1573_v63  ;;  %v2189_v63 = vsel %vm1758_vm8, 1.0, %v2411_v15 }
 0x7f2   : > { %v1567_v55 = vsel %vm1564_vm1, %v1566_v0, %v1562_v53  ;;  %v2290_v0 = vld [vmem:[%s3081_s17] sm:$0xff] }
 0x7f3   : > { %v1572_v57 = vmul.f32 %v1567_v55, %v2993_v58 }
 0x7f5   : > { %v1574_v59 = vpack.c.bf16 %v1572_v57, %v1570_v56 }
 0x7f7   : > { %1696 = vmatmul.bf16.vlgmr.msra.gmra.mxu0 %v1574_v59 }
 0x874   : > { %v1683_v40 = vpop.f32.mrf.mxu3  ;;  %v1697_v61 = vpop.f32.mrf.mxu0 }
 0x875   : > { %v1684_v5 = vadd.f32 %v2318_v51, %v1683_v40 }
 0x877   : > { %v1698_v7 = vadd.f32 %v1697_v61, %v1684_v5 }
 0x879   : > { %v1702_v47 = vadd.f32 %v1698_v7, %v2811_v54  ;;  %v2297_v54 = vld [vmem:[%s3081_s17 + $0x38] sm:$0xff] }
 0x87a   : > { %1849 = vmatpush.bf16.msrb.mxu2 %v2297_v54 }
 0x87c   : > { %v1685_v62 = vpop.f32.mrf.mxu3  ;;  %v1699_v19 = vpop.f32.mrf.mxu0 }
 0x87d   : > { %v1686_v1 = vadd.f32 %v2318_v51, %v1685_v62 }
 0x87e   : > { %1850 = vmatpush.bf16.msrb.mxu2 %v2296_v21 }
 0x87f   : > { %v1700_v3 = vadd.f32 %v1699_v19, %v1686_v1 }
 0x881   : > { %v1703_v6 = vadd.f32 %v1700_v3, %v2815_v60 }
 0x882   : > { %1851 = vmatpush.bf16.msrb.mxu2 %v2295_v28 }
 0x883   : > { %1708 = vadd.xlane.f32.xlu2 %v1703_v6 }
 0x886   : > { %1852 = vmatpush.bf16.msrb.mxu2 %v2294_v4 }
 0x88a   : > { %1853 = vmatpush.bf16.msrb.mxu2 %v2293_v34 }
 0x88b   : > { %1706 = vadd.xlane.f32.xlu2 %v1702_v47 }
 0x88e   : > { %1854 = vmatpush.bf16.msrb.mxu2 %v2292_v41 }
 0x892   : > { %1855 = vmatpush.bf16.msrb.mxu2 %v2291_v45 }
 0x896   : > { %1856 = vmatpush.bf16.msrb.mxu2 %v2290_v0 }
 0x8f6   : > { %v1709_v58 = vpop.xlane.xlu2 %1708 }
 0x8f7   : > { %v1711_v8 = vmul.f32 %v1709_v58, %v2540_v12 }
 0x8f9   : > { %v1713_v9 = vsub.f32 %v1703_v6, %v1711_v8 }
 0x8fb   : > { %v1715_v10 = vmul.f32 %v1713_v9, %v1713_v9 }
 0x8fd   : > { %1718 = vadd.xlane.f32.xlu0 %v1715_v10 }
 0x8fe   : > { %v1707_v11 = vpop.xlane.xlu2 %1706 }
 0x8ff   : > { %v1710_v20 = vmul.f32 %v1707_v11, %v2540_v12 }
 0x901   : > { %v1712_v13 = vsub.f32 %v1702_v47, %v1710_v20 }
 0x903   : > { %v1714_v14 = vmul.f32 %v1712_v13, %v1712_v13 }
 0x905   : > { %1716 = vadd.xlane.f32.xlu1 %v1714_v14 }
 0x970   : > { %v1719_v16 = vpop.xlane.xlu0 %1718 }
 0x971   : > { %v1721_v60 = vmul.f32 %v1719_v16, %v2540_v12 }
 0x973   : > { %v1723_v17 = vadd.f32 1e-05, %v1721_v60 }
 0x975   : > { %2379 = vrsqrt.f32 %v1723_v17  ;;  %vm1740_vm3 = vweird.f32 %v1723_v17 }
 0x978   : > { %v1717_v18 = vpop.xlane.xlu1 %1716 }
 0x979   : > { %v1720_v22 = vmul.f32 %v1717_v18, %v2540_v12 }
 0x97b   : > { %v2380_v23 = vpop.eup %2379  ;;  %v1722_v25 = vadd.f32 1e-05, %v1720_v22 }
 0x97c   : > { %v1735_v26 = vmul.f32 %v2380_v23, %v1723_v17  ;;  %vm1741_vm2 = vweird.f32 %v2380_v23 }
 0x97d   : > { %2381 = vrsqrt.f32 %v1722_v25  ;;  %vm1742_vm4 = vmor %vm1740_vm3, %vm1741_vm2  ;;  %vm1730_vm6 = vweird.f32 %v1722_v25 }
 0x97e   : > { %v1736_v29 = vmul.f32 %v2380_v23, %v1735_v26 }
 0x980   : > { %v1737_v2 = vmul.f32 0.5, %v1736_v29 }
 0x982   : > { %v1738_v30 = vsub.f32 1.5, %v1737_v2 }
 0x983   : > { %v2382_v12 = vpop.eup %2381 }
 0x984   : > { %v1739_v31 = vmul.f32 %v2380_v23, %v1738_v30  ;;  %v1725_v32 = vmul.f32 %v2382_v12, %v1722_v25  ;;  %vm1731_vm5 = vweird.f32 %v2382_v12 }
 0x985   : > { %vm1732_vm7 = vmor %vm1730_vm6, %vm1731_vm5 }
 0x986   : > { %v1743_v36 = vsel %vm1742_vm4, %v2380_v23, %v1739_v31  ;;  %v1726_v37 = vmul.f32 %v2382_v12, %v1725_v32 }
 0x987   : > { %v1745_v38 = vmul.f32 %v1743_v36, %v1713_v9 }
 0x988   : > { %v1727_v39 = vmul.f32 0.5, %v1726_v37 }
 0x989   : > { %v1750_v42 = vmul.f32 %v2319_v35, %v1745_v38 }
 0x98a   : > { %v1728_v33 = vsub.f32 1.5, %v1727_v39 }
 0x98b   : > { %v1755_v43 = vadd.f32 %v2320_v27, %v1750_v42 }
 0x98c   : > { %v1729_v44 = vmul.f32 %v2382_v12, %v1728_v33 }
 0x98d   : > { %1778 = vmatpush.msra.mxu3 %v1755_v43 }
 0x98e   : > { %v1733_v48 = vsel %vm1732_vm7, %v2382_v12, %v1729_v44 }
 0x98f   : > { %v1744_v49 = vmul.f32 %v1733_v48, %v1712_v13 }
 0x991   : > { %v1749_v50 = vmul.f32 %v2319_v35, %v1744_v49 }
 0x993   : > { %v1754_v52 = vadd.f32 %v2320_v27, %v1749_v50 }
 0x995   : > { %1779 = vmatpush.msra.mxu3 %v1754_v52 }
 0x996   : > { %2190 = vmatmul.msk.f32.vlgmr.msra.gmra.mxu3 %vm936_vm9, %v2189_v63 }
 0xa19   : > { %v1781_v53 = vpop.f32.mrf.mxu3 }
 0xa1a   : > { %v1800_v55 = vpack.c.bf16 %v1781_v53, %v1781_v53 }
 0xa1c   : > { %1857 = vmatmul.bf16.vlgmr.msrb.gmra.mxu2 %v1800_v55 }
 0xa9f   : > { %v1858_v24 = vpop.f32.mrf.mxu2 }
 0xaa0   : > { %1862 = vst [vmem:[%s553_s26] sm:$0x1] %v1858_v24 }
 0xaa7   : > { %v1860_v56 = vpop.f32.mrf.mxu2 }
 0xaa8 PF: > { %s36_s0 = sadd.s32 1, %s2403_s0  }
 0xaa9   : > { %p33_p4 = scmp.ge.s32.totalorder %s36_s0, 14  }
 0xaab   :  { %35 = sbr.rel (!%p33_p4) target bundleno = 17 (0x11), region = 118 }

// kernel: nega_prompt_clip_forward.4
= control target key start
LH: loop header
LB: loop body
LE: loop exit
PB: predicated region body
PF: predicated region fallthrough
CT: control target
= control target key end

     0   :  { %s3764_s0 = inlined_call_operand.vmem [shape: f32[2,8,768], index: 0, kind: input, shape index: {}]   ;;  %s3765_s1 = inlined_call_operand.vmem [shape: f32[8,768], index: 1, kind: input, shape index: {}]   ;;  %s3766_s2 = inlined_call_operand.vmem [shape: f32[8,128], index: 2, kind: input, shape index: {}]   ;;  %s3767_s3 = inlined_call_operand.vmem [shape: bf16[768,128], index: 3, kind: input, shape index: {}]   ;;  %s3768_s4 = inlined_call_operand.vmem [shape: f32[1,128], index: 4, kind: input, shape index: {}]   ;;  %s3769_s5 = inlined_call_operand.vmem [shape: f32[1,128], index: 5, kind: input, shape index: {}]   ;;  %s3770_s6 = inlined_call_operand.vmem [shape: f32[1,128], index: 6, kind: input, shape index: {}]   ;;  %s3771_s7 = inlined_call_operand.vmem [shape: f32[1,128], index: 7, kind: input, shape index: {}]   ;;  %s3772_s8 = inlined_call_operand.vmem [shape: bf16[128,384], index: 8, kind: input, shape index: {}]   ;;  %s3773_s9 = inlined_call_operand.vmem [shape: f32[1,384], index: 9, kind: input, shape index: {}]   ;;  %s3774_s10 = inlined_call_operand.vmem [shape: bf16[128,128], index: 10, kind: input, shape index: {}]   ;;  %s3775_s11 = inlined_call_operand.vmem [shape: f32[1,128], index: 11, kind: input, shape index: {}]   ;;  %s3776_s12 = inlined_call_operand.vmem [shape: f32[1,128], index: 12, kind: input, shape index: {}]   ;;  %s3777_s13 = inlined_call_operand.vmem [shape: f32[1,128], index: 13, kind: input, shape index: {}]   ;;  %s3778_s14 = inlined_call_operand.vmem [shape: bf16[128,256], index: 14, kind: input, shape index: {}]   ;;  %s3779_s15 = inlined_call_operand.vmem [shape: f32[1,256], index: 15, kind: input, shape index: {}]   ;;  %s3780_s16 = inlined_call_operand.vmem [shape: bf16[256,128], index: 16, kind: input, shape index: {}]   ;;  %s3781_s17 = inlined_call_operand.vmem [shape: f32[1,128], index: 17, kind: input, shape index: {}]   ;;  %s3782_s18 = inlined_call_operand.vmem [shape: f32[1,128], index: 18, kind: input, shape index: {}]   ;;  %s3783_s19 = inlined_call_operand.vmem [shape: f32[1,128], index: 19, kind: input, shape index: {}]   ;;  %s3784_s20 = inlined_call_operand.vmem [shape: bf16[128,128], index: 20, kind: input, shape index: {}]   ;;  %s3785_s21 = inlined_call_operand.vmem [shape: f32[2,1,128], index: 21, kind: output, shape index: {}]  }
   0x1   :  { %3788 = sst [smem:[#allocation2_spill]] %s3764_s0 }
   0x2   :  { %3789 = sst [smem:[#allocation3_spill]] %s3765_s1 }
   0x3   :  { %3790 = sst [smem:[#allocation4_spill]] %s3766_s2  ;;  %s3112_s2 = smov 0  }
   0x4   :  { %3791 = sst [smem:[#allocation5_spill]] %s3767_s3 }
   0x5   :  { %3792 = sst [smem:[#allocation6_spill]] %s3768_s4 }
   0x6   :  { %3793 = sst [smem:[#allocation7_spill]] %s3769_s5 }
   0x7 LB: > { %s2311_s25 = sadd.s32 4294967295, %s2995_s2   ;;  %p2315_p0 = scmp.ge.s32.totalorder %s2995_s2, 1  ;;  %s2995_s2 = sphi %s3112_s2, %s31_s2  }
   0x8   : > { %p587_p1 = scmp.lt.s32.totalorder %s2995_s2, 3 }
   0xa   : > { %p588_p2 = pnand %p2315_p0, %p587_p1 }
   0xb   : > { %s3794_s3 = sld [smem:[#allocation5_spill]] (!%p588_p2)  ;;  %p645_p3 = scmp.lt.s32.totalorder (!%p588_p2), %s2311_s25, 1 }
   0xc   : > { %591 = sbr.rel (%p588_p2) target bundleno = 3075 (0xc03), region = 104  ;;  %s3795_s24 = sld [smem:[#allocation2_spill]] (!%p588_p2) }
   0xd   : > { %s3797_s5 = sld [smem:[#allocation4_spill]] (!%p588_p2)  ;;  %s2998_s30 = smov (!%p588_p2), 96  }
   0xe   : > { %s3798_s23 = sld [smem:[#allocation6_spill]] (!%p588_p2)  ;;  %s3001_s22 = smov (!%p588_p2), 64  }
   0xf   : > { %s3799_s29 = sld [smem:[#allocation7_spill]] (!%p588_p2) }
  0x11   : > { %v2820_v0 = vld [vmem:[%s3794_s3 + $0x38] sm:$0xff]  ;;  %v2819_v2 = vld [vmem:[%s3794_s3 + $0x30] sm:$0xff]  ;;  %v2818_v8 = vld [vmem:[%s3794_s3 + $0x28] sm:$0xff]  ;;  %s3801_s25 = smov (!%p645_p3, %s2311_s25), 1  ;;  %vm1531_vm7 = vcmask 1043456   ;;  %vm1492_vm8 = vcmask 261120  }
  0x12   : > { %v2828_v1 = vld [vmem:[%s3794_s3 + $0x78] sm:$0xff]  ;;  %1063 = vmatpush.bf16.msra.mxu0 %v2820_v0  ;;  %v2827_v3 = vld [vmem:[%s3794_s3 + $0x70] sm:$0xff]  ;;  %v2826_v9 = vld [vmem:[%s3794_s3 + $0x68] sm:$0xff]  ;;  %s2933_s26 = smul.u32 48, %s3801_s25  ;;  %vm1514_vm10 = vcmask 64512  }
  0x13   : > { %1076 = vmatpush.bf16.msra.mxu1 %v2828_v1  ;;  %v2836_v4 = vld [vmem:[%s3794_s3 + $0xb8] sm:$0xff]  ;;  %v2835_v6 = vld [vmem:[%s3794_s3 + $0xb0] sm:$0xff]  ;;  %v2834_v10 = vld [vmem:[%s3794_s3 + $0xa8] sm:$0xff] }
  0x14   : > { %v2844_v5 = vld [vmem:[%s3794_s3 + $0xf8] sm:$0xff]  ;;  %1089 = vmatpush.bf16.msra.mxu2 %v2836_v4  ;;  %v2843_v7 = vld [vmem:[%s3794_s3 + $0xf0] sm:$0xff]  ;;  %v2842_v11 = vld [vmem:[%s3794_s3 + $0xe8] sm:$0xff]  ;;  %s3196_s27 = scalar_lea.vmem %s3795_s24, %s2933_s26  ;;  %s3796_s24 = sld [smem:[#allocation3_spill]] }
  0x15   : > { %1102 = vmatpush.bf16.msra.mxu3 %v2844_v5  ;;  %v2817_v12 = vld [vmem:[%s3794_s3 + $0x20] sm:$0xff]  ;;  %v2816_v16 = vld [vmem:[%s3794_s3 + $0x18] sm:$0xff]  ;;  %v2815_v18 = vld [vmem:[%s3794_s3 + $0x10] sm:$0xff] }
  0x16   : > { %1064 = vmatpush.bf16.msra.mxu0 %v2819_v2  ;;  %v2825_v13 = vld [vmem:[%s3794_s3 + $0x60] sm:$0xff]  ;;  %v2824_v17 = vld [vmem:[%s3794_s3 + $0x58] sm:$0xff]  ;;  %v2823_v21 = vld [vmem:[%s3794_s3 + $0x50] sm:$0xff] }
  0x17   : > { %1077 = vmatpush.bf16.msra.mxu1 %v2827_v3  ;;  %v2833_v14 = vld [vmem:[%s3794_s3 + $0xa0] sm:$0xff]  ;;  %v2832_v19 = vld [vmem:[%s3794_s3 + $0x98] sm:$0xff]  ;;  %v2831_v22 = vld [vmem:[%s3794_s3 + $0x90] sm:$0xff] }
  0x18   : > { %1090 = vmatpush.bf16.msra.mxu2 %v2835_v6  ;;  %v2841_v15 = vld [vmem:[%s3794_s3 + $0xe0] sm:$0xff]  ;;  %v2840_v20 = vld [vmem:[%s3794_s3 + $0xd8] sm:$0xff]  ;;  %v2839_v23 = vld [vmem:[%s3794_s3 + $0xd0] sm:$0xff] }
  0x19   : > { %1103 = vmatpush.bf16.msra.mxu3 %v2843_v7  ;;  %v2814_v24 = vld [vmem:[%s3794_s3 + $0x8] sm:$0xff]  ;;  %v654_v26 = vld [vmem:[%s3196_s27] sm:$0xff]  ;;  %v656_v32 = vld [vmem:[%s3196_s27 + $0x10] sm:$0xff] }
  0x1a   : > { %1065 = vmatpush.bf16.msra.mxu0 %v2818_v8  ;;  %v2822_v25 = vld [vmem:[%s3794_s3 + $0x48] sm:$0xff]  ;;  %v660_v27 = vld [vmem:[%s3796_s24] sm:$0xff]  ;;  %v662_v35 = vld [vmem:[%s3796_s24 + $0x10] sm:$0xff] }
  0x1b   : > { %1078 = vmatpush.bf16.msra.mxu1 %v2826_v9  ;;  %v655_v28 = vld [vmem:[%s3196_s27 + $0x8] sm:$0xff]  ;;  %v666_v33 = vadd.f32 %v660_v27, %v654_v26  ;;  %v657_v36 = vld [vmem:[%s3196_s27 + $0x18] sm:$0xff]  ;;  %v2813_v38 = vld [vmem:[%s3794_s3] sm:$0xff]  ;;  %v668_v44 = vadd.f32 %v662_v35, %v656_v32  ;;  %v2997_v27 = vmov 128.0  }
  0x1c   : > { %1091 = vmatpush.bf16.msra.mxu2 %v2834_v10  ;;  %v661_v29 = vld [vmem:[%s3796_s24 + $0x8] sm:$0xff]  ;;  %v663_v37 = vld [vmem:[%s3796_s24 + $0x18] sm:$0xff]  ;;  %v2821_v39 = vld [vmem:[%s3794_s3 + $0x40] sm:$0xff]  ;;  %2955 = vrcp.f32 %v2997_v27 }
  0x1d   : > { %1104 = vmatpush.bf16.msra.mxu3 %v2842_v11  ;;  %v2830_v30 = vld [vmem:[%s3794_s3 + $0x88] sm:$0xff]  ;;  %v667_v34 = vadd.f32 %v661_v29, %v655_v28  ;;  %v2852_v40 = vld [vmem:[%s3794_s3 + $0x138] sm:$0xff]  ;;  %v2829_v42 = vld [vmem:[%s3794_s3 + $0x80] sm:$0xff]  ;;  %v669_v45 = vadd.f32 %v663_v37, %v657_v36  ;;  %v769_v46 = vpack.c.bf16 %v666_v33, %v666_v33  ;;  %v771_v50 = vpack.c.bf16 %v668_v44, %v668_v44 }
  0x1e   : > { %1066 = vmatpush.bf16.msra.mxu0 %v2817_v12  ;;  %v2838_v31 = vld [vmem:[%s3794_s3 + $0xc8] sm:$0xff]  ;;  %v2860_v41 = vld [vmem:[%s3794_s3 + $0x178] sm:$0xff]  ;;  %v2837_v43 = vld [vmem:[%s3794_s3 + $0xc0] sm:$0xff] }
  0x1f   : > { %1079 = vmatpush.bf16.msra.mxu1 %v2825_v13  ;;  %v770_v47 = vpack.c.bf16 %v667_v34, %v667_v34  ;;  %v2851_v48 = vld [vmem:[%s3794_s3 + $0x130] sm:$0xff]  ;;  %v772_v51 = vpack.c.bf16 %v669_v45, %v669_v45  ;;  %v2850_v52 = vld [vmem:[%s3794_s3 + $0x128] sm:$0xff]  ;;  %v2849_v54 = vld [vmem:[%s3794_s3 + $0x120] sm:$0xff] }
  0x20   : > { %1092 = vmatpush.bf16.msra.mxu2 %v2833_v14  ;;  %v2859_v49 = vld [vmem:[%s3794_s3 + $0x170] sm:$0xff]  ;;  %v2858_v53 = vld [vmem:[%s3794_s3 + $0x168] sm:$0xff]  ;;  %v2857_v55 = vld [vmem:[%s3794_s3 + $0x160] sm:$0xff] }
  0x21   : > { %1105 = vmatpush.bf16.msra.mxu3 %v2841_v15  ;;  %v2848_v56 = vld [vmem:[%s3794_s3 + $0x118] sm:$0xff]  ;;  %v2847_v58 = vld [vmem:[%s3794_s3 + $0x110] sm:$0xff]  ;;  %v2846_v60 = vld [vmem:[%s3794_s3 + $0x108] sm:$0xff] }
  0x22   : > { %1067 = vmatpush.bf16.msra.mxu0 %v2816_v16  ;;  %v2856_v57 = vld [vmem:[%s3794_s3 + $0x158] sm:$0xff]  ;;  %v2855_v59 = vld [vmem:[%s3794_s3 + $0x150] sm:$0xff]  ;;  %v2854_v61 = vld [vmem:[%s3794_s3 + $0x148] sm:$0xff]  ;;  %v2956_v28 = vpop.eup %2955 }
  0x23   : > { %1080 = vmatpush.bf16.msra.mxu1 %v2824_v17  ;;  %v658_v62 = vld [vmem:[%s3196_s27 + $0x20] sm:$0xff]  ;;  %v659_v0 = vld [vmem:[%s3196_s27 + $0x28] sm:$0xff]  ;;  %v1147_v29 = vmul.f32 128.0, %v2956_v28  ;;  %vm1151_vm0 = vweird.f32 %v2956_v28 }
  0x24   : > { %1093 = vmatpush.bf16.msra.mxu2 %v2832_v19  ;;  %v664_v63 = vld [vmem:[%s3796_s24 + $0x20] sm:$0xff]  ;;  %v665_v1 = vld [vmem:[%s3796_s24 + $0x28] sm:$0xff] }
  0x25   : > { %1106 = vmatpush.bf16.msra.mxu3 %v2840_v20  ;;  %v670_v2 = vadd.f32 %v664_v63, %v658_v62  ;;  %v671_v3 = vadd.f32 %v665_v1, %v659_v0  ;;  %v2845_v4 = vld [vmem:[%s3794_s3 + $0x100] sm:$0xff] }
  0x26   : > { %1068 = vmatpush.bf16.msra.mxu0 %v2815_v18  ;;  %v2853_v5 = vld [vmem:[%s3794_s3 + $0x140] sm:$0xff] }
  0x27   : > { %1081 = vmatpush.bf16.msra.mxu1 %v2823_v21  ;;  %v773_v6 = vpack.c.bf16 %v670_v2, %v670_v2  ;;  %v774_v7 = vpack.c.bf16 %v671_v3, %v671_v3  ;;  %v2583_v2 = vld [vmem:[%s3772_s8 + $0x90] sm:$0xf]  ;;  %v2880_v3 = vld [vmem:[%s3772_s8 + $0x98] sm:$0xf0] }
  0x28   : > { %1094 = vmatpush.bf16.msra.mxu2 %v2831_v22  ;;  %v672_v22 = vld [vmem:[%s3797_s5] sm:$0xff]  ;;  %s2999_s5 = smov 32  }
  0x29   : > { %1107 = vmatpush.bf16.msra.mxu3 %v2839_v23 }
  0x2a   : > { %1069 = vmatpush.bf16.msra.mxu0 %v2814_v24 }
  0x2b   : > { %1082 = vmatpush.bf16.msra.mxu1 %v2822_v25 }
  0x2c   : > { %1095 = vmatpush.bf16.msra.mxu2 %v2830_v30  ;;  %v1148_v30 = vsub.f32 1.0, %v1147_v29  ;;  %v2547_v29 = vld [vmem:[%s3772_s8 + $0x48] sm:$0xf] }
  0x2d   : > { %1108 = vmatpush.bf16.msra.mxu3 %v2838_v31 }
  0x2e   : > { %1070 = vmatpush.bf16.msra.mxu0 %v2813_v38  ;;  %v1149_v31 = vmul.f32 %v2956_v28, %v1148_v30  ;;  %v2871_v30 = vld [vmem:[%s3772_s8 + $0x50] sm:$0xf0] }
  0x2f   : > { %1083 = vmatpush.bf16.msra.mxu1 %v2821_v39 }
  0x30   : > { %1096 = vmatpush.bf16.msra.mxu2 %v2829_v42  ;;  %v1150_v32 = vadd.f32 %v2956_v28, %v1149_v31  ;;  %v2870_v31 = vld [vmem:[%s3772_s8 + $0x4c] sm:$0xf] }
  0x31   : > { %1109 = vmatpush.bf16.msra.mxu3 %v2837_v43  ;;  %1071 = vmatmul.bf16.vlgmr.msra.gmra.mxu0 %v769_v46 }
  0x32   : > { %1115 = vmatpush.bf16.msrb.mxu0 %v2852_v40  ;;  %1084 = vmatmul.bf16.vlgmr.msra.gmra.mxu1 %v770_v47  ;;  %v3303_v33 = vsel %vm1151_vm0, %v2956_v28, %v1150_v32  ;;  %v2947_v47 = vld [vmem:[%s3798_s23] ss:$0 sm:$0xff]  ;;  %v2548_v32 = vor.u32 %v2871_v30, %v2547_v29 }
  0x33   : > { %1128 = vmatpush.bf16.msrb.mxu1 %v2860_v41  ;;  %1097 = vmatmul.bf16.vlgmr.msra.gmra.mxu2 %v771_v50  ;;  %v2948_v50 = vld [vmem:[%s3799_s29] ss:$0 sm:$0xff] }
  0x34   : > { %1110 = vmatmul.bf16.vlgmr.msra.gmra.mxu3 %v772_v51 }
  0x36   : > { %1116 = vmatpush.bf16.msrb.mxu0 %v2851_v48 }
  0x37   : > { %1129 = vmatpush.bf16.msrb.mxu1 %v2859_v49 }
  0x3a   : > { %1117 = vmatpush.bf16.msrb.mxu0 %v2850_v52 }
  0x3b   : > { %1130 = vmatpush.bf16.msrb.mxu1 %v2858_v53  ;;  %v2595_v53 = vld [vmem:[%s3772_s8 + $0xa8] sm:$0xf] }
  0x3e   : > { %1118 = vmatpush.bf16.msrb.mxu0 %v2849_v54  ;;  %v2883_v54 = vld [vmem:[%s3772_s8 + $0xb0] sm:$0xf0] }
  0x3f   : > { %1131 = vmatpush.bf16.msrb.mxu1 %v2857_v55  ;;  %v2882_v55 = vld [vmem:[%s3772_s8 + $0xac] sm:$0xf] }
  0x42   : > { %1119 = vmatpush.bf16.msrb.mxu0 %v2848_v56  ;;  %v2596_v56 = vor.u32 %v2883_v54, %v2595_v53  ;;  %v2525_v53 = vld [vmem:[%s3772_s8 + $0x24] sm:$0xf0]  ;;  %v2531_v54 = vld [vmem:[%s3772_s8 + $0x20] sm:$0xf] }
  0x43   : > { %1132 = vmatpush.bf16.msrb.mxu1 %v2856_v57  ;;  %v2597_v57 = vld [vmem:[%s3772_s8 + $0xb4] sm:$0xf0] }
  0x44   : > { %1451 = vmatpush.bf16.msrb.mxu2 %v2596_v56 }
  0x46   : > { %1120 = vmatpush.bf16.msrb.mxu0 %v2847_v58  ;;  %v2603_v58 = vld [vmem:[%s3772_s8 + $0xb0] sm:$0xf] }
  0x47   : > { %1133 = vmatpush.bf16.msrb.mxu1 %v2855_v59  ;;  %v2884_v59 = vld [vmem:[%s3772_s8 + $0xb8] sm:$0xf0] }
  0x4a   : > { %1121 = vmatpush.bf16.msrb.mxu0 %v2846_v60  ;;  %v2600_v60 = vor.u32 %v2882_v55, %v2597_v57  ;;  %v2866_v55 = vld [vmem:[%s3772_s8 + $0x28] sm:$0xf0] }
  0x4b   : > { %1134 = vmatpush.bf16.msrb.mxu1 %v2854_v61  ;;  %v2604_v61 = vor.u32 %v2884_v59, %v2603_v58  ;;  %v2532_v57 = vor.u32 %v2866_v55, %v2531_v54  ;;  %v2511_v58 = vld [vmem:[%s3772_s8] sm:$0xf]  ;;  %v2862_v59 = vld [vmem:[%s3772_s8 + $0x8] sm:$0xf0] }
  0x4c   : > { %1464 = vmatpush.bf16.msrb.mxu3 %v2600_v60  ;;  %v2861_v60 = vld [vmem:[%s3772_s8 + $0x4] sm:$0xf] }
  0x4e   : > { %1122 = vmatpush.bf16.msrb.mxu0 %v2845_v4  ;;  %v2879_v4 = vld [vmem:[%s3772_s8 + $0x94] sm:$0xf] }
  0x4f   : > { %1135 = vmatpush.bf16.msrb.mxu1 %v2853_v5  ;;  %v2584_v5 = vor.u32 %v2880_v3, %v2583_v2 }
  0x51   : > { %1123 = vmatmul.bf16.vlgmr.msrb.gmra.mxu0 %v773_v6  ;;  %v2585_v6 = vld [vmem:[%s3772_s8 + $0x9c] sm:$0xf0]  ;;  %1452 = vmatpush.bf16.msrb.mxu2 %v2584_v5 }
  0x52   : > { %1136 = vmatmul.bf16.vlgmr.msrb.gmra.mxu1 %v774_v7  ;;  %1477 = vmatpush.bf16.msra.mxu0 %v2604_v61  ;;  %v2591_v7 = vld [vmem:[%s3772_s8 + $0x98] sm:$0xf]  ;;  %v2512_v61 = vor.u32 %v2862_v59, %v2511_v58 }
  0xae   : > { %v1072_v8 = vpop.f32.mrf.mxu0 }
  0xaf   : > { %v1085_v9 = vpop.f32.mrf.mxu1 }
  0xb0   : > { %v1086_v16 = vadd.f32 %v1085_v9, %v1072_v8  ;;  %v2881_v8 = vld [vmem:[%s3772_s8 + $0xa0] sm:$0xf0]  ;;  %v2588_v9 = vor.u32 %v2879_v4, %v2585_v6 }
  0xb2   : > { %1465 = vmatpush.bf16.msrb.mxu3 %v2588_v9 }
  0xb6   : > { %v1074_v10 = vpop.f32.mrf.mxu0  ;;  %v1098_v12 = vpop.f32.mrf.mxu2 }
  0xb7   : > { %v1087_v11 = vpop.f32.mrf.mxu1  ;;  %v1111_v13 = vpop.f32.mrf.mxu3  ;;  %v1099_v17 = vadd.f32 %v1098_v12, %v1086_v16  ;;  %v2592_v10 = vor.u32 %v2881_v8, %v2591_v7  ;;  %v2877_v12 = vld [vmem:[%s3772_s8 + $0x80] sm:$0xf0]  ;;  %v2579_v16 = vld [vmem:[%s3772_s8 + $0x80] sm:$0xf] }
  0xb8   : > { %v2571_v11 = vld [vmem:[%s3772_s8 + $0x78] sm:$0xf] }
  0xb9   : > { %v1112_v18 = vadd.f32 %v1111_v13, %v1099_v17  ;;  %1478 = vmatpush.bf16.msra.mxu0 %v2592_v10  ;;  %v2876_v13 = vld [vmem:[%s3772_s8 + $0x7c] sm:$0xf]  ;;  %v2878_v17 = vld [vmem:[%s3772_s8 + $0x88] sm:$0xf0] }
  0xbe   : > { %v1100_v14 = vpop.f32.mrf.mxu2 }
  0xbf   : > { %v1113_v15 = vpop.f32.mrf.mxu3  ;;  %v2572_v14 = vor.u32 %v2877_v12, %v2571_v11 }
  0xc0   : > { %v2573_v15 = vld [vmem:[%s3772_s8 + $0x84] sm:$0xf0] }
  0xc1   : > { %1453 = vmatpush.bf16.msrb.mxu2 %v2572_v14 }
  0xce   : > { %v1124_v19 = vpop.f32.mrf.mxu0 }
  0xcf   : > { %v1137_v20 = vpop.f32.mrf.mxu1  ;;  %v1125_v21 = vadd.f32 %v1124_v19, %v1112_v18  ;;  %v2576_v18 = vor.u32 %v2876_v13, %v2573_v15  ;;  %v2580_v19 = vor.u32 %v2878_v17, %v2579_v16  ;;  %v2949_v13 = vld [vmem:[%s3770_s6] ss:$0 sm:$0xff] }
  0xd0   : > { %v2950_v16 = vld [vmem:[%s3771_s7] ss:$0 sm:$0xff] }
  0xd1   : > { %v1138_v23 = vadd.f32 %v1137_v20, %v1125_v21  ;;  %1466 = vmatpush.bf16.msrb.mxu3 %v2576_v18  ;;  %1479 = vmatpush.bf16.msra.mxu0 %v2580_v19  ;;  %v2559_v20 = vld [vmem:[%s3772_s8 + $0x60] sm:$0xf]  ;;  %v2874_v21 = vld [vmem:[%s3772_s8 + $0x68] sm:$0xf0] }
  0xd3   : > { %v1141_v24 = vadd.f32 %v1138_v23, %v672_v22  ;;  %v2873_v22 = vld [vmem:[%s3772_s8 + $0x64] sm:$0xf]  ;;  %v2560_v23 = vor.u32 %v2874_v21, %v2559_v20  ;;  %v1217_v20 = vld [vmem:[%s3773_s9] sm:$0x7] }
  0xd4   : > { %v1319_v21 = vperm.slane %v1217_v20, 2 }
  0xd5   : > { %1144 = vadd.xlane.f32.xlu0 %v1141_v24  ;;  %1454 = vmatpush.bf16.msrb.mxu2 %v2560_v23 }
  0xd6   : > { %v1126_v25 = vpop.f32.mrf.mxu0 }
  0xd7   : > { %v1139_v26 = vpop.f32.mrf.mxu1  ;;  %v2567_v25 = vld [vmem:[%s3772_s8 + $0x68] sm:$0xf] }
  0xd8   : > { %v2875_v26 = vld [vmem:[%s3772_s8 + $0x70] sm:$0xf0] }
  0xd9   : > { %v2568_v28 = vor.u32 %v2875_v26, %v2567_v25  ;;  %1455 = vmatpush.bf16.msrb.mxu2 %v2548_v32  ;;  %v1318_v25 = vperm.slane %v1217_v20, 1 }
  0xdb   : > { %1480 = vmatpush.bf16.msra.mxu0 %v2568_v28 }
 0x148   : > { %v1145_v34 = vpop.xlane.xlu0 %1144 }
 0x149   : > { %v1153_v35 = vmul.f32 %v3303_v33, %v1145_v34  ;;  %v2549_v34 = vld [vmem:[%s3772_s8 + $0x54] sm:$0xf0] }
 0x14b   : > { %v1154_v36 = vsub.f32 %v1141_v24, %v1153_v35  ;;  %v2561_v24 = vld [vmem:[%s3772_s8 + $0x6c] sm:$0xf0] }
 0x14c   : > { %v2564_v27 = vor.u32 %v2873_v22, %v2561_v24  ;;  %v2555_v35 = vld [vmem:[%s3772_s8 + $0x50] sm:$0xf]  ;;  %v1317_v24 = vperm.slane %v1217_v20, 0 }
 0x14d   : > { %v1155_v37 = vmul.f32 %v1154_v36, %v1154_v36 }
 0x14e   : > { %1467 = vmatpush.bf16.msrb.mxu3 %v2564_v27 }
 0x14f   : > { %1156 = vadd.xlane.f32.xlu0 %v1155_v37  ;;  %v2552_v37 = vor.u32 %v2870_v31, %v2549_v34 }
 0x152   : > { %1468 = vmatpush.bf16.msrb.mxu3 %v2552_v37 }
 0x1c2   : > { %v1157_v38 = vpop.xlane.xlu0 %1156 }
 0x1c3   : > { %v1158_v39 = vmul.f32 %v1157_v38, %v3303_v33 }
 0x1c5   : > { %v1159_v40 = vadd.f32 1e-05, %v1158_v39  ;;  %v2535_v39 = vld [vmem:[%s3772_s8 + $0x30] sm:$0xf] }
 0x1c7   : > { %2957 = vrsqrt.f32 %v1159_v40  ;;  %vm1166_vm2 = vweird.f32 %v1159_v40 }
 0x1cd   : > { %v2958_v41 = vpop.eup %2957 }
 0x1ce   : > { %v1161_v42 = vmul.f32 %v2958_v41, %v1159_v40  ;;  %vm1167_vm1 = vweird.f32 %v2958_v41  ;;  %v2868_v40 = vld [vmem:[%s3772_s8 + $0x38] sm:$0xf0] }
 0x1cf   : > { %vm1168_vm3 = vmor %vm1166_vm2, %vm1167_vm1 }
 0x1d0   : > { %v1162_v43 = vmul.f32 %v2958_v41, %v1161_v42  ;;  %v2536_v42 = vor.u32 %v2868_v40, %v2535_v39  ;;  %v1179_v40 = vlaneseq }
 0x1d2   : > { %v1163_v44 = vmul.f32 0.5, %v1162_v43  ;;  %v2537_v43 = vld [vmem:[%s3772_s8 + $0x3c] sm:$0xf0]  ;;  %1456 = vmatpush.bf16.msrb.mxu2 %v2536_v42 }
 0x1d4   : > { %v1164_v45 = vsub.f32 1.5, %v1163_v44  ;;  %v2543_v44 = vld [vmem:[%s3772_s8 + $0x38] sm:$0xf] }
 0x1d6   : > { %v1165_v46 = vmul.f32 %v2958_v41, %v1164_v45  ;;  %v2869_v45 = vld [vmem:[%s3772_s8 + $0x40] sm:$0xf0] }
 0x1d8   : > { %v1169_v48 = vsel %vm1168_vm3, %v2958_v41, %v1165_v46  ;;  %v2867_v41 = vld [vmem:[%s3772_s8 + $0x34] sm:$0xf] }
 0x1d9   : > { %v1170_v49 = vmul.f32 %v1169_v48, %v1154_v36  ;;  %v2872_v36 = vld [vmem:[%s3772_s8 + $0x58] sm:$0xf0]  ;;  %v2540_v46 = vor.u32 %v2867_v41, %v2537_v43  ;;  %v2523_v48 = vld [vmem:[%s3772_s8 + $0x18] sm:$0xf]  ;;  %v1180_v41 = vand.u32 127, %v1179_v40 }
 0x1da   : > { %v2556_v38 = vor.u32 %v2872_v36, %v2555_v35  ;;  %v3000_v43 = vmov -1e+09  }
 0x1db   : > { %v1174_v51 = vmul.f32 %v2947_v47, %v1170_v49  ;;  %v2544_v47 = vor.u32 %v2869_v45, %v2543_v44  ;;  %1469 = vmatpush.bf16.msrb.mxu3 %v2540_v46  ;;  %v2865_v49 = vld [vmem:[%s3772_s8 + $0x20] sm:$0xf0]  ;;  %vm1181_vm9 = vcmp.lt.s32.totalorder %v1180_v41, 5 }
 0x1dc   : > { %1481 = vmatpush.bf16.msra.mxu0 %v2556_v38  ;;  %v3488_v44 = vsel %vm1181_vm9, 0.0, %v3000_v43 }
 0x1dd   : > { %v3313_v52 = vadd.f32 %v2948_v50, %v1174_v51  ;;  %v2864_v50 = vld [vmem:[%s3772_s8 + $0x1c] sm:$0xf]  ;;  %v2524_v51 = vor.u32 %v2865_v49, %v2523_v48 }
 0x1de   : > { %v2528_v56 = vor.u32 %v2864_v50, %v2525_v53 }
 0x1df   : > { %1287 = vadd.xlane.f32.xlu1 %v3313_v52  ;;  %1457 = vmatpush.bf16.msrb.mxu2 %v2524_v51 }
 0x1e0   : > { %1482 = vmatpush.bf16.msra.mxu0 %v2544_v47  ;;  %1470 = vmatpush.bf16.msrb.mxu3 %v2528_v56 }
 0x1e3   : > { %1458 = vmatpush.bf16.msrb.mxu2 %v2512_v61 }
 0x1e4   : > { %1483 = vmatpush.bf16.msra.mxu0 %v2532_v57 }
 0x252   : > { %v1288_v62 = vpop.xlane.xlu1 %1287 }
 0x253   : > { %v1289_v63 = vmul.f32 %v1288_v62, %v3303_v33  ;;  %v2513_v62 = vld [vmem:[%s3772_s8 + $0xc] sm:$0xf0] }
 0x254   : > { %v2516_v2 = vor.u32 %v2861_v60, %v2513_v62  ;;  %v2886_v60 = vld [vmem:[%s3774_s10 + $0x8] sm:$0xff]  ;;  %v2885_v62 = vld [vmem:[%s3774_s10] sm:$0xff] }
 0x255   : > { %v3336_v0 = vsub.f32 %v3313_v52, %v1289_v63  ;;  %v2519_v63 = vld [vmem:[%s3772_s8 + $0x8] sm:$0xf] }
 0x256   : > { %1471 = vmatpush.bf16.msrb.mxu3 %v2516_v2 }
 0x257   : > { %v1291_v1 = vmul.f32 %v3336_v0, %v3336_v0 }
 0x259   : > { %1292 = vadd.xlane.f32.xlu1 %v1291_v1  ;;  %v2863_v1 = vld [vmem:[%s3772_s8 + $0x10] sm:$0xf0] }
 0x25a   : > { %v2520_v3 = vor.u32 %v2863_v1, %v2519_v63 }
 0x25c   : > { %1484 = vmatpush.bf16.msra.mxu0 %v2520_v3 }
 0x2cc   : > { %v1293_v4 = vpop.xlane.xlu1 %1292 }
 0x2cd   : > { %v1294_v5 = vmul.f32 %v1293_v4, %v3303_v33 }
 0x2cf   : > { %v1295_v6 = vadd.f32 1e-05, %v1294_v5 }
 0x2d1   : > { %2959 = vrsqrt.f32 %v1295_v6  ;;  %vm1302_vm5 = vweird.f32 %v1295_v6 }
 0x2d7   : > { %v2960_v7 = vpop.eup %2959 }
 0x2d8   : > { %v1297_v8 = vmul.f32 %v2960_v7, %v1295_v6  ;;  %vm1303_vm4 = vweird.f32 %v2960_v7 }
 0x2d9   : > { %vm1304_vm6 = vmor %vm1302_vm5, %vm1303_vm4 }
 0x2da   : > { %v1298_v9 = vmul.f32 %v2960_v7, %v1297_v8 }
 0x2dc   : > { %v1299_v10 = vmul.f32 0.5, %v1298_v9 }
 0x2de   : > { %v1300_v11 = vsub.f32 1.5, %v1299_v10 }
 0x2e0   : > { %v1301_v12 = vmul.f32 %v2960_v7, %v1300_v11 }
 0x2e2   : > { %v1305_v14 = vsel %vm1304_vm6, %v2960_v7, %v1301_v12  ;;  %vm2160_vm6 = vcmask 1040384  }
 0x2e3   : > { %v1306_v15 = vmul.f32 %v1305_v14, %v3336_v0 }
 0x2e5   : > { %v1310_v17 = vmul.f32 %v2949_v13, %v1306_v15 }
 0x2e7   : > { %v1314_v18 = vadd.f32 %v2950_v16, %v1310_v17 }
 0x2e9   : > { %v1315_v19 = vpack.c.bf16 %v1314_v18, %v1314_v18 }
 0x2eb   : > { %1459 = vmatmul.bf16.vlgmr.msrb.gmra.mxu2 %v1315_v19  ;;  %1472 = vmatmul.bf16.vlgmr.msrb.gmra.mxu3 %v1315_v19 }
 0x2ec   : > { %1485 = vmatmul.bf16.vlgmr.msra.gmra.mxu0 %v1315_v19 }
 0x369   : > { %v1486_v22 = vpop.f32.mrf.mxu0 }
 0x36a   : > { %v1487_v23 = vadd.f32 %v1486_v22, %v1319_v21 }
 0x36c   : > { %v3477_v0 = vpack.c.bf16 %v1487_v23, %v1487_v23 }
 0x36e   : > { %v1460_v26 = vpop.f32.mrf.mxu2  ;;  %v1473_v27 = vpop.f32.mrf.mxu3  ;;  %v1533_v28 = vsel %vm1531_vm7, %v3477_v0, 0 }
 0x36f   : > { %v1461_v29 = vadd.f32 %v1460_v26, %v1317_v24  ;;  %v1474_v30 = vadd.f32 %v1473_v27, %v1318_v25  ;;  %1542 = vmatpush.bf16.msra.mxu3 %v1533_v28 }
 0x371   : > { %v1490_v31 = vpack.c.bf16 %v1461_v29, %v1461_v29  ;;  %v1491_v32 = vpack.c.bf16 %v1474_v30, %v1474_v30  ;;  %v1488_v34 = vpop.f32.mrf.mxu0 }
 0x373   : > { %1553 = vrot.lane.b32.xlu0 %v1491_v32, %s2998_s30  ;;  %1550 = vrot.lane.b32.xlu1 %v1490_v31, %s2998_s30  ;;  %v1497_v35 = vsel %vm1492_vm8, %v1491_v32, 0 }
 0x374   : > { %1506 = vmatpush.bf16.xpose.msra.mxu1 %v1497_v35 }
 0x376   : > { %v1462_v36 = vpop.f32.mrf.mxu2  ;;  %v1475_v37 = vpop.f32.mrf.mxu3 }
 0x37b   : > { %1757 = vrot.lane.b32.xlu0 %v1491_v32, %s2999_s5  ;;  %1755 = vrot.lane.b32.xlu1 %v1490_v31, %s2999_s5 }
 0x37c   : > { %2605 = vmatmul.msk.bf16.vlgmr.msra.gmra.mxu1 %vm1492_vm8, %v1490_v31 }
 0x3e5   : > { %v1554_v38 = vpop.permute.xlu0 %1553  ;;  %v1551_v2 = vpop.permute.xlu1 %1550 }
 0x3e6   : > { %v1559_v39 = vsel %vm1492_vm8, %v1554_v38, 0 }
 0x3e7   : > { %1568 = vmatpush.bf16.xpose.msrb.mxu3 %v1559_v39 }
 0x3ed   : > { %v1758_v1 = vpop.permute.xlu0 %1757  ;;  %v1756_v14 = vpop.permute.xlu1 %1755 }
 0x3ee   : > { %v1763_v3 = vsel %vm1492_vm8, %v1758_v1, 0 }
 0x3f9   : > { %v1508_v42 = vpop.f32.mrf.mxu1 }
 0x3fa   : > { %v1512_v45 = vmul.f32 0.17677669, %v1508_v42 }
 0x3fc   : > { %v1513_v46 = vadd.f32 %v1512_v45, %v3488_v44  ;;  %v2888_v45 = vld [vmem:[%s3774_s10 + $0x18] sm:$0xff] }
 0x3fd   : > { %1632 = vmatpush.bf16.msra.mxu2 %v2888_v45  ;;  %v2683_v45 = vld [vmem:[%s3778_s14 + $0x40] sm:$0xf] }
 0x3fe   : > { %v1515_v47 = vsel %vm1514_vm10, %v1513_v46, -inf }
 0x3ff   : > { %1516 = vmax.xlane.f32.xlu2 %v1515_v47 }
 0x401   : > { %v1510_v48 = vpop.f32.mrf.mxu1 }
 0x472   : > { %v1517_v49 = vpop.xlane.xlu2 %1516 }
 0x473   : > { %v1518_v50 = vsub.f32 %v1513_v46, %v1517_v49 }
 0x475   : > { %v1519_v51 = vmul.f32 1.442695, %v1518_v50 }
 0x477   : > { %2961 = vpow2.f32 %v1519_v51 }
 0x47d   : > { %v2962_v53 = vpop.eup %2961 }
 0x47e   : > { %v1521_v54 = vsel %vm1514_vm10, %v2962_v53, 0.0 }
 0x47f   : > { %1522 = vadd.xlane.f32.xlu2 %v1521_v54 }
 0x497   : > { %1669 = vrot.lane.b32.xlu2 %v1491_v32, %s3001_s22 }
 0x49f   : > { %1667 = vrot.lane.b32.xlu2 %v1490_v31, %s3001_s22 }
 0x4f2   : > { %v1523_v55 = vpop.xlane.xlu2 %1522 }
 0x4f3   : > { %2963 = vrcp.f32 %v1523_v55  ;;  %v2887_v55 = vld [vmem:[%s3774_s10 + $0x10] sm:$0xff] }
 0x4f4   : > { %1633 = vmatpush.bf16.msra.mxu2 %v2887_v55 }
 0x4f9   : > { %v2964_v56 = vpop.eup %2963 }
 0x4fa   : > { %v1525_v57 = vmul.f32 %v2964_v56, %v2962_v53  ;;  %v1670_v58 = vpop.permute.xlu2 %1669  ;;  %v2890_v56 = vld [vmem:[%s3774_s10 + $0x28] sm:$0xff] }
 0x4fb   : > { %v1675_v59 = vsel %vm1492_vm8, %v1670_v58, 0  ;;  %1747 = vmatpush.bf16.msrb.mxu2 %v2890_v56  ;;  %v2677_v56 = vld [vmem:[%s3778_s14 + $0x38] sm:$0xf0] }
 0x4fc   : > { %v1526_v61 = vpack.c.bf16 %v1525_v57, %v1525_v57  ;;  %1684 = vmatpush.bf16.xpose.msrb.mxu0 %v1675_v59  ;;  %v2889_v57 = vld [vmem:[%s3774_s10 + $0x20] sm:$0xff] }
 0x4fe   : > { %2606 = vmatmul.msk.bf16.vlgmr.msra.gmra.mxu3 %vm1514_vm10, %v1526_v61 }
 0x4ff   : > { %1660 = vmatpush.bf16.msra.mxu3 %v2886_v60  ;;  %1748 = vmatpush.bf16.msrb.mxu2 %v2889_v57 }
 0x502   : > { %v1668_v63 = vpop.permute.xlu2 %1667 }
 0x503   : > { %2627 = vmatmul.msk.bf16.vlgmr.msrb.gmra.mxu0 %vm1492_vm8, %v1668_v63  ;;  %1661 = vmatpush.bf16.msra.mxu3 %v2885_v62 }
 0x50e   : > { %2607 = vmatmul.msk.bf16.vlgmr.msrb.gmra.mxu3 %vm1492_vm8, %v1551_v2 }
 0x50f   : > { %1772 = vmatpush.bf16.xpose.msrb.mxu3 %v1763_v3 }
 0x580   : > { %v1686_v4 = vpop.f32.mrf.mxu0 }
 0x581   : > { %v1690_v5 = vmul.f32 0.17677669, %v1686_v4  ;;  %v1544_v6 = vpop.f32.mrf.mxu3 }
 0x582   : > { %v1548_v7 = vpack.c.bf16 %v1544_v6, %v1544_v6  ;;  %v2892_v6 = vld [vmem:[%s3774_s10 + $0x38] sm:$0xff] }
 0x583   : > { %v1691_v8 = vadd.f32 %v1690_v5, %v3488_v44 }
 0x584   : > { %2626 = vmatmul.msk.bf16.vlgmr.msra.gmra.mxu3 %vm1492_vm8, %v1548_v7  ;;  %v2891_v7 = vld [vmem:[%s3774_s10 + $0x30] sm:$0xff] }
 0x585   : > { %v1692_v9 = vsel %vm1514_vm10, %v1691_v8, -inf }
 0x586   : > { %1693 = vmax.xlane.f32.xlu2 %v1692_v9 }
 0x588   : > { %v1688_v10 = vpop.f32.mrf.mxu0 }
 0x589   : > { %v1546_v11 = vpop.f32.mrf.mxu3 }
 0x591   : > { %v1570_v12 = vpop.f32.mrf.mxu3 }
 0x592   : > { %v1574_v13 = vmul.f32 0.17677669, %v1570_v12 }
 0x594   : > { %2638 = vmatmul.msk.bf16.vlgmr.msrb.gmra.mxu3 %vm1492_vm8, %v1756_v14  ;;  %v1575_v15 = vadd.f32 %v1574_v13, %v3488_v44 }
 0x596   : > { %v1576_v16 = vsel %vm1514_vm10, %v1575_v15, -inf }
 0x597   : > { %1577 = vmax.xlane.f32.xlu0 %v1576_v16 }
 0x599   : > { %v1572_v17 = vpop.f32.mrf.mxu3 }
 0x59e   : > { %1589 = vrot.lane.b32.xlu2 %v3477_v0, %s2998_s30 }
 0x5f9   : > { %v1694_v18 = vpop.xlane.xlu2 %1693 }
 0x5fa   : > { %v1695_v26 = vsub.f32 %v1691_v8, %v1694_v18 }
 0x5fc   : > { %v1696_v29 = vmul.f32 1.442695, %v1695_v26 }
 0x601   : > { %v1590_v19 = vpop.permute.xlu2 %1589 }
 0x602   : > { %v1595_v20 = vsel %vm1531_vm7, %v1590_v19, 0  ;;  %v2951_v19 = vld [vmem:[%s3775_s11] ss:$0 sm:$0xff] }
 0x603   : > { %1604 = vmatpush.bf16.msrb.mxu1 %v1595_v20 }
 0x607   : > { %v3515_v21 = vpop.f32.mrf.mxu3 }
 0x60a   : > { %v1578_v22 = vpop.xlane.xlu0 %1577 }
 0x60b   : > { %v1579_v23 = vsub.f32 %v1575_v15, %v1578_v22 }
 0x60d   : > { %v1580_v24 = vmul.f32 1.442695, %v1579_v23  ;;  %v2707_v23 = vld [vmem:[%s3778_s14 + $0x70] sm:$0xf] }
 0x60f   : > { %2965 = vpow2.f32 %v1580_v24  ;;  %v1665_v25 = vpop.f32.mrf.mxu3  ;;  %v2908_v24 = vld [vmem:[%s3778_s14 + $0x74] sm:$0xf0] }
 0x610   : > { %2967 = vpow2.f32 %v1696_v29  ;;  %v2907_v25 = vld [vmem:[%s3778_s14 + $0x74] sm:$0xf]  ;;  %v2708_v26 = vor.u32 %v2908_v24, %v2707_v23 }
 0x615   : > { %v2966_v27 = vpop.eup %2965 }
 0x616   : > { %v1582_v28 = vsel %vm1514_vm10, %v2966_v27, 0.0  ;;  %v2968_v36 = vpop.eup %2967 }
 0x617   : > { %1583 = vadd.xlane.f32.xlu0 %v1582_v28  ;;  %v1774_v30 = vpop.f32.mrf.mxu3  ;;  %v1698_v37 = vsel %vm1514_vm10, %v2968_v36, 0.0 }
 0x618   : > { %v1778_v31 = vmul.f32 0.17677669, %v1774_v30 }
 0x61a   : > { %v1779_v32 = vadd.f32 %v1778_v31, %v3488_v44 }
 0x61c   : > { %v1780_v34 = vsel %vm1514_vm10, %v1779_v32, -inf }
 0x61d   : > { %1781 = vmax.xlane.f32.xlu1 %v1780_v34  ;;  %v2906_v34 = vld [vmem:[%s3778_s14 + $0x64] sm:$0xf0] }
 0x61f   : > { %v1776_v35 = vpop.f32.mrf.mxu3 }
 0x620   : > { %v2905_v35 = vld [vmem:[%s3778_s14 + $0x64] sm:$0xf] }
 0x625   : > { %1699 = vadd.xlane.f32.xlu1 %v1698_v37  ;;  %v2701_v37 = vld [vmem:[%s3778_s14 + $0x68] sm:$0xf0] }
 0x62b   : > { %1704 = vrot.lane.b32.xlu0 %v3477_v0, %s3001_s22 }
 0x68a   : > { %v1584_v38 = vpop.xlane.xlu0 %1583 }
 0x68b   : > { %2969 = vrcp.f32 %v1584_v38  ;;  %v2704_v38 = vor.u32 %v2905_v35, %v2701_v37  ;;  %v2913_v35 = vld [vmem:[%s3780_s16 + $0x20] sm:$0xff]  ;;  %v2912_v37 = vld [vmem:[%s3780_s16 + $0x18] sm:$0xff] }
 0x690   : > { %v1782_v39 = vpop.xlane.xlu1 %1781 }
 0x691   : > { %v2970_v40 = vpop.eup %2969  ;;  %v1783_v41 = vsub.f32 %v1779_v32, %v1782_v39  ;;  %v2699_v32 = vld [vmem:[%s3778_s14 + $0x60] sm:$0xf]  ;;  %v2691_v39 = vld [vmem:[%s3778_s14 + $0x50] sm:$0xf] }
 0x692   : > { %v1586_v42 = vmul.f32 %v2970_v40, %v2966_v27  ;;  %v2904_v40 = vld [vmem:[%s3778_s14 + $0x54] sm:$0xf0] }
 0x693   : > { %v1784_v43 = vmul.f32 1.442695, %v1783_v41  ;;  %v2903_v41 = vld [vmem:[%s3778_s14 + $0x54] sm:$0xf] }
 0x694   : > { %v1587_v44 = vpack.c.bf16 %v1586_v42, %v1586_v42  ;;  %v2692_v42 = vor.u32 %v2904_v40, %v2691_v39  ;;  %v2911_v39 = vld [vmem:[%s3780_s16 + $0x10] sm:$0xff] }
 0x695   : > { %2971 = vpow2.f32 %v1784_v43  ;;  %v2693_v43 = vld [vmem:[%s3778_s14 + $0x58] sm:$0xf0]  ;;  %v2919_v40 = vld [vmem:[%s3780_s16 + $0x50] sm:$0xff] }
 0x696   : > { %2608 = vmatmul.msk.bf16.vlgmr.msrb.gmra.mxu1 %vm1514_vm10, %v1587_v44  ;;  %v2696_v44 = vor.u32 %v2903_v41, %v2693_v43  ;;  %v1253_v41 = vld [vmem:[%s3779_s15] sm:$0x3] }
 0x697   : > { %v1879_v43 = vperm.slane %v1253_v41, 1 }
 0x698   : > { %v1700_v46 = vpop.xlane.xlu1 %1699 }
 0x699   : > { %2973 = vrcp.f32 %v1700_v46  ;;  %v2902_v46 = vld [vmem:[%s3778_s14 + $0x44] sm:$0xf0] }
 0x69b   : > { %v2972_v47 = vpop.eup %2971 }
 0x69c   : > { %v1786_v48 = vsel %vm1514_vm10, %v2972_v47, 0.0 }
 0x69d   : > { %v1705_v49 = vpop.permute.xlu0 %1704  ;;  %1787 = vadd.xlane.f32.xlu1 %v1786_v48  ;;  %v2684_v48 = vor.u32 %v2902_v46, %v2683_v45  ;;  %v2918_v45 = vld [vmem:[%s3780_s16 + $0x48] sm:$0xff] }
 0x69e   : > { %v1710_v50 = vsel %vm1531_vm7, %v1705_v49, 0  ;;  %v2685_v49 = vld [vmem:[%s3778_s14 + $0x48] sm:$0xf0] }
 0x69f   : > { %v2974_v51 = vpop.eup %2973  ;;  %1719 = vmatpush.bf16.msra.mxu1 %v1710_v50 }
 0x6a0   : > { %v1702_v53 = vmul.f32 %v2974_v51, %v2968_v36  ;;  %v2700_v36 = vor.u32 %v2906_v34, %v2699_v32  ;;  %v2675_v51 = vld [vmem:[%s3778_s14 + $0x30] sm:$0xf]  ;;  %v2914_v32 = vld [vmem:[%s3780_s16 + $0x28] sm:$0xff] }
 0x6a1   : > { %v2922_v34 = vld [vmem:[%s3780_s16 + $0x68] sm:$0xff] }
 0x6a2   : > { %v1703_v54 = vpack.c.bf16 %v1702_v53, %v1702_v53  ;;  %v2900_v53 = vld [vmem:[%s3778_s14 + $0x34] sm:$0xf0] }
 0x6a3   : > { %1835 = vmatpush.bf16.msrb.mxu1 %v2892_v6  ;;  %v2676_v55 = vor.u32 %v2900_v53, %v2675_v51  ;;  %v2894_v6 = vld [vmem:[%s3778_s14 + $0x4] sm:$0xf0]  ;;  %v2917_v51 = vld [vmem:[%s3780_s16 + $0x40] sm:$0xff] }
 0x6a6   : > { %2628 = vmatmul.msk.bf16.vlgmr.msra.gmra.mxu1 %vm1514_vm10, %v1703_v54  ;;  %v2899_v54 = vld [vmem:[%s3778_s14 + $0x34] sm:$0xf] }
 0x6a7   : > { %1836 = vmatpush.bf16.msrb.mxu1 %v2891_v7  ;;  %v2680_v57 = vor.u32 %v2899_v54, %v2677_v56 }
 0x6b6   : > { %1792 = vrot.lane.b32.xlu1 %v3477_v0, %s2999_s5  ;;  %s652_s5 = scalar_lea.vmem %s3785_s21, %s3801_s25 }
 0x710   : > { %v1788_v0 = vpop.xlane.xlu1 %1787 }
 0x711   : > { %2975 = vrcp.f32 %v1788_v0  ;;  %v2897_v0 = vld [vmem:[%s3778_s14 + $0x24] sm:$0xf] }
 0x713   : > { %v1606_v58 = vpop.f32.mrf.mxu1 }
 0x714   : > { %v1610_v59 = vpack.c.bf16 %v1606_v58, %v1606_v58  ;;  %v2667_v58 = vld [vmem:[%s3778_s14 + $0x20] sm:$0xf] }
 0x716   : > { %2617 = vmatmul.msk.bf16.vlgmr.msra.gmra.mxu2 %vm1492_vm8, %v1610_v59  ;;  %v2898_v59 = vld [vmem:[%s3778_s14 + $0x24] sm:$0xf0] }
 0x717   : > { %v2976_v62 = vpop.eup %2975  ;;  %1962 = vmatpush.bf16.msra.mxu2 %v2708_v26 }
 0x718   : > { %v1790_v1 = vmul.f32 %v2976_v62, %v2972_v47  ;;  %v2901_v47 = vld [vmem:[%s3778_s14 + $0x44] sm:$0xf] }
 0x719   : > { %v2688_v50 = vor.u32 %v2901_v47, %v2685_v49 }
 0x71a   : > { %v1791_v4 = vpack.c.bf16 %v1790_v1, %v1790_v1  ;;  %v2896_v1 = vld [vmem:[%s3778_s14 + $0x14] sm:$0xf0] }
 0x71b   : > { %v1608_v60 = vpop.f32.mrf.mxu1  ;;  %1963 = vmatpush.bf16.msra.mxu2 %v2700_v36  ;;  %v2921_v36 = vld [vmem:[%s3780_s16 + $0x60] sm:$0xff] }
 0x71c   : > { %v2668_v60 = vor.u32 %v2898_v59, %v2667_v58 }
 0x71f   : > { %1964 = vmatpush.bf16.msra.mxu2 %v2692_v42  ;;  %v1878_v42 = vperm.slane %v1253_v41, 0  ;;  %v2928_v41 = vld [vmem:[%s3784_s20 + $0x18] sm:$0xff] }
 0x723   : > { %v1721_v61 = vpop.f32.mrf.mxu1  ;;  %1965 = vmatpush.bf16.msra.mxu2 %v2684_v48 }
 0x724   : > { %v1725_v63 = vpack.c.bf16 %v1721_v61, %v1721_v61  ;;  %v2669_v61 = vld [vmem:[%s3778_s14 + $0x28] sm:$0xf0] }
 0x725   : > { %v2672_v62 = vor.u32 %v2897_v0, %v2669_v61 }
 0x726   : > { %2637 = vmatmul.msk.bf16.vlgmr.msrb.gmra.mxu2 %vm1492_vm8, %v1725_v63  ;;  %v2659_v63 = vld [vmem:[%s3778_s14 + $0x10] sm:$0xf] }
 0x727   : > { %1966 = vmatpush.bf16.msra.mxu2 %v2676_v55 }
 0x728   : > { %v1793_v2 = vpop.permute.xlu1 %1792 }
 0x729   : > { %v1798_v3 = vsel %vm1531_vm7, %v1793_v2, 0  ;;  %v2895_v2 = vld [vmem:[%s3778_s14 + $0x14] sm:$0xf] }
 0x72a   : > { %1807 = vmatpush.bf16.msra.mxu0 %v1798_v3  ;;  %v2660_v3 = vor.u32 %v2896_v1, %v2659_v63 }
 0x72b   : > { %v1723_v5 = vpop.f32.mrf.mxu1  ;;  %1967 = vmatpush.bf16.msra.mxu2 %v2668_v60 }
 0x72c   : > { %v2651_v5 = vld [vmem:[%s3778_s14] sm:$0xf] }
 0x72d   : > { %2639 = vmatmul.msk.bf16.vlgmr.msra.gmra.mxu0 %vm1514_vm10, %v1791_v4  ;;  %v2661_v4 = vld [vmem:[%s3778_s14 + $0x18] sm:$0xf0] }
 0x72e   : > { %v2664_v7 = vor.u32 %v2895_v2, %v2661_v4 }
 0x72f   : > { %1968 = vmatpush.bf16.msra.mxu2 %v2660_v3 }
 0x799   : > { %v1635_v8 = vpop.f32.mrf.mxu2 }
 0x79a   : > { %v1664_v10 = vadd.f32 %v3515_v21, %v1635_v8  ;;  %v2893_v8 = vld [vmem:[%s3778_s14 + $0x4] sm:$0xf] }
 0x7a1   : > { %v1637_v9 = vpop.f32.mrf.mxu2 }
 0x7a2   : > { %v2653_v9 = vld [vmem:[%s3778_s14 + $0x8] sm:$0xf0] }
 0x7a9   : > { %v1750_v11 = vpop.f32.mrf.mxu2 }
 0x7aa   : > { %v1754_v12 = vadd.f32 %v1750_v11, %v1664_v10  ;;  %v1809_v13 = vpop.f32.mrf.mxu0  ;;  %v2652_v10 = vor.u32 %v2894_v6, %v2651_v5  ;;  %v2656_v11 = vor.u32 %v2893_v8, %v2653_v9 }
 0x7ab   : > { %v1813_v14 = vpack.c.bf16 %v1809_v13, %v1809_v13 }
 0x7ac   : > { %1969 = vmatpush.bf16.msra.mxu2 %v2652_v10 }
 0x7ad   : > { %2648 = vmatmul.msk.bf16.vlgmr.msrb.gmra.mxu1 %vm1492_vm8, %v1813_v14 }
 0x7b1   : > { %v1752_v15 = vpop.f32.mrf.mxu2 }
 0x7b2   : > { %v1811_v16 = vpop.f32.mrf.mxu0 }
 0x82a   : > { %v1838_v17 = vpop.f32.mrf.mxu1 }
 0x82b   : > { %v1842_v18 = vadd.f32 %v1838_v17, %v1754_v12 }
 0x82d   : > { %v1843_v20 = vadd.f32 %v1842_v18, %v3313_v52  ;;  %v2709_v52 = vld [vmem:[%s3778_s14 + $0x78] sm:$0xf0] }
 0x82e   : > { %v2712_v27 = vor.u32 %v2907_v25, %v2709_v52  ;;  %v2953_v25 = vld [vmem:[%s3777_s13] ss:$0 sm:$0xff] }
 0x82f   : > { %v3557_v22 = vadd.f32 %v2951_v19, %v1843_v20 }
 0x830   : > { %1975 = vmatpush.bf16.msra.mxu3 %v2712_v27 }
 0x831   : > { %1848 = vadd.xlane.f32.xlu2 %v3557_v22 }
 0x832   : > { %v1840_v21 = vpop.f32.mrf.mxu1 }
 0x833   : > { %v2952_v21 = vld [vmem:[%s3776_s12] ss:$0 sm:$0xff] }
 0x834   : > { %1976 = vmatpush.bf16.msra.mxu3 %v2704_v38  ;;  %v2920_v38 = vld [vmem:[%s3780_s16 + $0x58] sm:$0xff] }
 0x838   : > { %1977 = vmatpush.bf16.msra.mxu3 %v2696_v44  ;;  %v2910_v44 = vld [vmem:[%s3780_s16 + $0x8] sm:$0xff] }
 0x83c   : > { %1978 = vmatpush.bf16.msra.mxu3 %v2688_v50  ;;  %v2909_v50 = vld [vmem:[%s3780_s16] sm:$0xff] }
 0x840   : > { %1979 = vmatpush.bf16.msra.mxu3 %v2680_v57 }
 0x844   : > { %1980 = vmatpush.bf16.msra.mxu3 %v2672_v62 }
 0x848   : > { %1981 = vmatpush.bf16.msra.mxu3 %v2664_v7 }
 0x84c   : > { %1982 = vmatpush.bf16.msra.mxu3 %v2656_v11 }
 0x8a4   : > { %v1849_v28 = vpop.xlane.xlu2 %1848 }
 0x8a5   : > { %v1850_v29 = vmul.f32 %v1849_v28, %v3303_v33  ;;  %v2916_v28 = vld [vmem:[%s3780_s16 + $0x38] sm:$0xff] }
 0x8a6   : > { %2131 = vmatpush.bf16.msrb.mxu0 %v2916_v28 }
 0x8a7   : > { %v3574_v30 = vsub.f32 %v3557_v22, %v1850_v29  ;;  %v2924_v29 = vld [vmem:[%s3780_s16 + $0x78] sm:$0xff] }
 0x8a8   : > { %2144 = vmatpush.bf16.msra.mxu1 %v2924_v29 }
 0x8a9   : > { %v1852_v31 = vmul.f32 %v3574_v30, %v3574_v30 }
 0x8ab   : > { %1853 = vadd.xlane.f32.xlu0 %v1852_v31  ;;  %v2923_v31 = vld [vmem:[%s3780_s16 + $0x70] sm:$0xff] }
 0x8ac   : > { %2145 = vmatpush.bf16.msra.mxu1 %v2923_v31 }
 0x8b0   : > { %2146 = vmatpush.bf16.msra.mxu1 %v2922_v34 }
 0x8b4   : > { %2147 = vmatpush.bf16.msra.mxu1 %v2921_v36 }
 0x8b8   : > { %2148 = vmatpush.bf16.msra.mxu1 %v2920_v38 }
 0x8bc   : > { %2149 = vmatpush.bf16.msra.mxu1 %v2919_v40  ;;  %v2929_v40 = vld [vmem:[%s3784_s20 + $0x20] sm:$0xff] }
 0x8c0   : > { %2150 = vmatpush.bf16.msra.mxu1 %v2918_v45 }
 0x8c4   : > { %2151 = vmatpush.bf16.msra.mxu1 %v2917_v51 }
 0x91e   : > { %v1854_v12 = vpop.xlane.xlu0 %1853 }
 0x91f   : > { %v1855_v13 = vmul.f32 %v1854_v12, %v3303_v33 }
 0x921   : > { %v1856_v14 = vadd.f32 1e-05, %v1855_v13 }
 0x923   : > { %2977 = vrsqrt.f32 %v1856_v14  ;;  %vm1863_vm12 = vweird.f32 %v1856_v14 }
 0x929   : > { %v2978_v15 = vpop.eup %2977 }
 0x92a   : > { %v1858_v16 = vmul.f32 %v2978_v15, %v1856_v14  ;;  %vm1864_vm11 = vweird.f32 %v2978_v15 }
 0x92b   : > { %vm1865_vm13 = vmor %vm1863_vm12, %vm1864_vm11 }
 0x92c   : > { %v1859_v17 = vmul.f32 %v2978_v15, %v1858_v16 }
 0x92e   : > { %v1860_v18 = vmul.f32 0.5, %v1859_v17 }
 0x930   : > { %v1861_v19 = vsub.f32 1.5, %v1860_v18 }
 0x932   : > { %v1862_v20 = vmul.f32 %v2978_v15, %v1861_v19 }
 0x934   : > { %v1866_v23 = vsel %vm1865_vm13, %v2978_v15, %v1862_v20 }
 0x935   : > { %v1867_v24 = vmul.f32 %v1866_v23, %v3574_v30  ;;  %v2915_v30 = vld [vmem:[%s3780_s16 + $0x30] sm:$0xff] }
 0x936   : > { %2132 = vmatpush.bf16.msrb.mxu0 %v2915_v30 }
 0x937   : > { %v1871_v26 = vmul.f32 %v2952_v21, %v1867_v24  ;;  %v2954_v24 = vld [vmem:[%s3781_s17] ss:$0 sm:$0xff] }
 0x939   : > { %v1875_v52 = vadd.f32 %v2953_v25, %v1871_v26 }
 0x93a   : > { %2133 = vmatpush.bf16.msrb.mxu0 %v2914_v32  ;;  %v2932_v32 = vld [vmem:[%s3784_s20 + $0x38] sm:$0xff] }
 0x93b   : > { %v1876_v27 = vpack.c.bf16 %v1875_v52, %v1875_v52  ;;  %2250 = vmatpush.bf16.msrb.mxu2 %v2932_v32 }
 0x93d   : > { %1970 = vmatmul.bf16.vlgmr.msra.gmra.mxu2 %v1876_v27  ;;  %1983 = vmatmul.bf16.vlgmr.msra.gmra.mxu3 %v1876_v27 }
 0x93e   : > { %2134 = vmatpush.bf16.msrb.mxu0 %v2913_v35 }
 0x942   : > { %2135 = vmatpush.bf16.msrb.mxu0 %v2912_v37 }
 0x946   : > { %2136 = vmatpush.bf16.msrb.mxu0 %v2911_v39  ;;  %v2930_v39 = vld [vmem:[%s3784_s20 + $0x28] sm:$0xff] }
 0x94a   : > { %2137 = vmatpush.bf16.msrb.mxu0 %v2910_v44  ;;  %v2925_v44 = vld [vmem:[%s3784_s20] sm:$0xff] }
 0x94e   : > { %2138 = vmatpush.bf16.msrb.mxu0 %v2909_v50 }
 0x9c0   : > { %v1971_v46 = vpop.f32.mrf.mxu2  ;;  %v1984_v47 = vpop.f32.mrf.mxu3 }
 0x9c1   : > { %v1972_v48 = vadd.f32 %v1971_v46, %v1878_v42  ;;  %v1985_v49 = vadd.f32 %v1984_v47, %v1879_v43  ;;  %v2927_v42 = vld [vmem:[%s3784_s20 + $0x10] sm:$0xff]  ;;  %v2926_v43 = vld [vmem:[%s3784_s20 + $0x8] sm:$0xff] }
 0x9c3   : > { %v2713_v53 = vmul.f32 -1.702, %v1972_v48  ;;  %v2714_v54 = vmul.f32 -1.702, %v1985_v49 }
 0x9c5   : > { %v1992_v55 = vmul.f32 1.442695, %v2713_v53  ;;  %v1994_v56 = vmul.f32 1.442695, %v2714_v54 }
 0x9c7   : > { %2979 = vpow2.f32 %v1992_v55 }
 0x9c8   : > { %2981 = vpow2.f32 %v1994_v56  ;;  %v1973_v57 = vpop.f32.mrf.mxu2  ;;  %v1986_v58 = vpop.f32.mrf.mxu3  ;;  %v2158_v56 = vld [vmem:[%s3782_s18] sm:$0x1] }
 0x9cd   : > { %v2980_v59 = vpop.eup %2979 }
 0x9ce   : > { %v2982_v0 = vpop.eup %2981  ;;  %v1996_v60 = vadd.f32 1.0, %v2980_v59 }
 0x9cf   : > { %v1997_v61 = vadd.f32 1.0, %v2982_v0 }
 0x9d0   : > { %2983 = vrcp.f32 %v1996_v60  ;;  %v2009_v4 = vand.u32 2147483648, %v1996_v60  ;;  %v2007_v7 = vand.u32 2147483647, %v1996_v60  ;;  %vm2003_vm0 = vweird.f32 %v1996_v60 }
 0x9d1   : > { %2985 = vrcp.f32 %v1997_v61  ;;  %v2024_v8 = vand.u32 2147483648, %v1997_v61  ;;  %v2022_v10 = vand.u32 2147483647, %v1997_v61  ;;  %vm2018_vm2 = vweird.f32 %v1997_v61 }
 0x9d2   : > { %v2010_v12 = vor.u32 1.1754944e-38, %v2009_v4  ;;  %vm2008_vm3 = vcmp.eq.f32.partialorder %v2007_v7, 8.507059e+37 }
 0x9d3   : > { %v2025_v15 = vor.u32 1.1754944e-38, %v2024_v8  ;;  %vm2023_vm5 = vcmp.eq.f32.partialorder %v2022_v10, 8.507059e+37 }
 0x9d6   : > { %v2984_v62 = vpop.eup %2983 }
 0x9d7   : > { %v2986_v63 = vpop.eup %2985  ;;  %v1999_v1 = vmul.f32 %v2984_v62, %v1996_v60  ;;  %vm2004_vm14 = vweird.f32 %v2984_v62 }
 0x9d8   : > { %v2014_v2 = vmul.f32 %v2986_v63, %v1997_v61  ;;  %vm2019_vm15 = vweird.f32 %v2986_v63  ;;  %vm2005_vm1 = vmor %vm2003_vm0, %vm2004_vm14 }
 0x9d9   : > { %v2000_v3 = vsub.f32 1.0, %v1999_v1  ;;  %vm2020_vm4 = vmor %vm2018_vm2, %vm2019_vm15 }
 0x9da   : > { %v2015_v5 = vsub.f32 1.0, %v2014_v2 }
 0x9db   : > { %v2001_v6 = vmul.f32 %v2984_v62, %v2000_v3 }
 0x9dc   : > { %v2016_v9 = vmul.f32 %v2986_v63, %v2015_v5 }
 0x9dd   : > { %v2002_v11 = vadd.f32 %v2984_v62, %v2001_v6 }
 0x9de   : > { %v2017_v13 = vadd.f32 %v2986_v63, %v2016_v9 }
 0x9df   : > { %v2006_v14 = vsel %vm2005_vm1, %v2984_v62, %v2002_v11 }
 0x9e0   : > { %v2011_v16 = vsel %vm2008_vm3, %v2010_v12, %v2006_v14  ;;  %v2021_v17 = vsel %vm2020_vm4, %v2986_v63, %v2017_v13 }
 0x9e1   : > { %v2028_v18 = vmul.f32 %v2011_v16, %v1972_v48  ;;  %v2026_v19 = vsel %vm2023_vm5, %v2025_v15, %v2021_v17 }
 0x9e2   : > { %v2029_v20 = vmul.f32 %v2026_v19, %v1985_v49 }
 0x9e3   : > { %v2030_v21 = vpack.c.bf16 %v2028_v18, %v2028_v18 }
 0x9e4   : > { %v2031_v23 = vpack.c.bf16 %v2029_v20, %v2029_v20 }
 0x9e5   : > { %2139 = vmatmul.bf16.vlgmr.msrb.gmra.mxu0 %v2030_v21 }
 0x9e6   : > { %2152 = vmatmul.bf16.vlgmr.msra.gmra.mxu1 %v2031_v23 }
 0xa62   : > { %v2140_v25 = vpop.f32.mrf.mxu0 }
 0xa63   : > { %v2141_v26 = vadd.f32 %v2954_v24, %v2140_v25  ;;  %v2153_v52 = vpop.f32.mrf.mxu1 }
 0xa65   : > { %v2154_v27 = vadd.f32 %v2153_v52, %v2141_v26 }
 0xa67   : > { %v2157_v28 = vadd.f32 %v2154_v27, %v3557_v22  ;;  %v2931_v22 = vld [vmem:[%s3784_s20 + $0x30] sm:$0xff] }
 0xa68   : > { %2251 = vmatpush.bf16.msrb.mxu2 %v2931_v22 }
 0xa69   : > { %v2161_v29 = vsel %vm2160_vm6, %v2157_v28, 0.0 }
 0xa6a   : > { %v2142_v30 = vpop.f32.mrf.mxu0  ;;  %2162 = vadd.xlane.f32.xlu1 %v2161_v29 }
 0xa6b   : > { %v2155_v31 = vpop.f32.mrf.mxu1 }
 0xa6c   : > { %2252 = vmatpush.bf16.msrb.mxu2 %v2930_v39 }
 0xa70   : > { %2253 = vmatpush.bf16.msrb.mxu2 %v2929_v40 }
 0xa74   : > { %2254 = vmatpush.bf16.msrb.mxu2 %v2928_v41 }
 0xa78   : > { %2255 = vmatpush.bf16.msrb.mxu2 %v2927_v42 }
 0xa7c   : > { %2256 = vmatpush.bf16.msrb.mxu2 %v2926_v43 }
 0xa80   : > { %2257 = vmatpush.bf16.msrb.mxu2 %v2925_v44 }
 0xadd   : > { %v2163_v34 = vpop.xlane.xlu1 %2162 }
 0xade   : > { %v2164_v35 = vmul.f32 %v2163_v34, %v3303_v33 }
 0xae0   : > { %v2165_v36 = vsub.f32 %v2157_v28, %v2164_v35 }
 0xae2   : > { %v2166_v37 = vmul.f32 %v2165_v36, %v2165_v36 }
 0xae4   : > { %v2167_v38 = vsel %vm2160_vm6, %v2166_v37, 0.0 }
 0xae5   : > { %2168 = vadd.xlane.f32.xlu2 %v2167_v38 }
 0xb58   : > { %v2169_v45 = vpop.xlane.xlu2 %2168 }
 0xb59   : > { %v2170_v46 = vmul.f32 %v2169_v45, %v3303_v33  ;;  %v2159_v33 = vld [vmem:[%s3783_s19] sm:$0x1] }
 0xb5b   : > { %v2171_v47 = vadd.f32 1e-05, %v2170_v46 }
 0xb5d   : > { %2987 = vrsqrt.f32 %v2171_v47  ;;  %vm2178_vm8 = vweird.f32 %v2171_v47 }
 0xb63   : > { %v2988_v48 = vpop.eup %2987 }
 0xb64   : > { %v2173_v49 = vmul.f32 %v2988_v48, %v2171_v47  ;;  %vm2179_vm7 = vweird.f32 %v2988_v48 }
 0xb65   : > { %vm2180_vm9 = vmor %vm2178_vm8, %vm2179_vm7 }
 0xb66   : > { %v2174_v50 = vmul.f32 %v2988_v48, %v2173_v49 }
 0xb68   : > { %v2175_v51 = vmul.f32 0.5, %v2174_v50 }
 0xb6a   : > { %v2176_v53 = vsub.f32 1.5, %v2175_v51 }
 0xb6c   : > { %v2177_v54 = vmul.f32 %v2988_v48, %v2176_v53 }
 0xb6e   : > { %v2181_v55 = vsel %vm2180_vm9, %v2988_v48, %v2177_v54 }
 0xb6f   : > { %v2182_v57 = vmul.f32 %v2181_v55, %v2165_v36 }
 0xb71   : > { %v2183_v58 = vmul.f32 %v2182_v57, %v2158_v56 }
 0xb73   : > { %v2184_v59 = vadd.f32 %v2183_v58, %v2159_v33 }
 0xb75   : > { %v2201_v0 = vpack.c.bf16 %v2184_v59, %v2184_v59 }
 0xb77   : > { %2258 = vmatmul.bf16.vlgmr.msrb.gmra.mxu2 %v2201_v0 }
 0xbfa   : > { %v2259_v60 = vpop.f32.mrf.mxu2 }
 0xbfb   : > { %2263 = vst [vmem:[%s652_s5] sm:$0x1] %v2259_v60 }
 0xc02   : > { %v2261_v61 = vpop.f32.mrf.mxu2 }
 0xc03 PF: > { %s31_s2 = sadd.s32 1, %s2995_s2  }
 0xc04   : > { %p28_p4 = scmp.ge.s32.totalorder %s31_s2, 4  }
 0xc06   :  { %30 = sbr.rel (!%p28_p4) target bundleno = 7 (0x7), region = 134 }

</bundles_post_ra>
